<compile_context>
chip_gen: v7x
topology: tpu7x:2x2x1
jax: 0.10.0
libtpu: 0.0.40
codegen_flags: <defaults>
</compile_context>

<pallas_src>
import numpy as np
import jax
import jax.numpy as jnp
from jax import lax
from jax.experimental import pallas as pl
from jax.experimental.pallas import tpu as pltpu


def make_kernel(N, H, W, Wp, pad, n_hidden, c_out, dy_list, eps,
                flag_add_residual, use_im2col):
    NH = N * H
    Krow = Wp * n_hidden                 # lanes per row-offset slab
    Pn = float(N * H * W)                # batch-norm population size

    def kernel(x_ref, wc1_ref, wbig_ref, pool_ref, gamma_ref, beta_ref,
               alpha_ref, out_ref, pad_ref, cols_ref):
        x = x_ref[...]                                        # (NH, W*c_in) f32

        # ---- Reduce: 1x1 conv in packed layout (block-diagonal weight) ------
        # bf16 MXU operands, f32 accumulation; x stays f32 for the residual /
        # batch-norm path (documented precision trade vs. a bf16 input DMA).
        y1 = jnp.dot(x.astype(jnp.bfloat16), wc1_ref[...],
                     preferred_element_type=jnp.float32)      # (NH, W*nh) f32

        # ---- zero-padded spatial view of y1 (lane-packed scratch) -----------
        pad_ref[...] = jnp.zeros_like(pad_ref)                # dense memset
        pad_ref[:, pad:pad + H, pad * n_hidden:(pad + W) * n_hidden] = (
            y1.astype(pad_ref.dtype).reshape(N, H, W * n_hidden))

        def slab(dy):
            # All dx offsets for this dy are folded into the weight, so a tap
            # read is a plain sublane slice: no lane shift, no relayout.
            s = pad_ref[:, pad + dy:pad + dy + H, :]          # (N, H, Krow)
            return s.reshape(NH, Krow).astype(jnp.bfloat16)

        # ---- Split/Transform + HFF + Merge ----------------------------------
        if use_im2col:
            # Stage each slab through VMEM (bounds vreg live ranges), then one
            # stacked MXU contraction.              (v6e / v5e preferred path)
            for i, dy in enumerate(dy_list):
                cols_ref[:, i * Krow:(i + 1) * Krow] = slab(dy)
            conv = jnp.dot(cols_ref[...], wbig_ref[...],
                           preferred_element_type=jnp.float32)  # (NH, W*c_out)
        else:
            # Per-row-offset accumulation (v7x-friendly).
            conv = jnp.zeros((NH, W * c_out), jnp.float32)
            for i, dy in enumerate(dy_list):
                conv = conv + jnp.dot(
                    slab(dy), wbig_ref[i * Krow:(i + 1) * Krow, :],
                    preferred_element_type=jnp.float32)

        combined = x + conv if flag_add_residual else conv     # f32

        # ---- BatchNorm2d (training-mode batch statistics) + PReLU -----------
        # Per-channel stats in the packed layout: reduce over rows (XLU), then
        # pool + broadcast across the W lane-groups with a 0/1 matrix on the
        # MXU (no lane<->sublane relayout of the statistics).
        rowsum = jnp.sum(combined, axis=0, keepdims=True)       # (1, W*c_out)
        mean = jnp.dot(rowsum, pool_ref[...],
                       preferred_element_type=jnp.float32) * (1.0 / Pn)
        centered = combined - mean
        sqsum = jnp.sum(centered * centered, axis=0, keepdims=True)
        var = jnp.dot(sqsum, pool_ref[...],
                      preferred_element_type=jnp.float32) * (1.0 / Pn)
        z = centered * lax.rsqrt(var + eps) * gamma_ref[...] + beta_ref[...]
        out_ref[...] = jnp.where(z >= 0.0, z, alpha_ref[...] * z)
        # TODO(synk): the PyTorch forward's debug `print(combined.shape)` and
        # the BatchNorm running-statistics buffer updates are module side
        # effects with no Pallas equivalent; omitted.

    return kernel


def _fold_hff_weights(w_ds, dilations, couts, c_out, n_hidden, H, W):
    """Per-(dy, dx) effective (n_hidden, c_out) weights with the HFF cumulative
    adds and the channel concat folded in.  Taps whose window lies entirely in
    the zero halo are dropped; duplicate spatial offsets are merged."""
    nd = len(dilations)
    ch_off = [0]
    for c in couts:
        ch_off.append(ch_off[-1] + c)
    w_off = {}
    for j, d in enumerate(dilations):
        # Output blocks fed by raw dilation-j output after the HFF adds:
        #   raw[0] -> block 0; raw[1] -> blocks 1..nd-1; raw[j>=2] -> j..nd-1
        if j == 0:
            blocks = [0]
        elif j == 1:
            blocks = list(range(1, nd))
        else:
            blocks = list(range(j, nd))
        cj = couts[j]
        # HFF fan-out is only well-formed when every fed block has cj channels.
        assert all(couts[b] == cj for b in blocks), (
            "HFF add requires matching channel counts across fed blocks")
        w_k = np.transpose(np.asarray(w_ds[j], np.float32), (2, 3, 1, 0))
        for ky in range(3):
            dy = d * (ky - 1)
            if abs(dy) >= H:                       # window fully in the halo
                continue
            for kx in range(3):
                dx = d * (kx - 1)
                if abs(dx) >= W:
                    continue
                w_eff = np.zeros((n_hidden, c_out), np.float32)
                for b in blocks:
                    w_eff[:, ch_off[b]:ch_off[b] + cj] += w_k[ky, kx]
                key = (dy, dx)
                w_off[key] = w_off[key] + w_eff if key in w_off else w_eff
    return w_off


def _build_row_offset_weights(w_off, n_hidden, c_out, W, pad):
    """Fold dx (column) offsets into per-dy packed weights.

    Returns the sorted list of surviving row offsets and a stacked
    (len(dy_list)*Wp*n_hidden, W*c_out) weight with
      weight[wp*n_hidden + c, w*c_out + co] =
          sum over taps (dy, dx) with pad + w + dx == wp of w_off[(dy,dx)][c,co]
    """
    Wp = W + 2 * pad
    dy_list = sorted({dy for (dy, _) in w_off})
    stacks = []
    for dy in dy_list:
        a = np.zeros((Wp * n_hidden, W * c_out), np.float32)
        for (dy2, dx), w_eff in w_off.items():
            if dy2 != dy:
                continue
            shift = np.eye(Wp, W, k=-(pad + dx), dtype=np.float32)
            a += np.kron(shift, w_eff)
        stacks.append(a)
    return dy_list, np.concatenate(stacks, axis=0)


def multiple_dilations_block(x_nchw, params, dilations, flag_add_residual=True,
                             eps=1e-3, use_im2col=True,
                             scratch_dtype=jnp.bfloat16):
    N, c_in, H, W = x_nchw.shape
    w_c1 = np.asarray(params["w_c1"], np.float32)      # (nh, c_in, 1, 1) OIHW
    w_ds = [np.asarray(w, np.float32) for w in params["w_ds"]]
    n_hidden = w_c1.shape[0]
    couts = [int(w.shape[0]) for w in w_ds]
    c_out = sum(couts)
    if flag_add_residual:
        assert c_in == c_out, "residual add requires c_in == c_out"
    NH = N * H

    # Host-side weight folding (HFF + concat + dx offsets + zero-tap skip).
    w_off = _fold_hff_weights(w_ds, dilations, couts, c_out, n_hidden, H, W)
    pad = max(max(abs(dy), abs(dx)) for (dy, dx) in w_off)
    Wp = W + 2 * pad
    dy_list, wbig_np = _build_row_offset_weights(w_off, n_hidden, c_out, W, pad)

    # Packed-layout operands: rows = N*H, lanes = W*channels (channel fastest).
    x_packed = jnp.transpose(x_nchw, (0, 2, 3, 1)).reshape(NH, W * c_in)
    x_packed = x_packed.astype(jnp.float32)            # f32 residual / BN path
    wc1_mat = np.transpose(w_c1[:, :, 0, 0], (1, 0))              # (c_in, nh)
    wc1_bd = jnp.asarray(np.kron(np.eye(W, dtype=np.float32), wc1_mat),
                         dtype=jnp.bfloat16)            # (W*c_in, W*nh)
    wbig = jnp.asarray(wbig_np, dtype=jnp.bfloat16)     # (Dy*Wp*nh, W*c_out)
    pool = jnp.asarray(np.kron(np.ones((W, W), np.float32),
                               np.eye(c_out, dtype=np.float32)))  # f32, 0/1
    gamma_t = jnp.tile(jnp.asarray(params["gamma"], jnp.float32),
                       W).reshape(1, W * c_out)
    beta_t = jnp.tile(jnp.asarray(params["beta"], jnp.float32),
                      W).reshape(1, W * c_out)
    alpha_t = jnp.tile(jnp.asarray(params["alpha"], jnp.float32),
                       W).reshape(1, W * c_out)

    kernel = make_kernel(N, H, W, Wp, pad, n_hidden, c_out, dy_list, eps,
                         flag_add_residual, use_im2col)

    out_packed = pl.pallas_call(
        kernel,
        out_shape=jax.ShapeDtypeStruct((NH, W * c_out), jnp.float32),
        in_specs=[pl.BlockSpec(memory_space=pltpu.MemorySpace.VMEM)] * 7,
        out_specs=pl.BlockSpec(memory_space=pltpu.MemorySpace.VMEM),
        scratch_shapes=[
            pltpu.VMEM((N, H + 2 * pad, Wp * n_hidden), scratch_dtype),
            pltpu.VMEM((NH, len(dy_list) * Wp * n_hidden), jnp.bfloat16),
        ],
        compiler_params=pltpu.CompilerParams(vmem_limit_bytes=32 * 1024 * 1024),
    )(x_packed, wc1_bd, wbig, pool, gamma_t, beta_t, alpha_t)

    # Unpack (N*H, W*c_out) -> NCHW in the wrapper (outside the kernel).
    return jnp.transpose(out_packed.reshape(N, H, W, c_out), (0, 3, 1, 2))


def reference_forward(x, params, dilations, flag_add_residual=True, eps=1e-3):
    """Pure-JAX reference mirroring the PyTorch module (NCHW, f32)."""
    dn = ('NCHW', 'OIHW', 'NCHW')
    y1 = lax.conv_general_dilated(x, params["w_c1"], (1, 1), [(0, 0), (0, 0)],
                                  dimension_numbers=dn)
    outs = []
    for d, w in zip(dilations, params["w_ds"]):
        o = lax.conv_general_dilated(y1, w, (1, 1), [(d, d), (d, d)],
                                     rhs_dilation=(d, d), dimension_numbers=dn)
        outs.append(o)
    for k in range(2, len(dilations)):
        outs[k] = outs[k] + outs[k - 1]
    combined = jnp.concatenate(outs, axis=1)
    if flag_add_residual:
        combined = x + combined
    mean = combined.mean(axis=(0, 2, 3), keepdims=True)
    var = ((combined - mean) ** 2).mean(axis=(0, 2, 3), keepdims=True)
    g = params["gamma"].reshape(1, -1, 1, 1)
    b = params["beta"].reshape(1, -1, 1, 1)
    a = params["alpha"].reshape(1, -1, 1, 1)
    z = (combined - mean) / jnp.sqrt(var + eps) * g + b
    return jnp.where(z >= 0, z, a * z)


if __name__ == "__main__":
    N, C, H, W = 2, 20, 16, 16
    number_of_dilations = 5
    dilations = [1] + [2 ** p for p in range(1, number_of_dilations)]  # 1,2,4,8,16
    n = C // number_of_dilations                        # 4
    n1 = C - (number_of_dilations - 1) * n              # 4
    couts = [n1] + [n] * (number_of_dilations - 1)

    key = jax.random.PRNGKey(0)
    keys = jax.random.split(key, 4 + number_of_dilations)
    x = jax.random.normal(keys[0], (N, C, H, W), dtype=jnp.float32)
    w_c1 = 0.2 * jax.random.normal(keys[1], (n, C, 1, 1), dtype=jnp.float32)
    w_ds = [0.2 * jax.random.normal(keys[4 + i], (couts[i], n, 3, 3),
                                    dtype=jnp.float32)
            for i in range(number_of_dilations)]
    gamma = 1.0 + 0.1 * jax.random.normal(keys[2], (C,), dtype=jnp.float32)
    beta = 0.1 * jax.random.normal(keys[3], (C,), dtype=jnp.float32)
    alpha = jnp.full((C,), 0.25, dtype=jnp.float32)     # PReLU default init
    params = dict(w_c1=w_c1, w_ds=w_ds, gamma=gamma, beta=beta, alpha=alpha)

    def run(use_im2col, scratch_dtype):
        out = multiple_dilations_block(x, params, dilations,
                                       flag_add_residual=True,
                                       use_im2col=use_im2col,
                                       scratch_dtype=scratch_dtype)
        return jax.block_until_ready(out)

    try:
        # v6e/v5e-preferred path: bf16 packed scratch + staged single matmul.
        out = run(True, jnp.bfloat16)
    except Exception:
        # Most conservative configuration (f32 scratch slicing + per-row-offset
        # accumulation) for toolchains lacking packed-dtype offset relayouts.
        out = run(False, jnp.float32)
    assert out.shape == (N, C, H, W), out.shape

    ref = reference_forward(x, params, dilations, flag_add_residual=True)
    err = float(jnp.max(jnp.abs(out - ref)))
    # bf16 matmul operands (f32 accumulation) vs. the pure-f32 reference.
    assert err < 5e-2, f"max abs error too large: {err}"
    print("KERNEL_OK")
</pallas_src>

<mosaic_0001>
module attributes {stable_mosaic.version = 11 : i64} {
  func.func @kernel(%arg0: memref<32x320xf32, #tpu.memory_space<vmem>>, %arg1: memref<320x64xbf16, #tpu.memory_space<vmem>>, %arg2: memref<1152x320xbf16, #tpu.memory_space<vmem>>, %arg3: memref<320x320xf32, #tpu.memory_space<vmem>>, %arg4: memref<1x320xf32, #tpu.memory_space<vmem>>, %arg5: memref<1x320xf32, #tpu.memory_space<vmem>>, %arg6: memref<1x320xf32, #tpu.memory_space<vmem>>, %arg7: memref<32x320xf32, #tpu.memory_space<vmem>>, %arg8: memref<2x32x128xbf16, #tpu.memory_space<vmem>>, %arg9: memref<32x1152xbf16, #tpu.memory_space<vmem>>) attributes {dimension_semantics = [], scalar_prefetch = 0 : i64, scratch_operands = 2 : i64, tpu.core_type = #tpu.core_type<tc>} {
    %c0 = arith.constant 0 : index
    %c0_0 = arith.constant 0 : index
    %0 = vector.load %arg0[%c0, %c0_0] : memref<32x320xf32, #tpu.memory_space<vmem>>, vector<32x320xf32>
    %1 = arith.truncf %0 : vector<32x320xf32> to vector<32x320xbf16>
    %c0_1 = arith.constant 0 : index
    %c0_2 = arith.constant 0 : index
    %2 = vector.load %arg1[%c0_1, %c0_2] : memref<320x64xbf16, #tpu.memory_space<vmem>>, vector<320x64xbf16>
    %cst = arith.constant dense<0.000000e+00> : vector<32x64xf32>
    %3 = tpu.matmul %1, %2, %cst {dimension_numbers = #tpu.dot_dimension_numbers<[1], [0], [0], [1], [0, 0, 1, 1], [], []>} : vector<32x320xbf16>, vector<320x64xbf16>, vector<32x64xf32> -> vector<32x64xf32>
    %cst_3 = arith.constant 0.000000e+00 : bf16
    %4 = vector.broadcast %cst_3 : bf16 to vector<2x32x128xbf16>
    %c0_4 = arith.constant 0 : index
    %c0_5 = arith.constant 0 : index
    %c0_6 = arith.constant 0 : index
    %5 = vector.load %arg8[%c0_4, %c0_5, %c0_6] : memref<2x32x128xbf16, #tpu.memory_space<vmem>>, vector<2x32x128xbf16>
    tpu.vector_store %arg8[%c0_4, %c0_5, %c0_6], %4 {strides = array<i32>} : memref<2x32x128xbf16, #tpu.memory_space<vmem>>, vector<2x32x128xbf16>,
    %6 = arith.truncf %3 : vector<32x64xf32> to vector<32x64xbf16>
    %7 = vector.shape_cast %6 : vector<32x64xbf16> to vector<2x16x64xbf16>
    %c0_7 = arith.constant 0 : index
    %c8 = arith.constant 8 : index
    %c32 = arith.constant 32 : index
    %8 = vector.load %arg8[%c0_7, %c8, %c32] : memref<2x32x128xbf16, #tpu.memory_space<vmem>>, vector<2x16x64xbf16>
    tpu.vector_store %arg8[%c0_7, %c8, %c32], %7 {strides = array<i32>} : memref<2x32x128xbf16, #tpu.memory_space<vmem>>, vector<2x16x64xbf16>,
    %c0_8 = arith.constant 0 : index
    %c0_9 = arith.constant 0 : index
    %c0_10 = arith.constant 0 : index
    %9 = vector.load %arg8[%c0_8, %c0_9, %c0_10] : memref<2x32x128xbf16, #tpu.memory_space<vmem>>, vector<2x16x128xbf16>
    %10 = vector.shape_cast %9 : vector<2x16x128xbf16> to vector<32x128xbf16>
    %c0_11 = arith.constant 0 : index
    %c0_12 = arith.constant 0 : index
    %11 = vector.load %arg9[%c0_11, %c0_12] : memref<32x1152xbf16, #tpu.memory_space<vmem>>, vector<32x128xbf16>
    tpu.vector_store %arg9[%c0_11, %c0_12], %10 {strides = array<i32>} : memref<32x1152xbf16, #tpu.memory_space<vmem>>, vector<32x128xbf16>,
    %c0_13 = arith.constant 0 : index
    %c4 = arith.constant 4 : index
    %c0_14 = arith.constant 0 : index
    %12 = vector.load %arg8[%c0_13, %c4, %c0_14] : memref<2x32x128xbf16, #tpu.memory_space<vmem>>, vector<2x16x128xbf16>
    %13 = vector.shape_cast %12 : vector<2x16x128xbf16> to vector<32x128xbf16>
    %c0_15 = arith.constant 0 : index
    %c128 = arith.constant 128 : index
    %14 = vector.load %arg9[%c0_15, %c128] : memref<32x1152xbf16, #tpu.memory_space<vmem>>, vector<32x128xbf16>
    tpu.vector_store %arg9[%c0_15, %c128], %13 {strides = array<i32>} : memref<32x1152xbf16, #tpu.memory_space<vmem>>, vector<32x128xbf16>,
    %c0_16 = arith.constant 0 : index
    %c6 = arith.constant 6 : index
    %c0_17 = arith.constant 0 : index
    %15 = vector.load %arg8[%c0_16, %c6, %c0_17] : memref<2x32x128xbf16, #tpu.memory_space<vmem>>, vector<2x16x128xbf16>
    %16 = vector.shape_cast %15 : vector<2x16x128xbf16> to vector<32x128xbf16>
    %c0_18 = arith.constant 0 : index
    %c256 = arith.constant 256 : index
    %17 = vector.load %arg9[%c0_18, %c256] : memref<32x1152xbf16, #tpu.memory_space<vmem>>, vector<32x128xbf16>
    tpu.vector_store %arg9[%c0_18, %c256], %16 {strides = array<i32>} : memref<32x1152xbf16, #tpu.memory_space<vmem>>, vector<32x128xbf16>,
    %c0_19 = arith.constant 0 : index
    %c7 = arith.constant 7 : index
    %c0_20 = arith.constant 0 : index
    %18 = vector.load %arg8[%c0_19, %c7, %c0_20] : memref<2x32x128xbf16, #tpu.memory_space<vmem>>, vector<2x16x128xbf16>
    %19 = vector.shape_cast %18 : vector<2x16x128xbf16> to vector<32x128xbf16>
    %c0_21 = arith.constant 0 : index
    %c384 = arith.constant 384 : index
    %20 = vector.load %arg9[%c0_21, %c384] : memref<32x1152xbf16, #tpu.memory_space<vmem>>, vector<32x128xbf16>
    tpu.vector_store %arg9[%c0_21, %c384], %19 {strides = array<i32>} : memref<32x1152xbf16, #tpu.memory_space<vmem>>, vector<32x128xbf16>,
    %c0_22 = arith.constant 0 : index
    %c8_23 = arith.constant 8 : index
    %c0_24 = arith.constant 0 : index
    %21 = vector.load %arg8[%c0_22, %c8_23, %c0_24] : memref<2x32x128xbf16, #tpu.memory_space<vmem>>, vector<2x16x128xbf16>
    %22 = vector.shape_cast %21 : vector<2x16x128xbf16> to vector<32x128xbf16>
    %c0_25 = arith.constant 0 : index
    %c512 = arith.constant 512 : index
    %23 = vector.load %arg9[%c0_25, %c512] : memref<32x1152xbf16, #tpu.memory_space<vmem>>, vector<32x128xbf16>
    tpu.vector_store %arg9[%c0_25, %c512], %22 {strides = array<i32>} : memref<32x1152xbf16, #tpu.memory_space<vmem>>, vector<32x128xbf16>,
    %c0_26 = arith.constant 0 : index
    %c9 = arith.constant 9 : index
    %c0_27 = arith.constant 0 : index
    %24 = vector.load %arg8[%c0_26, %c9, %c0_27] : memref<2x32x128xbf16, #tpu.memory_space<vmem>>, vector<2x16x128xbf16>
    %25 = vector.shape_cast %24 : vector<2x16x128xbf16> to vector<32x128xbf16>
    %c0_28 = arith.constant 0 : index
    %c640 = arith.constant 640 : index
    %26 = vector.load %arg9[%c0_28, %c640] : memref<32x1152xbf16, #tpu.memory_space<vmem>>, vector<32x128xbf16>
    tpu.vector_store %arg9[%c0_28, %c640], %25 {strides = array<i32>} : memref<32x1152xbf16, #tpu.memory_space<vmem>>, vector<32x128xbf16>,
    %c0_29 = arith.constant 0 : index
    %c10 = arith.constant 10 : index
    %c0_30 = arith.constant 0 : index
    %27 = vector.load %arg8[%c0_29, %c10, %c0_30] : memref<2x32x128xbf16, #tpu.memory_space<vmem>>, vector<2x16x128xbf16>
    %28 = vector.shape_cast %27 : vector<2x16x128xbf16> to vector<32x128xbf16>
    %c0_31 = arith.constant 0 : index
    %c768 = arith.constant 768 : index
    %29 = vector.load %arg9[%c0_31, %c768] : memref<32x1152xbf16, #tpu.memory_space<vmem>>, vector<32x128xbf16>
    tpu.vector_store %arg9[%c0_31, %c768], %28 {strides = array<i32>} : memref<32x1152xbf16, #tpu.memory_space<vmem>>, vector<32x128xbf16>,
    %c0_32 = arith.constant 0 : index
    %c12 = arith.constant 12 : index
    %c0_33 = arith.constant 0 : index
    %30 = vector.load %arg8[%c0_32, %c12, %c0_33] : memref<2x32x128xbf16, #tpu.memory_space<vmem>>, vector<2x16x128xbf16>
    %31 = vector.shape_cast %30 : vector<2x16x128xbf16> to vector<32x128xbf16>
    %c0_34 = arith.constant 0 : index
    %c896 = arith.constant 896 : index
    %32 = vector.load %arg9[%c0_34, %c896] : memref<32x1152xbf16, #tpu.memory_space<vmem>>, vector<32x128xbf16>
    tpu.vector_store %arg9[%c0_34, %c896], %31 {strides = array<i32>} : memref<32x1152xbf16, #tpu.memory_space<vmem>>, vector<32x128xbf16>,
    %c0_35 = arith.constant 0 : index
    %c16 = arith.constant 16 : index
    %c0_36 = arith.constant 0 : index
    %33 = vector.load %arg8[%c0_35, %c16, %c0_36] : memref<2x32x128xbf16, #tpu.memory_space<vmem>>, vector<2x16x128xbf16>
    %34 = vector.shape_cast %33 : vector<2x16x128xbf16> to vector<32x128xbf16>
    %c0_37 = arith.constant 0 : index
    %c1024 = arith.constant 1024 : index
    %35 = vector.load %arg9[%c0_37, %c1024] : memref<32x1152xbf16, #tpu.memory_space<vmem>>, vector<32x128xbf16>
    tpu.vector_store %arg9[%c0_37, %c1024], %34 {strides = array<i32>} : memref<32x1152xbf16, #tpu.memory_space<vmem>>, vector<32x128xbf16>,
    %c0_38 = arith.constant 0 : index
    %c0_39 = arith.constant 0 : index
    %36 = vector.load %arg9[%c0_38, %c0_39] : memref<32x1152xbf16, #tpu.memory_space<vmem>>, vector<32x1152xbf16>
    %c0_40 = arith.constant 0 : index
    %c0_41 = arith.constant 0 : index
    %37 = vector.load %arg2[%c0_40, %c0_41] : memref<1152x320xbf16, #tpu.memory_space<vmem>>, vector<1152x320xbf16>
    %cst_42 = arith.constant dense<0.000000e+00> : vector<32x320xf32>
    %38 = tpu.matmul %36, %37, %cst_42 {dimension_numbers = #tpu.dot_dimension_numbers<[1], [0], [0], [1], [0, 0, 1, 1], [], []>} : vector<32x1152xbf16>, vector<1152x320xbf16>, vector<32x320xf32> -> vector<32x320xf32>
    %39 = arith.addf %0, %38 : vector<32x320xf32>
    %cst_43 = arith.constant dense<0.000000e+00> : vector<320xf32>
    %40 = vector.multi_reduction <add>, %39, %cst_43 [0] : vector<32x320xf32> to vector<320xf32>
    %41 = vector.shape_cast %40 : vector<320xf32> to vector<1x320xf32>
    %c0_44 = arith.constant 0 : index
    %c0_45 = arith.constant 0 : index
    %42 = vector.load %arg3[%c0_44, %c0_45] : memref<320x320xf32, #tpu.memory_space<vmem>>, vector<320x320xf32>
    %cst_46 = arith.constant dense<0.000000e+00> : vector<1x320xf32>
    %43 = tpu.matmul %41, %42, %cst_46 {dimension_numbers = #tpu.dot_dimension_numbers<[1], [0], [0], [1], [0, 0, 1, 1], [], []>} : vector<1x320xf32>, vector<320x320xf32>, vector<1x320xf32> -> vector<1x320xf32>
    %cst_47 = arith.constant 0.001953125 : f32
    %44 = vector.broadcast %cst_47 : f32 to vector<1x320xf32>
    %45 = arith.mulf %43, %44 : vector<1x320xf32>
    %46 = vector.broadcast %45 : vector<1x320xf32> to vector<32x320xf32>
    %47 = arith.subf %39, %46 : vector<32x320xf32>
    %48 = arith.mulf %47, %47 : vector<32x320xf32>
    %cst_48 = arith.constant dense<0.000000e+00> : vector<320xf32>
    %49 = vector.multi_reduction <add>, %48, %cst_48 [0] : vector<32x320xf32> to vector<320xf32>
    %50 = vector.shape_cast %49 : vector<320xf32> to vector<1x320xf32>
    %c0_49 = arith.constant 0 : index
    %c0_50 = arith.constant 0 : index
    %51 = vector.load %arg3[%c0_49, %c0_50] : memref<320x320xf32, #tpu.memory_space<vmem>>, vector<320x320xf32>
    %cst_51 = arith.constant dense<0.000000e+00> : vector<1x320xf32>
    %52 = tpu.matmul %50, %51, %cst_51 {dimension_numbers = #tpu.dot_dimension_numbers<[1], [0], [0], [1], [0, 0, 1, 1], [], []>} : vector<1x320xf32>, vector<320x320xf32>, vector<1x320xf32> -> vector<1x320xf32>
    %cst_52 = arith.constant 0.001953125 : f32
    %53 = vector.broadcast %cst_52 : f32 to vector<1x320xf32>
    %54 = arith.mulf %52, %53 : vector<1x320xf32>
    %cst_53 = arith.constant 1.000000e-03 : f32
    %55 = vector.broadcast %cst_53 : f32 to vector<1x320xf32>
    %56 = arith.addf %54, %55 : vector<1x320xf32>
    %57 = math.rsqrt %56 : vector<1x320xf32>
    %58 = vector.broadcast %57 : vector<1x320xf32> to vector<32x320xf32>
    %59 = arith.mulf %47, %58 : vector<32x320xf32>
    %c0_54 = arith.constant 0 : index
    %c0_55 = arith.constant 0 : index
    %60 = vector.load %arg4[%c0_54, %c0_55] : memref<1x320xf32, #tpu.memory_space<vmem>>, vector<1x320xf32>
    %61 = vector.broadcast %60 : vector<1x320xf32> to vector<32x320xf32>
    %62 = arith.mulf %59, %61 : vector<32x320xf32>
    %c0_56 = arith.constant 0 : index
    %c0_57 = arith.constant 0 : index
    %63 = vector.load %arg5[%c0_56, %c0_57] : memref<1x320xf32, #tpu.memory_space<vmem>>, vector<1x320xf32>
    %64 = vector.broadcast %63 : vector<1x320xf32> to vector<32x320xf32>
    %65 = arith.addf %62, %64 : vector<32x320xf32>
    %cst_58 = arith.constant 0.000000e+00 : f32
    %66 = vector.broadcast %cst_58 : f32 to vector<32x320xf32>
    %67 = arith.cmpf oge, %65, %66 : vector<32x320xf32>
    %c0_59 = arith.constant 0 : index
    %c0_60 = arith.constant 0 : index
    %68 = vector.load %arg6[%c0_59, %c0_60] : memref<1x320xf32, #tpu.memory_space<vmem>>, vector<1x320xf32>
    %69 = vector.broadcast %68 : vector<1x320xf32> to vector<32x320xf32>
    %70 = arith.mulf %69, %65 : vector<32x320xf32>
    %71 = arith.select %67, %65, %70 : vector<32x320xi1>, vector<32x320xf32>
    %c0_61 = arith.constant 0 : index
    %c0_62 = arith.constant 0 : index
    %72 = vector.load %arg7[%c0_61, %c0_62] : memref<32x320xf32, #tpu.memory_space<vmem>>, vector<32x320xf32>
    tpu.vector_store %arg7[%c0_61, %c0_62], %71 {strides = array<i32>} : memref<32x320xf32, #tpu.memory_space<vmem>>, vector<32x320xf32>,
    return
  }
}

module attributes {stable_mosaic.version = 11 : i64} {
  func.func @kernel(%arg0: memref<32x320xf32, #tpu.memory_space<vmem>>, %arg1: memref<320x64xbf16, #tpu.memory_space<vmem>>, %arg2: memref<1152x320xbf16, #tpu.memory_space<vmem>>, %arg3: memref<320x320xf32, #tpu.memory_space<vmem>>, %arg4: memref<1x320xf32, #tpu.memory_space<vmem>>, %arg5: memref<1x320xf32, #tpu.memory_space<vmem>>, %arg6: memref<1x320xf32, #tpu.memory_space<vmem>>, %arg7: memref<32x320xf32, #tpu.memory_space<vmem>>, %arg8: memref<2x32x128xf32, #tpu.memory_space<vmem>>, %arg9: memref<32x1152xbf16, #tpu.memory_space<vmem>>) attributes {dimension_semantics = [], scalar_prefetch = 0 : i64, scratch_operands = 2 : i64, tpu.core_type = #tpu.core_type<tc>} {
    %c0 = arith.constant 0 : index
    %c0_0 = arith.constant 0 : index
    %0 = vector.load %arg0[%c0, %c0_0] : memref<32x320xf32, #tpu.memory_space<vmem>>, vector<32x320xf32>
    %1 = arith.truncf %0 : vector<32x320xf32> to vector<32x320xbf16>
    %c0_1 = arith.constant 0 : index
    %c0_2 = arith.constant 0 : index
    %2 = vector.load %arg1[%c0_1, %c0_2] : memref<320x64xbf16, #tpu.memory_space<vmem>>, vector<320x64xbf16>
    %cst = arith.constant dense<0.000000e+00> : vector<32x64xf32>
    %3 = tpu.matmul %1, %2, %cst {dimension_numbers = #tpu.dot_dimension_numbers<[1], [0], [0], [1], [0, 0, 1, 1], [], []>} : vector<32x320xbf16>, vector<320x64xbf16>, vector<32x64xf32> -> vector<32x64xf32>
    %cst_3 = arith.constant 0.000000e+00 : f32
    %4 = vector.broadcast %cst_3 : f32 to vector<2x32x128xf32>
    %c0_4 = arith.constant 0 : index
    %c0_5 = arith.constant 0 : index
    %c0_6 = arith.constant 0 : index
    %5 = vector.load %arg8[%c0_4, %c0_5, %c0_6] : memref<2x32x128xf32, #tpu.memory_space<vmem>>, vector<2x32x128xf32>
    tpu.vector_store %arg8[%c0_4, %c0_5, %c0_6], %4 {strides = array<i32>} : memref<2x32x128xf32, #tpu.memory_space<vmem>>, vector<2x32x128xf32>,
    %6 = vector.shape_cast %3 : vector<32x64xf32> to vector<2x16x64xf32>
    %c0_7 = arith.constant 0 : index
    %c8 = arith.constant 8 : index
    %c32 = arith.constant 32 : index
    %7 = vector.load %arg8[%c0_7, %c8, %c32] : memref<2x32x128xf32, #tpu.memory_space<vmem>>, vector<2x16x64xf32>
    tpu.vector_store %arg8[%c0_7, %c8, %c32], %6 {strides = array<i32>} : memref<2x32x128xf32, #tpu.memory_space<vmem>>, vector<2x16x64xf32>,
    %cst_8 = arith.constant 0.000000e+00 : f32
    %8 = vector.broadcast %cst_8 : f32 to vector<32x320xf32>
    %c0_9 = arith.constant 0 : index
    %c0_10 = arith.constant 0 : index
    %c0_11 = arith.constant 0 : index
    %9 = vector.load %arg8[%c0_9, %c0_10, %c0_11] : memref<2x32x128xf32, #tpu.memory_space<vmem>>, vector<2x16x128xf32>
    %10 = vector.shape_cast %9 : vector<2x16x128xf32> to vector<32x128xf32>
    %11 = arith.truncf %10 : vector<32x128xf32> to vector<32x128xbf16>
    %c0_12 = arith.constant 0 : index
    %c0_13 = arith.constant 0 : index
    %12 = vector.load %arg2[%c0_12, %c0_13] : memref<1152x320xbf16, #tpu.memory_space<vmem>>, vector<128x320xbf16>
    %cst_14 = arith.constant dense<0.000000e+00> : vector<32x320xf32>
    %13 = tpu.matmul %11, %12, %cst_14 {dimension_numbers = #tpu.dot_dimension_numbers<[1], [0], [0], [1], [0, 0, 1, 1], [], []>} : vector<32x128xbf16>, vector<128x320xbf16>, vector<32x320xf32> -> vector<32x320xf32>
    %14 = arith.addf %8, %13 : vector<32x320xf32>
    %c0_15 = arith.constant 0 : index
    %c4 = arith.constant 4 : index
    %c0_16 = arith.constant 0 : index
    %15 = vector.load %arg8[%c0_15, %c4, %c0_16] : memref<2x32x128xf32, #tpu.memory_space<vmem>>, vector<2x16x128xf32>
    %16 = vector.shape_cast %15 : vector<2x16x128xf32> to vector<32x128xf32>
    %17 = arith.truncf %16 : vector<32x128xf32> to vector<32x128xbf16>
    %c128 = arith.constant 128 : index
    %c0_17 = arith.constant 0 : index
    %18 = vector.load %arg2[%c128, %c0_17] : memref<1152x320xbf16, #tpu.memory_space<vmem>>, vector<128x320xbf16>
    %cst_18 = arith.constant dense<0.000000e+00> : vector<32x320xf32>
    %19 = tpu.matmul %17, %18, %cst_18 {dimension_numbers = #tpu.dot_dimension_numbers<[1], [0], [0], [1], [0, 0, 1, 1], [], []>} : vector<32x128xbf16>, vector<128x320xbf16>, vector<32x320xf32> -> vector<32x320xf32>
    %20 = arith.addf %14, %19 : vector<32x320xf32>
    %c0_19 = arith.constant 0 : index
    %c6 = arith.constant 6 : index
    %c0_20 = arith.constant 0 : index
    %21 = vector.load %arg8[%c0_19, %c6, %c0_20] : memref<2x32x128xf32, #tpu.memory_space<vmem>>, vector<2x16x128xf32>
    %22 = vector.shape_cast %21 : vector<2x16x128xf32> to vector<32x128xf32>
    %23 = arith.truncf %22 : vector<32x128xf32> to vector<32x128xbf16>
    %c256 = arith.constant 256 : index
    %c0_21 = arith.constant 0 : index
    %24 = vector.load %arg2[%c256, %c0_21] : memref<1152x320xbf16, #tpu.memory_space<vmem>>, vector<128x320xbf16>
    %cst_22 = arith.constant dense<0.000000e+00> : vector<32x320xf32>
    %25 = tpu.matmul %23, %24, %cst_22 {dimension_numbers = #tpu.dot_dimension_numbers<[1], [0], [0], [1], [0, 0, 1, 1], [], []>} : vector<32x128xbf16>, vector<128x320xbf16>, vector<32x320xf32> -> vector<32x320xf32>
    %26 = arith.addf %20, %25 : vector<32x320xf32>
    %c0_23 = arith.constant 0 : index
    %c7 = arith.constant 7 : index
    %c0_24 = arith.constant 0 : index
    %27 = vector.load %arg8[%c0_23, %c7, %c0_24] : memref<2x32x128xf32, #tpu.memory_space<vmem>>, vector<2x16x128xf32>
    %28 = vector.shape_cast %27 : vector<2x16x128xf32> to vector<32x128xf32>
    %29 = arith.truncf %28 : vector<32x128xf32> to vector<32x128xbf16>
    %c384 = arith.constant 384 : index
    %c0_25 = arith.constant 0 : index
    %30 = vector.load %arg2[%c384, %c0_25] : memref<1152x320xbf16, #tpu.memory_space<vmem>>, vector<128x320xbf16>
    %cst_26 = arith.constant dense<0.000000e+00> : vector<32x320xf32>
    %31 = tpu.matmul %29, %30, %cst_26 {dimension_numbers = #tpu.dot_dimension_numbers<[1], [0], [0], [1], [0, 0, 1, 1], [], []>} : vector<32x128xbf16>, vector<128x320xbf16>, vector<32x320xf32> -> vector<32x320xf32>
    %32 = arith.addf %26, %31 : vector<32x320xf32>
    %c0_27 = arith.constant 0 : index
    %c8_28 = arith.constant 8 : index
    %c0_29 = arith.constant 0 : index
    %33 = vector.load %arg8[%c0_27, %c8_28, %c0_29] : memref<2x32x128xf32, #tpu.memory_space<vmem>>, vector<2x16x128xf32>
    %34 = vector.shape_cast %33 : vector<2x16x128xf32> to vector<32x128xf32>
    %35 = arith.truncf %34 : vector<32x128xf32> to vector<32x128xbf16>
    %c512 = arith.constant 512 : index
    %c0_30 = arith.constant 0 : index
    %36 = vector.load %arg2[%c512, %c0_30] : memref<1152x320xbf16, #tpu.memory_space<vmem>>, vector<128x320xbf16>
    %cst_31 = arith.constant dense<0.000000e+00> : vector<32x320xf32>
    %37 = tpu.matmul %35, %36, %cst_31 {dimension_numbers = #tpu.dot_dimension_numbers<[1], [0], [0], [1], [0, 0, 1, 1], [], []>} : vector<32x128xbf16>, vector<128x320xbf16>, vector<32x320xf32> -> vector<32x320xf32>
    %38 = arith.addf %32, %37 : vector<32x320xf32>
    %c0_32 = arith.constant 0 : index
    %c9 = arith.constant 9 : index
    %c0_33 = arith.constant 0 : index
    %39 = vector.load %arg8[%c0_32, %c9, %c0_33] : memref<2x32x128xf32, #tpu.memory_space<vmem>>, vector<2x16x128xf32>
    %40 = vector.shape_cast %39 : vector<2x16x128xf32> to vector<32x128xf32>
    %41 = arith.truncf %40 : vector<32x128xf32> to vector<32x128xbf16>
    %c640 = arith.constant 640 : index
    %c0_34 = arith.constant 0 : index
    %42 = vector.load %arg2[%c640, %c0_34] : memref<1152x320xbf16, #tpu.memory_space<vmem>>, vector<128x320xbf16>
    %cst_35 = arith.constant dense<0.000000e+00> : vector<32x320xf32>
    %43 = tpu.matmul %41, %42, %cst_35 {dimension_numbers = #tpu.dot_dimension_numbers<[1], [0], [0], [1], [0, 0, 1, 1], [], []>} : vector<32x128xbf16>, vector<128x320xbf16>, vector<32x320xf32> -> vector<32x320xf32>
    %44 = arith.addf %38, %43 : vector<32x320xf32>
    %c0_36 = arith.constant 0 : index
    %c10 = arith.constant 10 : index
    %c0_37 = arith.constant 0 : index
    %45 = vector.load %arg8[%c0_36, %c10, %c0_37] : memref<2x32x128xf32, #tpu.memory_space<vmem>>, vector<2x16x128xf32>
    %46 = vector.shape_cast %45 : vector<2x16x128xf32> to vector<32x128xf32>
    %47 = arith.truncf %46 : vector<32x128xf32> to vector<32x128xbf16>
    %c768 = arith.constant 768 : index
    %c0_38 = arith.constant 0 : index
    %48 = vector.load %arg2[%c768, %c0_38] : memref<1152x320xbf16, #tpu.memory_space<vmem>>, vector<128x320xbf16>
    %cst_39 = arith.constant dense<0.000000e+00> : vector<32x320xf32>
    %49 = tpu.matmul %47, %48, %cst_39 {dimension_numbers = #tpu.dot_dimension_numbers<[1], [0], [0], [1], [0, 0, 1, 1], [], []>} : vector<32x128xbf16>, vector<128x320xbf16>, vector<32x320xf32> -> vector<32x320xf32>
    %50 = arith.addf %44, %49 : vector<32x320xf32>
    %c0_40 = arith.constant 0 : index
    %c12 = arith.constant 12 : index
    %c0_41 = arith.constant 0 : index
    %51 = vector.load %arg8[%c0_40, %c12, %c0_41] : memref<2x32x128xf32, #tpu.memory_space<vmem>>, vector<2x16x128xf32>
    %52 = vector.shape_cast %51 : vector<2x16x128xf32> to vector<32x128xf32>
    %53 = arith.truncf %52 : vector<32x128xf32> to vector<32x128xbf16>
    %c896 = arith.constant 896 : index
    %c0_42 = arith.constant 0 : index
    %54 = vector.load %arg2[%c896, %c0_42] : memref<1152x320xbf16, #tpu.memory_space<vmem>>, vector<128x320xbf16>
    %cst_43 = arith.constant dense<0.000000e+00> : vector<32x320xf32>
    %55 = tpu.matmul %53, %54, %cst_43 {dimension_numbers = #tpu.dot_dimension_numbers<[1], [0], [0], [1], [0, 0, 1, 1], [], []>} : vector<32x128xbf16>, vector<128x320xbf16>, vector<32x320xf32> -> vector<32x320xf32>
    %56 = arith.addf %50, %55 : vector<32x320xf32>
    %c0_44 = arith.constant 0 : index
    %c16 = arith.constant 16 : index
    %c0_45 = arith.constant 0 : index
    %57 = vector.load %arg8[%c0_44, %c16, %c0_45] : memref<2x32x128xf32, #tpu.memory_space<vmem>>, vector<2x16x128xf32>
    %58 = vector.shape_cast %57 : vector<2x16x128xf32> to vector<32x128xf32>
    %59 = arith.truncf %58 : vector<32x128xf32> to vector<32x128xbf16>
    %c1024 = arith.constant 1024 : index
    %c0_46 = arith.constant 0 : index
    %60 = vector.load %arg2[%c1024, %c0_46] : memref<1152x320xbf16, #tpu.memory_space<vmem>>, vector<128x320xbf16>
    %cst_47 = arith.constant dense<0.000000e+00> : vector<32x320xf32>
    %61 = tpu.matmul %59, %60, %cst_47 {dimension_numbers = #tpu.dot_dimension_numbers<[1], [0], [0], [1], [0, 0, 1, 1], [], []>} : vector<32x128xbf16>, vector<128x320xbf16>, vector<32x320xf32> -> vector<32x320xf32>
    %62 = arith.addf %56, %61 : vector<32x320xf32>
    %63 = arith.addf %0, %62 : vector<32x320xf32>
    %cst_48 = arith.constant dense<0.000000e+00> : vector<320xf32>
    %64 = vector.multi_reduction <add>, %63, %cst_48 [0] : vector<32x320xf32> to vector<320xf32>
    %65 = vector.shape_cast %64 : vector<320xf32> to vector<1x320xf32>
    %c0_49 = arith.constant 0 : index
    %c0_50 = arith.constant 0 : index
    %66 = vector.load %arg3[%c0_49, %c0_50] : memref<320x320xf32, #tpu.memory_space<vmem>>, vector<320x320xf32>
    %cst_51 = arith.constant dense<0.000000e+00> : vector<1x320xf32>
    %67 = tpu.matmul %65, %66, %cst_51 {dimension_numbers = #tpu.dot_dimension_numbers<[1], [0], [0], [1], [0, 0, 1, 1], [], []>} : vector<1x320xf32>, vector<320x320xf32>, vector<1x320xf32> -> vector<1x320xf32>
    %cst_52 = arith.constant 0.001953125 : f32
    %68 = vector.broadcast %cst_52 : f32 to vector<1x320xf32>
    %69 = arith.mulf %67, %68 : vector<1x320xf32>
    %70 = vector.broadcast %69 : vector<1x320xf32> to vector<32x320xf32>
    %71 = arith.subf %63, %70 : vector<32x320xf32>
    %72 = arith.mulf %71, %71 : vector<32x320xf32>
    %cst_53 = arith.constant dense<0.000000e+00> : vector<320xf32>
    %73 = vector.multi_reduction <add>, %72, %cst_53 [0] : vector<32x320xf32> to vector<320xf32>
    %74 = vector.shape_cast %73 : vector<320xf32> to vector<1x320xf32>
    %c0_54 = arith.constant 0 : index
    %c0_55 = arith.constant 0 : index
    %75 = vector.load %arg3[%c0_54, %c0_55] : memref<320x320xf32, #tpu.memory_space<vmem>>, vector<320x320xf32>
    %cst_56 = arith.constant dense<0.000000e+00> : vector<1x320xf32>
    %76 = tpu.matmul %74, %75, %cst_56 {dimension_numbers = #tpu.dot_dimension_numbers<[1], [0], [0], [1], [0, 0, 1, 1], [], []>} : vector<1x320xf32>, vector<320x320xf32>, vector<1x320xf32> -> vector<1x320xf32>
    %cst_57 = arith.constant 0.001953125 : f32
    %77 = vector.broadcast %cst_57 : f32 to vector<1x320xf32>
    %78 = arith.mulf %76, %77 : vector<1x320xf32>
    %cst_58 = arith.constant 1.000000e-03 : f32
    %79 = vector.broadcast %cst_58 : f32 to vector<1x320xf32>
    %80 = arith.addf %78, %79 : vector<1x320xf32>
    %81 = math.rsqrt %80 : vector<1x320xf32>
    %82 = vector.broadcast %81 : vector<1x320xf32> to vector<32x320xf32>
    %83 = arith.mulf %71, %82 : vector<32x320xf32>
    %c0_59 = arith.constant 0 : index
    %c0_60 = arith.constant 0 : index
    %84 = vector.load %arg4[%c0_59, %c0_60] : memref<1x320xf32, #tpu.memory_space<vmem>>, vector<1x320xf32>
    %85 = vector.broadcast %84 : vector<1x320xf32> to vector<32x320xf32>
    %86 = arith.mulf %83, %85 : vector<32x320xf32>
    %c0_61 = arith.constant 0 : index
    %c0_62 = arith.constant 0 : index
    %87 = vector.load %arg5[%c0_61, %c0_62] : memref<1x320xf32, #tpu.memory_space<vmem>>, vector<1x320xf32>
    %88 = vector.broadcast %87 : vector<1x320xf32> to vector<32x320xf32>
    %89 = arith.addf %86, %88 : vector<32x320xf32>
    %cst_63 = arith.constant 0.000000e+00 : f32
    %90 = vector.broadcast %cst_63 : f32 to vector<32x320xf32>
    %91 = arith.cmpf oge, %89, %90 : vector<32x320xf32>
    %c0_64 = arith.constant 0 : index
    %c0_65 = arith.constant 0 : index
    %92 = vector.load %arg6[%c0_64, %c0_65] : memref<1x320xf32, #tpu.memory_space<vmem>>, vector<1x320xf32>
    %93 = vector.broadcast %92 : vector<1x320xf32> to vector<32x320xf32>
    %94 = arith.mulf %93, %89 : vector<32x320xf32>
    %95 = arith.select %91, %89, %94 : vector<32x320xi1>, vector<32x320xf32>
    %c0_66 = arith.constant 0 : index
    %c0_67 = arith.constant 0 : index
    %96 = vector.load %arg7[%c0_66, %c0_67] : memref<32x320xf32, #tpu.memory_space<vmem>>, vector<32x320xf32>
    tpu.vector_store %arg7[%c0_66, %c0_67], %95 {strides = array<i32>} : memref<32x320xf32, #tpu.memory_space<vmem>>, vector<32x320xf32>,
    return
  }
}

</mosaic_0001>

<bundles_post_ra>
// kernel: tpu_custom_call.1
= control target key start
LH: loop header
LB: loop body
LE: loop exit
PB: predicated region body
PF: predicated region fallthrough
CT: control target
= control target key end

     0   :  { %vm206_vm0 = vcmask 523264   ;;  %s6227_s0 = inlined_call_operand.vmem [shape: f32[32,320], index: 0, kind: input, shape index: {}]   ;;  %s6228_s1 = inlined_call_operand.vmem [shape: bf16[320,64], index: 1, kind: input, shape index: {}]   ;;  %s6229_s2 = inlined_call_operand.vmem [shape: bf16[1152,320], index: 2, kind: input, shape index: {}]   ;;  %s6230_s3 = inlined_call_operand.vmem [shape: f32[320,320], index: 3, kind: input, shape index: {}]   ;;  %s6231_s4 = inlined_call_operand.vmem [shape: f32[1,320], index: 4, kind: input, shape index: {}]   ;;  %s6232_s5 = inlined_call_operand.vmem [shape: f32[1,320], index: 5, kind: input, shape index: {}]   ;;  %s6233_s6 = inlined_call_operand.vmem [shape: f32[1,320], index: 6, kind: input, shape index: {}]   ;;  %s6234_s7 = inlined_call_operand.hbm [shape: f32[32,320], index: 7, kind: output, shape index: {}]  }
   0x1   :  { %v4313_v0 = vld [vmem:[%s6228_s1 + $0x40] sm:$0xff]   ;;  %v4315_v2 = vld [vmem:[%s6228_s1 + $0x48] sm:$0xff]   ;;  %v4317_v4 = vld [vmem:[%s6228_s1 + $0x50] sm:$0xff]  }
   0x2   :  { %v4314_v1 = vld [vmem:[%s6228_s1] sm:$0xff]   ;;  %3707 = vmatprep.subr.bf16.mxu0 %v4313_v0  ;;  %v4316_v3 = vld [vmem:[%s6228_s1 + $0x8] sm:$0xff]   ;;  %v4318_v5 = vld [vmem:[%s6228_s1 + $0x10] sm:$0xff]  }
   0x3   :  { %3708 = vmatpush3.bf16.msra.mxu0 %v4314_v1  ;;  %v4319_v6 = vld [vmem:[%s6228_s1 + $0x58] sm:$0xff]   ;;  %v4321_v7 = vld [vmem:[%s6228_s1 + $0x80] sm:$0xff]   ;;  %v4324_v9 = vld [vmem:[%s6228_s1 + $0x88] sm:$0xff]  }
   0x4   :  { %3709 = vmatprep.subr.bf16.mxu0 %v4315_v2  ;;  %v4320_v8 = vld [vmem:[%s6228_s1 + $0x18] sm:$0xff]   ;;  %3951 = vmatprep.subr.bf16.mxu1 %v4321_v7  ;;  %v4322_v10 = vld [vmem:[%s6228_s1 + $0x60] sm:$0xff]   ;;  %v4327_v11 = vld [vmem:[%s6228_s1 + $0x90] sm:$0xff]  }
   0x5   :  { %3952 = vmatpush3.bf16.msra.mxu1 %v4321_v7  ;;  %v4323_v12 = vld [vmem:[%s6228_s1 + $0x20] sm:$0xff]   ;;  %v4325_v13 = vld [vmem:[%s6228_s1 + $0x68] sm:$0xff]   ;;  %v4330_v14 = vld [vmem:[%s6228_s1 + $0x98] sm:$0xff]  }
   0x6   :  { %3953 = vmatprep.subr.bf16.mxu1 %v4324_v9  ;;  %v4326_v15 = vld [vmem:[%s6228_s1 + $0x28] sm:$0xff]   ;;  %v4328_v16 = vld [vmem:[%s6228_s1 + $0x70] sm:$0xff]   ;;  %v32_v21 = vld [vmem:[%s6227_s0 + $0x20] sm:$0xff] }
   0x7   :  { %3710 = vmatpush3.bf16.msra.mxu0 %v4316_v3  ;;  %v30_v17 = vld [vmem:[%s6227_s0 + $0x10] sm:$0xff]  ;;  %v33_v18 = vld [vmem:[%s6227_s0 + $0x28] sm:$0xff]  ;;  %v36_v22 = vld [vmem:[%s6227_s0 + $0x40] sm:$0xff] }
   0x8   :  { %3711 = vmatprep.subr.bf16.mxu0 %v4317_v4  ;;  %v29_v19 = vld [vmem:[%s6227_s0 + $0x8] sm:$0xff]  ;;  %v42_v20 = vpack.c.bf16 %v33_v18, %v30_v17  ;;  %v39_v23 = vld [vmem:[%s6227_s0 + $0x58] sm:$0xff]  ;;  %v4329_v26 = vld [vmem:[%s6228_s1 + $0x30] sm:$0xff]  }
   0x9   :  { %3954 = vmatpush3.bf16.msra.mxu1 %v4324_v9  ;;  %v41_v24 = vpack.c.bf16 %v32_v21, %v29_v19  ;;  %v45_v25 = vpack.c.bf16 %v39_v23, %v36_v22  ;;  %v4331_v27 = vld [vmem:[%s6228_s1 + $0x78] sm:$0xff]   ;;  %v28_v29 = vld [vmem:[%s6227_s0] sm:$0xff]  ;;  %v38_v32 = vld [vmem:[%s6227_s0 + $0x50] sm:$0xff] }
   0xa   :  { %3955 = vmatprep.subr.bf16.mxu1 %v4327_v11  ;;  %3959 = vmatprep.mubr.msk.bf16.mxu1 %vm206_vm0, %v42_v20  ;;  %v4332_v28 = vld [vmem:[%s6228_s1 + $0x38] sm:$0xff]   ;;  %v34_v35 = vld [vmem:[%s6227_s0 + $0x30] sm:$0xff]  ;;  %v37_v36 = vld [vmem:[%s6227_s0 + $0x48] sm:$0xff] }
   0xb   :  { %3712 = vmatpush3.bf16.msra.mxu0 %v4318_v5  ;;  %245 = vmatprep.mubr.bf16.mxu0 %v41_v24  ;;  %v31_v30 = vld [vmem:[%s6227_s0 + $0x18] sm:$0xff]  ;;  %v43_v37 = vpack.c.bf16 %v37_v36, %v34_v35 }
   0xc   :  { %3713 = vmatprep.subr.bf16.mxu0 %v4319_v6  ;;  %v35_v31 = vld [vmem:[%s6227_s0 + $0x38] sm:$0xff]  ;;  %v40_v33 = vpack.c.bf16 %v31_v30, %v28_v29 }
   0xd   :  { %3956 = vmatpush3.bf16.msra.mxu1 %v4327_v11  ;;  %v44_v34 = vpack.c.bf16 %v38_v32, %v35_v31 }
   0xe   :  { %3957 = vmatprep.subr.bf16.mxu1 %v4330_v14 }
   0xf   :  { %3714 = vmatpush3.bf16.msra.mxu0 %v4320_v8 }
  0x10   :  { %3715 = vmatprep.subr.bf16.mxu0 %v4322_v10 }
  0x11   :  { %3958 = vmatpush3.bf16.msra.mxu1 %v4330_v14 }
  0x13   :  { %3716 = vmatpush3.bf16.msra.mxu0 %v4323_v12 }
  0x14   :  { %3717 = vmatprep.subr.bf16.mxu0 %v4325_v13  ;;  %3960 = vmatmul.mubr.msk.bf16.vlgmr.msra.gmra.mrb[0].mxu1 %vm206_vm0, %v45_v25 }
  0x17   :  { %3718 = vmatpush3.bf16.msra.mxu0 %v4326_v15 }
  0x18   :  { %3719 = vmatprep.subr.bf16.mxu0 %v4328_v16 }
  0x1b   :  { %3720 = vmatpush3.bf16.msra.mxu0 %v4329_v26 }
  0x1c   :  { %3721 = vmatprep.subr.bf16.mxu0 %v4331_v27 }
  0x1f   :  { %3722 = vmatpush3.bf16.msra.mxu0 %v4332_v28 }
  0x22   :  { %246 = vmatmul.mubr.bf16.vlgmr.msra.gmra.mrb[0].mxu0 %v40_v33 }
  0x23   :  { %253 = vmatprep.mubr.bf16.mxu0 %v44_v34 }
  0x2a   :  { %254 = vmatmul.mubr.bf16.gmra.mrb[4].mxu0 %v43_v37 }
  0x2b   :  { %12 = vsyncpa [#allocation5], 0  ;;  %v4333_v38 = vld [vmem:[%s6229_s2] ss:$12 sps:$4 sm:$0xff]   ;;  %v4335_v39 = vld [vmem:[%s6229_s2 + $0x4] ss:$12 sps:$4 sm:$0xff]  }
  0x2c   :  { %v4338_v40 = vld [vmem:[%s6229_s2 + $0x1c] ss:$12 sps:$4 sm:$0xff]   ;;  %1980 = vmatprep.subr.bf16.mxu1 %v4335_v39  ;;  %v4336_v41 = vld [vmem:[%s6229_s2 + $0x18] ss:$12 sps:$4 sm:$0xff]   ;;  %v4341_v42 = vld [vmem:[%s6229_s2 + $0x34] ss:$12 sps:$4 sm:$0xff]  }
  0x2d   :  { %1981 = vmatpush1.bf16.msra.mxu1 %v4333_v38  ;;  %v4360_v43 = vld [vmem:[%s6229_s2 + $0xc8] ss:$12 sps:$4 sm:$0xff]   ;;  %v4339_v45 = vld [vmem:[%s6229_s2 + $0x30] ss:$12 sps:$4 sm:$0xff]   ;;  %v4365_v46 = vld [vmem:[%s6229_s2 + $0xe0] ss:$12 sps:$4 sm:$0xff]  }
  0x2e   :  { %1982 = vmatprep.subr.bf16.mxu1 %v4338_v40  ;;  %v4361_v44 = vld [vmem:[%s6229_s2 + $0x8] ss:$12 sps:$4 sm:$0xff]   ;;  %v4344_v47 = vld [vmem:[%s6229_s2 + $0x4c] ss:$12 sps:$4 sm:$0xff]   ;;  %3741 = vmatprep.subr.bf16.mxu0 %v4360_v43  ;;  %v4347_v51 = vld [vmem:[%s6229_s2 + $0x64] ss:$12 sps:$4 sm:$0xff]  }
  0x2f   :  { %3742 = vmatpush3.bf16.msra.mxu0 %v4361_v44  ;;  %v4366_v48 = vld [vmem:[%s6229_s2 + $0x20] ss:$12 sps:$4 sm:$0xff]   ;;  %v4370_v49 = vld [vmem:[%s6229_s2 + $0xf8] ss:$12 sps:$4 sm:$0xff]   ;;  %v4342_v50 = vld [vmem:[%s6229_s2 + $0x48] ss:$12 sps:$4 sm:$0xff]  }
  0x30   :  { %3743 = vmatprep.subr.bf16.mxu0 %v4365_v46  ;;  %v4371_v52 = vld [vmem:[%s6229_s2 + $0x38] ss:$12 sps:$4 sm:$0xff]   ;;  %v4375_v53 = vld [vmem:[%s6229_s2 + $0x110] ss:$12 sps:$4 sm:$0xff]   ;;  %v4663_v54 = vmov 0   ;;  %s4664_s22 = smov 32  }
  0x31   :  { %1983 = vmatpush1.bf16.msra.mxu1 %v4336_v41  ;;  %311 = vst [vmem:[#allocation2] sm:$0xff] %v4663_v54  ;;  %312 = vst [vmem:[#allocation2 + $0x8] sm:$0xff] %v4663_v54  ;;  %v4345_v55 = vld [vmem:[%s6229_s2 + $0x60] ss:$12 sps:$4 sm:$0xff]   ;;  %v4350_v56 = vld [vmem:[%s6229_s2 + $0x7c] ss:$12 sps:$4 sm:$0xff]  }
  0x32   :  { %1984 = vmatprep.subr.bf16.mxu1 %v4341_v42  ;;  %313 = vst [vmem:[#allocation2 + $0x10] sm:$0xff] %v4663_v54  ;;  %314 = vst [vmem:[#allocation2 + $0x18] sm:$0xff] %v4663_v54  ;;  %v4376_v57 = vld [vmem:[%s6229_s2 + $0x50] ss:$12 sps:$4 sm:$0xff]   ;;  %v4380_v58 = vld [vmem:[%s6229_s2 + $0x128] ss:$12 sps:$4 sm:$0xff]  }
  0x33   :  { %3744 = vmatpush3.bf16.msra.mxu0 %v4366_v48  ;;  %v4348_v59 = vld [vmem:[%s6229_s2 + $0x78] ss:$12 sps:$4 sm:$0xff]   ;;  %v4353_v60 = vld [vmem:[%s6229_s2 + $0x94] ss:$12 sps:$4 sm:$0xff]   ;;  %v4351_v63 = vld [vmem:[%s6229_s2 + $0x90] ss:$12 sps:$4 sm:$0xff]  }
  0x34   :  { %3745 = vmatprep.subr.bf16.mxu0 %v4370_v49  ;;  %v4381_v61 = vld [vmem:[%s6229_s2 + $0x68] ss:$12 sps:$4 sm:$0xff]   ;;  %v4385_v62 = vld [vmem:[%s6229_s2 + $0x140] ss:$12 sps:$4 sm:$0xff]   ;;  %v4359_v2 = vld [vmem:[%s6229_s2 + $0xc4] ss:$12 sps:$4 sm:$0xff]  }
  0x35   :  { %1985 = vmatpush1.bf16.msra.mxu1 %v4339_v45  ;;  %v4356_v0 = vld [vmem:[%s6229_s2 + $0xac] ss:$12 sps:$4 sm:$0xff]   ;;  %v4354_v1 = vld [vmem:[%s6229_s2 + $0xa8] ss:$12 sps:$4 sm:$0xff]   ;;  %v4367_v7 = vld [vmem:[%s6229_s2 + $0xf0] ss:$12 sps:$4 sm:$0xff]  }
  0x36   :  { %1986 = vmatprep.subr.bf16.mxu1 %v4344_v47  ;;  %v4357_v3 = vld [vmem:[%s6229_s2 + $0xc0] ss:$12 sps:$4 sm:$0xff]   ;;  %v4364_v4 = vld [vmem:[%s6229_s2 + $0xdc] ss:$12 sps:$4 sm:$0xff]   ;;  %v4362_v5 = vld [vmem:[%s6229_s2 + $0xd8] ss:$12 sps:$4 sm:$0xff]  }
  0x37   :  { %3746 = vmatpush3.bf16.msra.mxu0 %v4371_v52  ;;  %v4369_v6 = vld [vmem:[%s6229_s2 + $0xf4] ss:$12 sps:$4 sm:$0xff]   ;;  %v4374_v8 = vld [vmem:[%s6229_s2 + $0x10c] ss:$12 sps:$4 sm:$0xff]   ;;  %v4379_v10 = vld [vmem:[%s6229_s2 + $0x124] ss:$12 sps:$4 sm:$0xff]  }
  0x38   :  { %3747 = vmatprep.subr.bf16.mxu0 %v4375_v53  ;;  %v4372_v9 = vld [vmem:[%s6229_s2 + $0x108] ss:$12 sps:$4 sm:$0xff]   ;;  %v4377_v11 = vld [vmem:[%s6229_s2 + $0x120] ss:$12 sps:$4 sm:$0xff]   ;;  %v4382_v13 = vld [vmem:[%s6229_s2 + $0x138] ss:$12 sps:$4 sm:$0xff]  }
  0x39   :  { %1987 = vmatpush1.bf16.msra.mxu1 %v4342_v50  ;;  %v4384_v12 = vld [vmem:[%s6229_s2 + $0x13c] ss:$12 sps:$4 sm:$0xff]   ;;  %v4386_v18 = vld [vmem:[%s6229_s2 + $0x80] ss:$12 sps:$4 sm:$0xff]   ;;  %v4390_v21 = vld [vmem:[%s6229_s2 + $0x158] ss:$12 sps:$4 sm:$0xff]  }
  0x3a   :  { %1988 = vmatprep.subr.bf16.mxu1 %v4347_v51  ;;  %v4387_v19 = vld [vmem:[%s6229_s2 + $0x150] ss:$12 sps:$4 sm:$0xff]   ;;  %v4389_v20 = vld [vmem:[%s6229_s2 + $0x154] ss:$12 sps:$4 sm:$0xff]   ;;  %v4391_v23 = vld [vmem:[%s6229_s2 + $0x98] ss:$12 sps:$4 sm:$0xff]  }
  0x3b   :  { %3748 = vmatpush3.bf16.msra.mxu0 %v4376_v57  ;;  %v4394_v25 = vld [vmem:[%s6229_s2 + $0x16c] ss:$12 sps:$4 sm:$0xff]   ;;  %v4395_v26 = vld [vmem:[%s6229_s2 + $0x170] ss:$12 sps:$4 sm:$0xff]   ;;  %v4392_v29 = vld [vmem:[%s6229_s2 + $0x168] ss:$12 sps:$4 sm:$0xff]  }
  0x3c   :  { %3749 = vmatprep.subr.bf16.mxu0 %v4380_v58  ;;  %v4396_v33 = vld [vmem:[%s6229_s2 + $0xb0] ss:$12 sps:$4 sm:$0xff]   ;;  %v4400_v38 = vld [vmem:[%s6229_s2 + $0x248] ss:$12 sps:$4 sm:$0xff]   ;;  %vm327_vm1 = vcmask 785668   ;;  %vm329_vm2 = vcmask 781568  }
  0x3d   :  { %1989 = vmatpush1.bf16.msra.mxu1 %v4345_v55  ;;  %v4399_v37 = vld [vmem:[%s6229_s2 + $0x184] ss:$12 sps:$4 sm:$0xff]   ;;  %vm345_vm3 = vcmask 1045504   ;;  %v4397_v53 = vld [vmem:[%s6229_s2 + $0x180] ss:$12 sps:$4 sm:$0xff]   ;;  %vm364_vm5 = vcmask 1044480  }
  0x3e   :  { %1990 = vmatprep.subr.bf16.mxu1 %v4350_v56  ;;  %vm379_vm4 = vsmask.f32 4352  ;;  %vm441_vm6 = vsmask.f32 3328  ;;  %vm426_vm7 = vcmask 1043456   ;;  %vm507_vm8 = vcmask 1041408  }
  0x3f   :  { %3750 = vmatpush3.bf16.msra.mxu0 %v4381_v61  ;;  %vm488_vm9 = vcmask 1042432   ;;  %vm4667_vm10 = vmmov 0  }
  0x40   :  { %3751 = vmatprep.subr.bf16.mxu0 %v4385_v62 }
  0x41   :  { %1991 = vmatpush1.bf16.msra.mxu1 %v4348_v59  ;;  %v4401_v59 = vld [vmem:[%s6229_s2 + $0x188] ss:$12 sps:$4 sm:$0xff]  }
  0x42   :  { %1992 = vmatprep.subr.bf16.mxu1 %v4353_v60 }
  0x43   :  { %3752 = vmatpush3.bf16.msra.mxu0 %v4386_v18 }
  0x44   :  { %3753 = vmatprep.subr.bf16.mxu0 %v4390_v21 }
  0x45   :  { %1993 = vmatpush1.bf16.msra.mxu1 %v4351_v63 }
  0x46   :  { %1994 = vmatprep.subr.bf16.mxu1 %v4356_v0 }
  0x47   :  { %3754 = vmatpush3.bf16.msra.mxu0 %v4391_v23  ;;  %v4415_v23 = vld [vmem:[%s6229_s2 + $0x290] ss:$12 sps:$4 sm:$0xff]  }
  0x48   :  { %3755 = vmatprep.subr.bf16.mxu0 %v4395_v26  ;;  %v4416_v26 = vld [vmem:[%s6229_s2 + $0x1d0] ss:$12 sps:$4 sm:$0xff]  }
  0x49   :  { %1995 = vmatpush1.bf16.msra.mxu1 %v4354_v1  ;;  %v4404_v1 = vld [vmem:[%s6229_s2 + $0x19c] ss:$12 sps:$4 sm:$0xff]  }
  0x4a   :  { %1996 = vmatprep.subr.bf16.mxu1 %v4359_v2  ;;  %v4405_v2 = vld [vmem:[%s6229_s2 + $0x260] ss:$12 sps:$4 sm:$0xff]  }
  0x4b   :  { %3756 = vmatpush3.bf16.msra.mxu0 %v4396_v33  ;;  %v4422_v33 = vld [vmem:[%s6229_s2 + $0x1f8] ss:$12 sps:$4 sm:$0xff]  }
  0x4c   :  { %3769 = vmatprep.subr.bf16.mxu0 %v4400_v38  ;;  %v4430_v38 = vld [vmem:[%s6229_s2 + $0x2d8] ss:$12 sps:$4 sm:$0xff]  }
  0x4d   :  { %1997 = vmatpush1.bf16.msra.mxu1 %v4357_v3 }
  0x4e   :  { %1998 = vmatprep.subr.bf16.mxu1 %v4364_v4  ;;  %v4402_v4 = vld [vmem:[%s6229_s2 + $0x198] ss:$12 sps:$4 sm:$0xff]  }
  0x51   :  { %1999 = vmatpush1.bf16.msra.mxu1 %v4362_v5  ;;  %v4406_v5 = vld [vmem:[%s6229_s2 + $0x1a0] ss:$12 sps:$4 sm:$0xff]  }
  0x52   :  { %2000 = vmatprep.subr.bf16.mxu1 %v4369_v6 }
  0x55   :  { %2001 = vmatpush1.bf16.msra.mxu1 %v4367_v7 }
  0x56   :  { %2002 = vmatprep.subr.bf16.mxu1 %v4374_v8 }
  0x59   :  { %2003 = vmatpush1.bf16.msra.mxu1 %v4372_v9 }
  0x5a   :  { %2004 = vmatprep.subr.bf16.mxu1 %v4379_v10  ;;  %v4409_v10 = vld [vmem:[%s6229_s2 + $0x1b4] ss:$12 sps:$4 sm:$0xff]  }
  0x5d   :  { %2005 = vmatpush1.bf16.msra.mxu1 %v4377_v11  ;;  %v4410_v11 = vld [vmem:[%s6229_s2 + $0x278] ss:$12 sps:$4 sm:$0xff]  }
  0x5e   :  { %2006 = vmatprep.subr.bf16.mxu1 %v4384_v12 }
  0x61   :  { %2007 = vmatpush1.bf16.msra.mxu1 %v4382_v13 }
  0x62   :  { %2008 = vmatprep.subr.bf16.mxu1 %v4389_v20 }
  0x65   :  { %2009 = vmatpush1.bf16.msra.mxu1 %v4387_v19 }
  0x66   :  { %2010 = vmatprep.subr.bf16.mxu1 %v4394_v25  ;;  %v4412_v25 = vld [vmem:[%s6229_s2 + $0x1c8] ss:$12 sps:$4 sm:$0xff]  }
  0x69   :  { %2011 = vmatpush1.bf16.msra.mxu1 %v4392_v29  ;;  %v4417_v29 = vld [vmem:[%s6229_s2 + $0x1e0] ss:$12 sps:$4 sm:$0xff]  }
  0x6a   :  { %2033 = vmatprep.subr.bf16.mxu1 %v4399_v37  ;;  %v4429_v37 = vld [vmem:[%s6229_s2 + $0x214] ss:$12 sps:$4 sm:$0xff]  }
  0xe7   :  { %v3961_v14 = vpop.f32.mrb[0].mxu1 }
  0xe8   :  { %v296_v15 = vpop.f32.mrb[1].mxu1 }
  0xe9   :  { %v3962_v16 = vpop.f32.mrb[2].mxu1 }
  0xea   :  { %v299_v17 = vpop.f32.mrb[3].mxu1 }
  0xf5   :  { %v3723_v22 = vpop.f32.mrb[0].mxu0 }
  0xf6   :  { %v3724_v24 = vpop.f32.mrb[1].mxu0 }
  0xf7   :  { %v3725_v27 = vadd.f32 %v3724_v24, %v3723_v22  ;;  %v3726_v28 = vpop.f32.mrb[2].mxu0  ;;  %v4414_v22 = vld [vmem:[%s6229_s2 + $0x1cc] ss:$12 sps:$4 sm:$0xff]  }
  0xf8   :  { %v3727_v30 = vpop.f32.mrb[3].mxu0 }
  0xf9   :  { %v297_v31 = vadd.f32 %v3725_v27, %v296_v15  ;;  %v3728_v32 = vadd.f32 %v3727_v30, %v3726_v28  ;;  %v4419_v27 = vld [vmem:[%s6229_s2 + $0x1e4] ss:$12 sps:$4 sm:$0xff]   ;;  %v4420_v28 = vld [vmem:[%s6229_s2 + $0x2a8] ss:$12 sps:$4 sm:$0xff]  }
  0xfa   :  { %v4421_v30 = vld [vmem:[%s6229_s2 + $0x1e8] ss:$12 sps:$4 sm:$0xff]  }
  0xfb   :  { %v300_v34 = vadd.f32 %v3728_v32, %v299_v17  ;;  %v4411_v17 = vld [vmem:[%s6229_s2 + $0x1b8] ss:$12 sps:$4 sm:$0xff]   ;;  %v4425_v32 = vld [vmem:[%s6229_s2 + $0x2c0] ss:$12 sps:$4 sm:$0xff]  }
  0xfd   :  { %v3729_v35 = vpop.f32.mrb[4].mxu0  ;;  %v315_v36 = vpack.c.bf16 %v300_v34, %v297_v31  ;;  %v4424_v31 = vld [vmem:[%s6229_s2 + $0x1fc] ss:$12 sps:$4 sm:$0xff]   ;;  %v4426_v34 = vld [vmem:[%s6229_s2 + $0x200] ss:$12 sps:$4 sm:$0xff]  }
  0xfe   :  { %v3730_v39 = vpop.f32.mrb[5].mxu0 }
  0xff   :  { %v3731_v40 = vadd.f32 %v3730_v39, %v3729_v35  ;;  %v3732_v41 = vpop.f32.mrb[6].mxu0  ;;  %v319_v42 = vrot.slane %v315_v36, 4 }
 0x100   :  { %v3733_v43 = vpop.f32.mrb[7].mxu0 }
 0x101   :  { %v305_v44 = vadd.f32 %v3961_v14, %v3731_v40  ;;  %v3734_v45 = vadd.f32 %v3733_v43, %v3732_v41  ;;  %321 = vrot.lane.b32.xlu0 %v319_v42, %s4664_s22  ;;  %v4427_v43 = vld [vmem:[%s6229_s2 + $0x210] ss:$12 sps:$4 sm:$0xff]  }
 0x103   :  { %v308_v46 = vadd.f32 %v3962_v16, %v3734_v45  ;;  %v4407_v16 = vld [vmem:[%s6229_s2 + $0x1b0] ss:$12 sps:$4 sm:$0xff]   ;;  %v4434_v45 = vld [vmem:[%s6229_s2 + $0x22c] ss:$12 sps:$4 sm:$0xff]  }
 0x105   :  { %v316_v47 = vpack.c.bf16 %v308_v46, %v305_v44  ;;  %v4431_v44 = vld [vmem:[%s6229_s2 + $0x218] ss:$12 sps:$4 sm:$0xff]   ;;  %v4435_v46 = vld [vmem:[%s6229_s2 + $0x2f0] ss:$12 sps:$4 sm:$0xff]  }
 0x107   :  { %v320_v48 = vrot.slane %v316_v47, 4 }
 0x109   :  { %323 = vrot.lane.b32.xlu0 %v320_v48, %s4664_s22 }
 0x173   :  { %v322_v49 = vpop.permute.xlu0 %321 }
 0x174   :  { %328 = vst.msk [vmem:[#allocation2] sm:$0xf0] %vm327_vm1, %v322_v49 }
 0x175   :  { %330 = vst.msk [vmem:[#allocation2 + $0x8] sm:$0xf] %vm329_vm2, %v322_v49 }
 0x17b   :  { %v324_v50 = vpop.permute.xlu0 %323  ;;  %v337_v51 = vld [vmem:[#allocation2] sm:$0xfc] }
 0x17c   :  { %v338_v52 = vld [vmem:[#allocation2 + $0x8] sm:$0x3]  ;;  %331 = vst.msk [vmem:[#allocation2 + $0x10] sm:$0xf0] %vm327_vm1, %v324_v50  ;;  %v346_v55 = vrot.slane %v337_v51, 2  ;;  %v333_v3 = vld [vmem:[#allocation2] sm:$0xff] }
 0x17d   :  { %332 = vst.msk [vmem:[#allocation2 + $0x18] sm:$0xf] %vm329_vm2, %v324_v50  ;;  %v347_v56 = vrot.slane %v338_v52, 2  ;;  %v375_v57 = vld [vmem:[#allocation2] sm:$0xf8] }
 0x17e   :  { %v376_v58 = vld [vmem:[#allocation2 + $0x8] sm:$0xf]  ;;  %v381_v60 = vshrl.u32 %v375_v57, 16  ;;  %v384_v61 = vshll.u32 %v375_v57, 16  ;;  %v356_v47 = vld [vmem:[#allocation2] sm:$0xf8] }
 0x17f   :  { %v389_v62 = vshrl.u32 %v376_v58, 16  ;;  %v392_v63 = vshll.u32 %v376_v58, 16  ;;  %v348_v0 = vsel %vm345_vm3, %v346_v55, %v347_v56  ;;  %v357_v48 = vld [vmem:[#allocation2 + $0x8] sm:$0x7]  ;;  %v4436_v56 = vld [vmem:[%s6229_s2 + $0x230] ss:$12 sps:$4 sm:$0xff]  }
 0x180   :  { %2012 = vmatprep.mubr.bf16.mxu1 %v348_v0  ;;  %2277 = vmatprep.mubr.bf16.mxu0 %v348_v0  ;;  %v383_v6 = vrot.slane %v381_v60, 3  ;;  %v386_v7 = vrot.slane %v384_v61, 4  ;;  %v4432_v55 = vld [vmem:[%s6229_s2 + $0x228] ss:$12 sps:$4 sm:$0xff]   ;;  %v4439_v58 = vld [vmem:[%s6229_s2 + $0x244] ss:$12 sps:$4 sm:$0xff]  }
 0x181   :  { %2013 = vmatmul.mubr.bf16.vlgmr.msra.gmra.mrb[4].mxu1 %v333_v3  ;;  %2278 = vmatmul.mubr.bf16.vlgmr.msra.gmra.mrb[8].mxu0 %v333_v3  ;;  %v391_v8 = vrot.slane %v389_v62, 3  ;;  %v394_v9 = vrot.slane %v392_v63, 4  ;;  %v438_v57 = vld [vmem:[#allocation2 + $0x8] sm:$0x1f]  ;;  %v365_v60 = vrot.slane %v356_v47, 3  ;;  %v366_v61 = vrot.slane %v357_v48, 3 }
 0x182   :  { %2034 = vmatpush1.bf16.msra.mxu1 %v4397_v53  ;;  %3770 = vmatpush3.bf16.msra.mxu0 %v4401_v59  ;;  %v387_v18 = vor.u32 %v386_v7, %v383_v6  ;;  %v437_v53 = vld [vmem:[#allocation2] sm:$0xf0]  ;;  %v4440_v59 = vld [vmem:[%s6229_s2 + $0x3c8] ss:$12 sps:$4 sm:$0xff]   ;;  %v454_v3 = vshll.u32 %v438_v57, 16 }
 0x183   :  { %2035 = vmatprep.subr.bf16.mxu1 %v4404_v1  ;;  %3771 = vmatprep.subr.bf16.mxu0 %v4405_v2  ;;  %v339_v12 = vld [vmem:[#allocation2 + $0x10] sm:$0xfc]  ;;  %v395_v19 = vor.u32 %v394_v9, %v391_v8  ;;  %v443_v62 = vshrl.u32 %v437_v53, 16  ;;  %v446_v63 = vshll.u32 %v437_v53, 16  ;;  %v451_v2 = vshrl.u32 %v438_v57, 16 }
 0x184   :  { %v340_v13 = vld [vmem:[#allocation2 + $0x18] sm:$0x3]  ;;  %v349_v14 = vrot.slane %v339_v12, 2  ;;  %v334_v21 = vld [vmem:[#allocation2 + $0x10] sm:$0xff]  ;;  %v4444_v6 = vld [vmem:[%s6229_s2 + $0x25c] ss:$12 sps:$4 sm:$0xff]   ;;  %v5072_v7 = vsel %vm364_vm5, %v365_v60, %v366_v61 }
 0x185   :  { %v350_v15 = vrot.slane %v340_v13, 2  ;;  %v396_v24 = vsel %vm379_vm4, %v387_v18, %v395_v19  ;;  %v377_v35 = vld [vmem:[#allocation2 + $0x10] sm:$0xf8]  ;;  %v378_v36 = vld [vmem:[#allocation2 + $0x18] sm:$0xf]  ;;  %v445_v9 = vrot.slane %v443_v62, 4 }
 0x186   :  { %2036 = vmatpush1.bf16.msra.mxu1 %v4402_v4  ;;  %3772 = vmatpush3.bf16.msra.mxu0 %v4406_v5  ;;  %v398_v39 = vshrl.u32 %v377_v35, 16  ;;  %v401_v40 = vshll.u32 %v377_v35, 16  ;;  %v406_v41 = vshrl.u32 %v378_v36, 16  ;;  %v409_v42 = vshll.u32 %v378_v36, 16  ;;  %v4437_v4 = vld [vmem:[%s6229_s2 + $0x240] ss:$12 sps:$4 sm:$0xff]  }
 0x187   :  { %v351_v20 = vsel %vm345_vm3, %v349_v14, %v350_v15  ;;  %2037 = vmatprep.subr.bf16.mxu1 %v4409_v10  ;;  %3773 = vmatprep.subr.bf16.mxu0 %v4410_v11  ;;  %v4441_v5 = vld [vmem:[%s6229_s2 + $0x308] ss:$12 sps:$4 sm:$0xff]   ;;  %v4445_v8 = vld [vmem:[%s6229_s2 + $0x3e0] ss:$12 sps:$4 sm:$0xff]   ;;  %v448_v10 = vrot.slane %v446_v63, 5  ;;  %v453_v14 = vrot.slane %v451_v2, 4 }
 0x188   :  { %2022 = vmatprep.mubr.bf16.mxu1 %v351_v20  ;;  %2285 = vmatprep.mubr.bf16.mxu0 %v351_v20  ;;  %v400_v49 = vrot.slane %v398_v39, 3  ;;  %v403_v50 = vrot.slane %v401_v40, 4  ;;  %v408_v51 = vrot.slane %v406_v41, 3  ;;  %v411_v52 = vrot.slane %v409_v42, 4  ;;  %v358_v12 = vld [vmem:[#allocation2 + $0x10] sm:$0xf8] }
 0x189   :  { %2023 = vmatmul.mubr.bf16.gmra.mrb[8].mxu1 %v334_v21  ;;  %2286 = vmatmul.mubr.bf16.gmra.mrb[12].mxu0 %v334_v21  ;;  %v359_v13 = vld [vmem:[#allocation2 + $0x18] sm:$0x7]  ;;  %v456_v15 = vrot.slane %v454_v3, 5  ;;  %v4449_v18 = vld [vmem:[%s6229_s2 + $0x274] ss:$12 sps:$4 sm:$0xff]   ;;  %v368_v19 = vrot.slane %v358_v12, 3 }
 0x18a   :  { %2038 = vmatpush1.bf16.msra.mxu1 %v4407_v16  ;;  %3774 = vmatpush3.bf16.msra.mxu0 %v4411_v17  ;;  %v404_v0 = vor.u32 %v403_v50, %v400_v49  ;;  %v412_v1 = vor.u32 %v411_v52, %v408_v51  ;;  %v4442_v16 = vld [vmem:[%s6229_s2 + $0x258] ss:$12 sps:$4 sm:$0xff]   ;;  %v4446_v17 = vld [vmem:[%s6229_s2 + $0x320] ss:$12 sps:$4 sm:$0xff]   ;;  %v369_v20 = vrot.slane %v359_v13, 3 }
 0x18b   :  { %2065 = vmatprep.mubr.bf16.mxu1 %v396_v24  ;;  %2326 = vmatprep.mubr.bf16.mxu0 %v396_v24  ;;  %v4450_v21 = vld [vmem:[%s6229_s2 + $0x3f8] ss:$12 sps:$4 sm:$0xff]   ;;  %v4447_v24 = vld [vmem:[%s6229_s2 + $0x270] ss:$12 sps:$4 sm:$0xff]   ;;  %v4461_v35 = vld [vmem:[%s6229_s2 + $0x368] ss:$12 sps:$4 sm:$0xff]  }
 0x18c   :  { %2039 = vmatprep.subr.bf16.mxu1 %v4414_v22  ;;  %3775 = vmatprep.subr.bf16.mxu0 %v4415_v23  ;;  %v5079_v11 = vsel %vm379_vm4, %v404_v0, %v412_v1  ;;  %v449_v22 = vor.u32 %v448_v10, %v445_v9  ;;  %v457_v23 = vor.u32 %v456_v15, %v453_v14  ;;  %v4464_v36 = vld [vmem:[%s6229_s2 + $0x2bc] ss:$12 sps:$4 sm:$0xff]   ;;  %v4466_v39 = vld [vmem:[%s6229_s2 + $0x380] ss:$12 sps:$4 sm:$0xff]   ;;  %v439_v41 = vld [vmem:[#allocation2 + $0x10] sm:$0xf0] }
 0x18d   :  { %v4469_v40 = vld [vmem:[%s6229_s2 + $0x2d4] ss:$12 sps:$4 sm:$0xff]   ;;  %v440_v42 = vld [vmem:[#allocation2 + $0x18] sm:$0x1f]  ;;  %v418_v53 = vld [vmem:[#allocation2] sm:$0xf0] }
 0x18e   :  { %2040 = vmatpush1.bf16.msra.mxu1 %v4412_v25  ;;  %3776 = vmatpush3.bf16.msra.mxu0 %v4416_v26  ;;  %v4451_v25 = vld [vmem:[%s6229_s2 + $0x338] ss:$12 sps:$4 sm:$0xff]   ;;  %v468_v47 = vshrl.u32 %v440_v42, 16  ;;  %v471_v48 = vshll.u32 %v440_v42, 16  ;;  %v4475_v51 = vld [vmem:[%s6229_s2 + $0x470] ss:$12 sps:$4 sm:$0xff]  }
 0x18f   :  { %2041 = vmatprep.subr.bf16.mxu1 %v4419_v27  ;;  %3777 = vmatprep.subr.bf16.mxu0 %v4420_v28  ;;  %v4454_v26 = vld [vmem:[%s6229_s2 + $0x28c] ss:$12 sps:$4 sm:$0xff]   ;;  %v5104_v27 = vsel %vm364_vm5, %v368_v19, %v369_v20  ;;  %v4455_v28 = vld [vmem:[%s6229_s2 + $0x410] ss:$12 sps:$4 sm:$0xff]   ;;  %v4472_v52 = vld [vmem:[%s6229_s2 + $0x2e8] ss:$12 sps:$4 sm:$0xff]  }
 0x190   :  { %v4471_v49 = vld [vmem:[%s6229_s2 + $0x398] ss:$12 sps:$4 sm:$0xff]   ;;  %v4476_v60 = vld [vmem:[%s6229_s2 + $0x3b0] ss:$12 sps:$4 sm:$0xff]   ;;  %v4480_v62 = vld [vmem:[%s6229_s2 + $0x548] ss:$12 sps:$4 sm:$0xff]  }
 0x191   :  { %v4474_v50 = vld [vmem:[%s6229_s2 + $0x2ec] ss:$12 sps:$4 sm:$0xff]   ;;  %v4479_v61 = vld [vmem:[%s6229_s2 + $0x304] ss:$12 sps:$4 sm:$0xff]   ;;  %v427_v63 = vrot.slane %v418_v53, 4 }
 0x192   :  { %2042 = vmatpush1.bf16.msra.mxu1 %v4417_v29  ;;  %3778 = vmatpush3.bf16.msra.mxu0 %v4421_v30  ;;  %v5111_v29 = vsel %vm441_vm6, %v449_v22, %v457_v23  ;;  %v4452_v30 = vld [vmem:[%s6229_s2 + $0x288] ss:$12 sps:$4 sm:$0xff]   ;;  %v4477_v3 = vld [vmem:[%s6229_s2 + $0x300] ss:$12 sps:$4 sm:$0xff]   ;;  %v421_v12 = vld [vmem:[#allocation2 + $0x18] sm:$0xf] }
 0x193   :  { %2043 = vmatprep.subr.bf16.mxu1 %v4424_v31  ;;  %3779 = vmatprep.subr.bf16.mxu0 %v4425_v32  ;;  %v4456_v31 = vld [vmem:[%s6229_s2 + $0x350] ss:$12 sps:$4 sm:$0xff]   ;;  %v420_v10 = vld [vmem:[#allocation2 + $0x10] sm:$0xf0]  ;;  %v499_v13 = vld [vmem:[#allocation2] sm:$0xc0] }
 0x194   :  { %v4459_v32 = vld [vmem:[%s6229_s2 + $0x2a4] ss:$12 sps:$4 sm:$0xff]   ;;  %v500_v14 = vld [vmem:[#allocation2 + $0x8] sm:$0x3f]  ;;  %v4489_v15 = vld [vmem:[%s6229_s2 + $0x334] ss:$12 sps:$4 sm:$0xff]  }
 0x195   :  { %v508_v19 = vrot.slane %v499_v13, 6  ;;  %v509_v20 = vrot.slane %v500_v14, 6  ;;  %v4491_v22 = vld [vmem:[%s6229_s2 + $0x4b8] ss:$12 sps:$4 sm:$0xff]   ;;  %v4515_v42 = vld [vmem:[%s6229_s2 + $0x5f0] ss:$12 sps:$4 sm:$0xff]  }
 0x196   :  { %2044 = vmatpush1.bf16.msra.mxu1 %v4422_v33  ;;  %3780 = vmatpush3.bf16.msra.mxu0 %v4426_v34  ;;  %v4460_v33 = vld [vmem:[%s6229_s2 + $0x428] ss:$12 sps:$4 sm:$0xff]   ;;  %v4457_v34 = vld [vmem:[%s6229_s2 + $0x2a0] ss:$12 sps:$4 sm:$0xff]   ;;  %v4535_v13 = vld [vmem:[%s6229_s2 + $0x424] ss:$12 sps:$4 sm:$0xff]  }
 0x197   :  { %2045 = vmatprep.subr.bf16.mxu1 %v4429_v37  ;;  %3781 = vmatprep.subr.bf16.mxu0 %v4430_v38  ;;  %v4465_v37 = vld [vmem:[%s6229_s2 + $0x440] ss:$12 sps:$4 sm:$0xff]   ;;  %v4462_v38 = vld [vmem:[%s6229_s2 + $0x2b8] ss:$12 sps:$4 sm:$0xff]   ;;  %v4536_v14 = vld [vmem:[%s6229_s2 + $0x668] ss:$12 sps:$4 sm:$0xff]  }
 0x198   :  { %v4494_v23 = vld [vmem:[%s6229_s2 + $0x34c] ss:$12 sps:$4 sm:$0xff]  }
 0x199   :  { %v4517_v53 = vld [vmem:[%s6229_s2 + $0x3c0] ss:$12 sps:$4 sm:$0xff]  }
 0x19a   :  { %2046 = vmatpush1.bf16.msra.mxu1 %v4427_v43  ;;  %3782 = vmatpush3.bf16.msra.mxu0 %v4431_v44  ;;  %v4470_v43 = vld [vmem:[%s6229_s2 + $0x458] ss:$12 sps:$4 sm:$0xff]   ;;  %v4467_v44 = vld [vmem:[%s6229_s2 + $0x2d0] ss:$12 sps:$4 sm:$0xff]  }
 0x19b   :  { %2047 = vmatprep.subr.bf16.mxu1 %v4434_v45  ;;  %3783 = vmatprep.subr.bf16.mxu0 %v4435_v46  ;;  %v460_v45 = vshrl.u32 %v439_v41, 16  ;;  %v463_v46 = vshll.u32 %v439_v41, 16  ;;  %v4514_v41 = vld [vmem:[%s6229_s2 + $0x3ac] ss:$12 sps:$4 sm:$0xff]  }
 0x19d   :  { %v465_v57 = vrot.slane %v463_v46, 5  ;;  %v481_v46 = vld [vmem:[#allocation2 + $0x8] sm:$0x1f] }
 0x19e   :  { %2048 = vmatpush1.bf16.msra.mxu1 %v4432_v55  ;;  %3784 = vmatpush3.bf16.msra.mxu0 %v4436_v56  ;;  %v419_v55 = vld [vmem:[#allocation2 + $0x8] sm:$0xf]  ;;  %v462_v56 = vrot.slane %v460_v45, 4  ;;  %v480_v45 = vld [vmem:[#allocation2] sm:$0xe0] }
 0x19f   :  { %2049 = vmatprep.subr.bf16.mxu1 %v4439_v58  ;;  %3797 = vmatprep.subr.bf16.mxu0 %v4440_v59  ;;  %v470_v58 = vrot.slane %v468_v47, 4  ;;  %v473_v59 = vrot.slane %v471_v48, 5  ;;  %v428_v0 = vrot.slane %v419_v55, 4  ;;  %v4519_v47 = vld [vmem:[%s6229_s2 + $0x3c4] ss:$12 sps:$4 sm:$0xff]  }
 0x1a0   :  { %v466_v1 = vor.u32 %v465_v57, %v462_v56  ;;  %v501_v48 = vld [vmem:[#allocation2 + $0x10] sm:$0xc0]  ;;  %v4523_v57 = vld [vmem:[%s6229_s2 + $0x3dc] ss:$12 sps:$4 sm:$0xff]  }
 0x1a1   :  { %2327 = vmatmul.mubr.bf16.vlgmr.msra.gmra.mrb[16].mxu0 %v5072_v7  ;;  %v474_v2 = vor.u32 %v473_v59, %v470_v58  ;;  %v511_v55 = vrot.slane %v501_v48, 6  ;;  %v4524_v58 = vld [vmem:[%s6229_s2 + $0x620] ss:$12 sps:$4 sm:$0xff]  }
 0x1a2   :  { %2050 = vmatpush1.bf16.msra.mxu1 %v4437_v4  ;;  %2334 = vmatprep.mubr.bf16.mxu0 %v5079_v11  ;;  %v4481_v4 = vld [vmem:[%s6229_s2 + $0x488] ss:$12 sps:$4 sm:$0xff]   ;;  %v4585_v48 = vld [vmem:[%s6229_s2 + $0x5a0] ss:$12 sps:$4 sm:$0xff]  }
 0x1a3   :  { %3798 = vmatpush3.bf16.msra.mxu0 %v4441_v5  ;;  %2051 = vmatprep.subr.bf16.mxu1 %v4444_v6  ;;  %v4484_v5 = vld [vmem:[%s6229_s2 + $0x31c] ss:$12 sps:$4 sm:$0xff]   ;;  %v5185_v6 = vsel %vm426_vm7, %v427_v63, %v428_v0  ;;  %v5193_v9 = vsel %vm441_vm6, %v466_v1, %v474_v2  ;;  %v4527_v0 = vld [vmem:[%s6229_s2 + $0x3f4] ss:$12 sps:$4 sm:$0xff]   ;;  %v4528_v1 = vld [vmem:[%s6229_s2 + $0x638] ss:$12 sps:$4 sm:$0xff]  }
 0x1a4   :  { %3799 = vmatprep.subr.bf16.mxu0 %v4445_v8  ;;  %v4485_v8 = vld [vmem:[%s6229_s2 + $0x560] ss:$12 sps:$4 sm:$0xff]   ;;  %v483_v63 = vld [vmem:[#allocation2 + $0x18] sm:$0x1f] }
 0x1a6   :  { %2052 = vmatpush1.bf16.msra.mxu1 %v4442_v16  ;;  %v430_v16 = vrot.slane %v420_v10, 4 }
 0x1a7   :  { %3800 = vmatpush3.bf16.msra.mxu0 %v4446_v17  ;;  %2053 = vmatprep.subr.bf16.mxu1 %v4449_v18  ;;  %v431_v17 = vrot.slane %v421_v12, 4  ;;  %v4490_v18 = vld [vmem:[%s6229_s2 + $0x578] ss:$12 sps:$4 sm:$0xff]   ;;  %v5329_v12 = vld [vmem:[#allocation2 + $0x8] sm:$0xff] }
 0x1a8   :  { %3801 = vmatprep.subr.bf16.mxu0 %v4450_v21  ;;  %v4487_v21 = vld [vmem:[%s6229_s2 + $0x330] ss:$12 sps:$4 sm:$0xff]  }
 0x1a9   :  { %2335 = vmatmul.mubr.bf16.gmra.mrb[20].mxu0 %v5104_v27 }
 0x1aa   :  { %2054 = vmatpush1.bf16.msra.mxu1 %v4447_v24  ;;  %2375 = vmatprep.mubr.bf16.mxu0 %v5111_v29  ;;  %v5219_v24 = vsel %vm426_vm7, %v430_v16, %v431_v17  ;;  %v4540_v16 = vld [vmem:[%s6229_s2 + $0x680] ss:$12 sps:$4 sm:$0xff]   ;;  %v4537_v17 = vld [vmem:[%s6229_s2 + $0x438] ss:$12 sps:$4 sm:$0xff]  }
 0x1ab   :  { %3802 = vmatpush3.bf16.msra.mxu0 %v4451_v25  ;;  %2055 = vmatprep.subr.bf16.mxu1 %v4454_v26  ;;  %v4495_v25 = vld [vmem:[%s6229_s2 + $0x590] ss:$12 sps:$4 sm:$0xff]   ;;  %v5227_v26 = vsel %vm507_vm8, %v508_v19, %v509_v20  ;;  %v4544_v19 = vld [vmem:[%s6229_s2 + $0x698] ss:$12 sps:$4 sm:$0xff]  }
 0x1ac   :  { %3803 = vmatprep.subr.bf16.mxu0 %v4455_v28  ;;  %v4496_v28 = vld [vmem:[%s6229_s2 + $0x4d0] ss:$12 sps:$4 sm:$0xff]  }
 0x1ad   :  { %v4541_v20 = vld [vmem:[%s6229_s2 + $0x450] ss:$12 sps:$4 sm:$0xff]  }
 0x1ae   :  { %2056 = vmatpush1.bf16.msra.mxu1 %v4452_v30  ;;  %v4500_v30 = vld [vmem:[%s6229_s2 + $0x5a8] ss:$12 sps:$4 sm:$0xff]  }
 0x1af   :  { %3804 = vmatpush3.bf16.msra.mxu0 %v4456_v31  ;;  %2057 = vmatprep.subr.bf16.mxu1 %v4459_v32  ;;  %v4497_v31 = vld [vmem:[%s6229_s2 + $0x360] ss:$12 sps:$4 sm:$0xff]   ;;  %v4501_v32 = vld [vmem:[%s6229_s2 + $0x4e8] ss:$12 sps:$4 sm:$0xff]  }
 0x1b0   :  { %3805 = vmatprep.subr.bf16.mxu0 %v4460_v33  ;;  %v4504_v33 = vld [vmem:[%s6229_s2 + $0x37c] ss:$12 sps:$4 sm:$0xff]  }
 0x1b2   :  { %2058 = vmatpush1.bf16.msra.mxu1 %v4457_v34  ;;  %v4505_v34 = vld [vmem:[%s6229_s2 + $0x5c0] ss:$12 sps:$4 sm:$0xff]  }
 0x1b3   :  { %3806 = vmatpush3.bf16.msra.mxu0 %v4461_v35  ;;  %2059 = vmatprep.subr.bf16.mxu1 %v4464_v36  ;;  %v4502_v35 = vld [vmem:[%s6229_s2 + $0x378] ss:$12 sps:$4 sm:$0xff]   ;;  %v4506_v36 = vld [vmem:[%s6229_s2 + $0x500] ss:$12 sps:$4 sm:$0xff]  }
 0x1b4   :  { %3807 = vmatprep.subr.bf16.mxu0 %v4465_v37  ;;  %v4509_v37 = vld [vmem:[%s6229_s2 + $0x394] ss:$12 sps:$4 sm:$0xff]  }
 0x1b6   :  { %2060 = vmatpush1.bf16.msra.mxu1 %v4462_v38  ;;  %v4510_v38 = vld [vmem:[%s6229_s2 + $0x5d8] ss:$12 sps:$4 sm:$0xff]  }
 0x1b7   :  { %3808 = vmatpush3.bf16.msra.mxu0 %v4466_v39  ;;  %2061 = vmatprep.subr.bf16.mxu1 %v4469_v40  ;;  %v4507_v39 = vld [vmem:[%s6229_s2 + $0x390] ss:$12 sps:$4 sm:$0xff]   ;;  %v4511_v40 = vld [vmem:[%s6229_s2 + $0x518] ss:$12 sps:$4 sm:$0xff]  }
 0x1b8   :  { %3809 = vmatprep.subr.bf16.mxu0 %v4470_v43  ;;  %v4512_v43 = vld [vmem:[%s6229_s2 + $0x3a8] ss:$12 sps:$4 sm:$0xff]  }
 0x1ba   :  { %2062 = vmatpush1.bf16.msra.mxu1 %v4467_v44  ;;  %v4516_v44 = vld [vmem:[%s6229_s2 + $0x530] ss:$12 sps:$4 sm:$0xff]  }
 0x1bb   :  { %3810 = vmatpush3.bf16.msra.mxu0 %v4471_v49  ;;  %2063 = vmatprep.subr.bf16.mxu1 %v4474_v50  ;;  %v502_v49 = vld [vmem:[#allocation2 + $0x18] sm:$0x3f]  ;;  %v4520_v50 = vld [vmem:[%s6229_s2 + $0x608] ss:$12 sps:$4 sm:$0xff]  }
 0x1bc   :  { %3811 = vmatprep.subr.bf16.mxu0 %v4475_v51  ;;  %v489_v51 = vrot.slane %v480_v45, 5  ;;  %v512_v56 = vrot.slane %v502_v49, 6  ;;  %v4584_v45 = vld [vmem:[%s6229_s2 + $0x58c] ss:$12 sps:$4 sm:$0xff]   ;;  %v4590_v49 = vld [vmem:[%s6229_s2 + $0x5bc] ss:$12 sps:$4 sm:$0xff]  }
 0x1be   :  { %2064 = vmatpush1.bf16.msra.mxu1 %v4472_v52  ;;  %v490_v52 = vrot.slane %v481_v46, 5  ;;  %v4582_v46 = vld [vmem:[%s6229_s2 + $0x588] ss:$12 sps:$4 sm:$0xff]  }
 0x1bf   :  { %3812 = vmatpush3.bf16.msra.mxu0 %v4476_v60  ;;  %2086 = vmatprep.subr.bf16.mxu1 %v4479_v61  ;;  %v5304_v60 = vsel %vm507_vm8, %v511_v55, %v512_v56  ;;  %v4521_v61 = vld [vmem:[%s6229_s2 + $0x3d8] ss:$12 sps:$4 sm:$0xff]   ;;  %v4594_v55 = vld [vmem:[%s6229_s2 + $0x5e8] ss:$12 sps:$4 sm:$0xff]  }
 0x1c0   :  { %3825 = vmatprep.subr.bf16.mxu0 %v4480_v62  ;;  %v5300_v59 = vsel %vm488_vm9, %v489_v51, %v490_v52  ;;  %v482_v62 = vld [vmem:[#allocation2 + $0x10] sm:$0xe0]  ;;  %v4591_v52 = vld [vmem:[%s6229_s2 + $0x5d0] ss:$12 sps:$4 sm:$0xff]  }
 0x1c1   :  { %2066 = vmatmul.mubr.bf16.vlgmr.msra.gmra.mrb[4].mxu1 %v5072_v7  ;;  %v4482_v7 = vld [vmem:[%s6229_s2 + $0x318] ss:$12 sps:$4 sm:$0xff]   ;;  %v492_v2 = vrot.slane %v482_v62, 5  ;;  %v4593_v51 = vld [vmem:[%s6229_s2 + $0x5d4] ss:$12 sps:$4 sm:$0xff]  }
 0x1c2   :  { %2376 = vmatmul.mubr.bf16.vlgmr.msra.gmra.mrb[24].mxu0 %v5185_v6  ;;  %2075 = vmatprep.mubr.bf16.mxu1 %v5079_v11  ;;  %v4486_v11 = vld [vmem:[%s6229_s2 + $0x4a0] ss:$12 sps:$4 sm:$0xff]   ;;  %v4599_v56 = vld [vmem:[%s6229_s2 + $0x604] ss:$12 sps:$4 sm:$0xff]  }
 0x1c3   :  { %2087 = vmatpush1.bf16.msra.mxu1 %v4477_v3  ;;  %2383 = vmatprep.mubr.bf16.mxu0 %v5193_v9  ;;  %v493_v3 = vrot.slane %v483_v63, 5  ;;  %v4605_v62 = vld [vmem:[%s6229_s2 + $0x634] ss:$12 sps:$4 sm:$0xff]   ;;  %v4603_v63 = vld [vmem:[%s6229_s2 + $0x630] ss:$12 sps:$4 sm:$0xff]  }
 0x1c4   :  { %3826 = vmatpush3.bf16.msra.mxu0 %v4481_v4  ;;  %2088 = vmatprep.subr.bf16.mxu1 %v4484_v5  ;;  %v4525_v4 = vld [vmem:[%s6229_s2 + $0x3f0] ss:$12 sps:$4 sm:$0xff]   ;;  %v4531_v5 = vld [vmem:[%s6229_s2 + $0x40c] ss:$12 sps:$4 sm:$0xff]  }
 0x1c5   :  { %3827 = vmatprep.subr.bf16.mxu0 %v4485_v8  ;;  %v4532_v8 = vld [vmem:[%s6229_s2 + $0x650] ss:$12 sps:$4 sm:$0xff]   ;;  %v5326_v10 = vsel %vm488_vm9, %v492_v2, %v493_v3  ;;  %v4612_v3 = vld [vmem:[%s6229_s2 + $0x678] ss:$12 sps:$4 sm:$0xff]  }
 0x1c6   :  { %v4614_v2 = vld [vmem:[%s6229_s2 + $0x67c] ss:$12 sps:$4 sm:$0xff]  }
 0x1c7   :  { %2089 = vmatpush1.bf16.msra.mxu1 %v4482_v7  ;;  %v4529_v7 = vld [vmem:[%s6229_s2 + $0x408] ss:$12 sps:$4 sm:$0xff]  }
 0x1c8   :  { %3828 = vmatpush3.bf16.msra.mxu0 %v4486_v11  ;;  %2090 = vmatprep.subr.bf16.mxu1 %v4489_v15  ;;  %v4533_v11 = vld [vmem:[%s6229_s2 + $0x420] ss:$12 sps:$4 sm:$0xff]   ;;  %v4539_v15 = vld [vmem:[%s6229_s2 + $0x43c] ss:$12 sps:$4 sm:$0xff]  }
 0x1c9   :  { %2076 = vmatmul.mubr.bf16.gmra.mrb[8].mxu1 %v5104_v27  ;;  %3829 = vmatprep.subr.bf16.mxu0 %v4490_v18  ;;  %v4492_v27 = vld [vmem:[%s6229_s2 + $0x348] ss:$12 sps:$4 sm:$0xff]  }
 0x1ca   :  { %2384 = vmatmul.mubr.bf16.gmra.mrb[28].mxu0 %v5219_v24  ;;  %2118 = vmatprep.mubr.bf16.mxu1 %v5111_v29  ;;  %v4499_v29 = vld [vmem:[%s6229_s2 + $0x364] ss:$12 sps:$4 sm:$0xff]   ;;  %v4543_v18 = vld [vmem:[%s6229_s2 + $0x454] ss:$12 sps:$4 sm:$0xff]  }
 0x1cb   :  { %2091 = vmatpush1.bf16.msra.mxu1 %v4487_v21  ;;  %2424 = vmatprep.mubr.bf16.mxu0 %v5227_v26  ;;  %v4547_v21 = vld [vmem:[%s6229_s2 + $0x46c] ss:$12 sps:$4 sm:$0xff]  }
 0x1cc   :  { %3830 = vmatpush3.bf16.msra.mxu0 %v4491_v22  ;;  %2092 = vmatprep.subr.bf16.mxu1 %v4494_v23  ;;  %v4548_v22 = vld [vmem:[%s6229_s2 + $0x6b0] ss:$12 sps:$4 sm:$0xff]   ;;  %v4545_v23 = vld [vmem:[%s6229_s2 + $0x468] ss:$12 sps:$4 sm:$0xff]  }
 0x1cd   :  { %3831 = vmatprep.subr.bf16.mxu0 %v4495_v25  ;;  %v4551_v25 = vld [vmem:[%s6229_s2 + $0x484] ss:$12 sps:$4 sm:$0xff]  }
 0x1cf   :  { %2093 = vmatpush1.bf16.msra.mxu1 %v4492_v27  ;;  %v4549_v27 = vld [vmem:[%s6229_s2 + $0x480] ss:$12 sps:$4 sm:$0xff]  }
 0x1d0   :  { %3832 = vmatpush3.bf16.msra.mxu0 %v4496_v28  ;;  %2094 = vmatprep.subr.bf16.mxu1 %v4499_v29  ;;  %v4554_v28 = vld [vmem:[%s6229_s2 + $0x49c] ss:$12 sps:$4 sm:$0xff]  }
 0x1d1   :  { %3833 = vmatprep.subr.bf16.mxu0 %v4500_v30  ;;  %v5381_v29 = vld [vmem:[#allocation2 + $0x18] sm:$0xff] }
 0x1d2   :  { %v4552_v30 = vld [vmem:[%s6229_s2 + $0x498] ss:$12 sps:$4 sm:$0xff]  }
 0x1d3   :  { %2095 = vmatpush1.bf16.msra.mxu1 %v4497_v31  ;;  %v4557_v31 = vld [vmem:[%s6229_s2 + $0x4b4] ss:$12 sps:$4 sm:$0xff]  }
 0x1d4   :  { %3834 = vmatpush3.bf16.msra.mxu0 %v4501_v32  ;;  %2096 = vmatprep.subr.bf16.mxu1 %v4504_v33  ;;  %v4558_v32 = vld [vmem:[%s6229_s2 + $0x4c8] ss:$12 sps:$4 sm:$0xff]   ;;  %v4563_v33 = vld [vmem:[%s6229_s2 + $0x4e4] ss:$12 sps:$4 sm:$0xff]  }
 0x1d5   :  { %3835 = vmatprep.subr.bf16.mxu0 %v4505_v34  ;;  %v4561_v34 = vld [vmem:[%s6229_s2 + $0x4e0] ss:$12 sps:$4 sm:$0xff]  }
 0x1d7   :  { %2097 = vmatpush1.bf16.msra.mxu1 %v4502_v35  ;;  %v4569_v35 = vld [vmem:[%s6229_s2 + $0x514] ss:$12 sps:$4 sm:$0xff]  }
 0x1d8   :  { %3836 = vmatpush3.bf16.msra.mxu0 %v4506_v36  ;;  %2098 = vmatprep.subr.bf16.mxu1 %v4509_v37  ;;  %v4567_v36 = vld [vmem:[%s6229_s2 + $0x510] ss:$12 sps:$4 sm:$0xff]   ;;  %v4572_v37 = vld [vmem:[%s6229_s2 + $0x52c] ss:$12 sps:$4 sm:$0xff]  }
 0x1d9   :  { %3837 = vmatprep.subr.bf16.mxu0 %v4510_v38  ;;  %v4570_v38 = vld [vmem:[%s6229_s2 + $0x528] ss:$12 sps:$4 sm:$0xff]  }
 0x1db   :  { %2099 = vmatpush1.bf16.msra.mxu1 %v4507_v39  ;;  %v4575_v39 = vld [vmem:[%s6229_s2 + $0x544] ss:$12 sps:$4 sm:$0xff]  }
 0x1dc   :  { %3838 = vmatpush3.bf16.msra.mxu0 %v4511_v40  ;;  %2100 = vmatprep.subr.bf16.mxu1 %v4514_v41  ;;  %v4573_v40 = vld [vmem:[%s6229_s2 + $0x540] ss:$12 sps:$4 sm:$0xff]   ;;  %v4578_v41 = vld [vmem:[%s6229_s2 + $0x55c] ss:$12 sps:$4 sm:$0xff]  }
 0x1dd   :  { %3839 = vmatprep.subr.bf16.mxu0 %v4515_v42  ;;  %v4576_v42 = vld [vmem:[%s6229_s2 + $0x558] ss:$12 sps:$4 sm:$0xff]  }
 0x1df   :  { %2101 = vmatpush1.bf16.msra.mxu1 %v4512_v43  ;;  %v4581_v43 = vld [vmem:[%s6229_s2 + $0x574] ss:$12 sps:$4 sm:$0xff]  }
 0x1e0   :  { %3840 = vmatpush3.bf16.msra.mxu0 %v4516_v44  ;;  %2102 = vmatprep.subr.bf16.mxu1 %v4519_v47  ;;  %v4579_v44 = vld [vmem:[%s6229_s2 + $0x570] ss:$12 sps:$4 sm:$0xff]  }
 0x1e1   :  { %3963 = vmatprep.subr.bf16.mxu0 %v4520_v50  ;;  %v4587_v47 = vld [vmem:[%s6229_s2 + $0x5a4] ss:$12 sps:$4 sm:$0xff]  }
 0x1e3   :  { %2425 = vmatmul.mubr.bf16.vlgmr.msra.gmra.mrb[32].mxu0 %v5300_v59  ;;  %2103 = vmatpush1.bf16.msra.mxu1 %v4517_v53  ;;  %v4596_v53 = vld [vmem:[%s6229_s2 + $0x5ec] ss:$12 sps:$4 sm:$0xff]  }
 0x1e4   :  { %2432 = vmatprep.mubr.bf16.mxu0 %v5304_v60  ;;  %3964 = vmatpush3.bf16.msra.mxu0 %v4520_v50  ;;  %v4588_v50 = vld [vmem:[%s6229_s2 + $0x5b8] ss:$12 sps:$4 sm:$0xff]  }
 0x1e5   :  { %2104 = vmatprep.subr.bf16.mxu1 %v4523_v57  ;;  %3965 = vmatprep.subr.bf16.mxu0 %v4524_v58  ;;  %v4597_v57 = vld [vmem:[%s6229_s2 + $0x600] ss:$12 sps:$4 sm:$0xff]  }
 0x1e7   :  { %2105 = vmatpush1.bf16.msra.mxu1 %v4521_v61  ;;  %v4600_v61 = vld [vmem:[%s6229_s2 + $0x618] ss:$12 sps:$4 sm:$0xff]  }
 0x1e8   :  { %3966 = vmatpush3.bf16.msra.mxu0 %v4524_v58  ;;  %2106 = vmatprep.subr.bf16.mxu1 %v4527_v0  ;;  %v4602_v58 = vld [vmem:[%s6229_s2 + $0x61c] ss:$12 sps:$4 sm:$0xff]   ;;  %v4611_v0 = vld [vmem:[%s6229_s2 + $0x664] ss:$12 sps:$4 sm:$0xff]  }
 0x1e9   :  { %3967 = vmatprep.subr.bf16.mxu0 %v4528_v1 }
 0x1eb   :  { %2433 = vmatmul.mubr.bf16.gmra.mrb[36].mxu0 %v5326_v10  ;;  %2107 = vmatpush1.bf16.msra.mxu1 %v4525_v4 }
 0x1ec   :  { %3968 = vmatpush3.bf16.msra.mxu0 %v4528_v1  ;;  %3979 = vmatprep.mubr.bf16.mxu0 %v5329_v12  ;;  %v4609_v1 = vld [vmem:[%s6229_s2 + $0x660] ss:$12 sps:$4 sm:$0xff]  }
 0x1ed   :  { %2108 = vmatprep.subr.bf16.mxu1 %v4531_v5  ;;  %3969 = vmatprep.subr.bf16.mxu0 %v4532_v8 }
 0x1ef   :  { %2109 = vmatpush1.bf16.msra.mxu1 %v4529_v7 }
 0x1f0   :  { %3970 = vmatpush3.bf16.msra.mxu0 %v4532_v8  ;;  %2110 = vmatprep.subr.bf16.mxu1 %v4535_v13  ;;  %v4617_v8 = vld [vmem:[%s6229_s2 + $0x694] ss:$12 sps:$4 sm:$0xff]  }
 0x1f1   :  { %3971 = vmatprep.subr.bf16.mxu0 %v4536_v14 }
 0x1f3   :  { %2111 = vmatpush1.bf16.msra.mxu1 %v4533_v11  ;;  %v4615_v11 = vld [vmem:[%s6229_s2 + $0x690] ss:$12 sps:$4 sm:$0xff]  }
 0x1f4   :  { %3972 = vmatpush3.bf16.msra.mxu0 %v4536_v14  ;;  %2112 = vmatprep.subr.bf16.mxu1 %v4539_v15  ;;  %v4620_v15 = vld [vmem:[%s6229_s2 + $0x6ac] ss:$12 sps:$4 sm:$0xff]  }
 0x1f5   :  { %3973 = vmatprep.subr.bf16.mxu0 %v4540_v16 }
 0x1f7   :  { %2113 = vmatpush1.bf16.msra.mxu1 %v4537_v17 }
 0x1f8   :  { %3974 = vmatpush3.bf16.msra.mxu0 %v4540_v16  ;;  %2114 = vmatprep.subr.bf16.mxu1 %v4543_v18  ;;  %v4618_v16 = vld [vmem:[%s6229_s2 + $0x6a8] ss:$12 sps:$4 sm:$0xff]  }
 0x1f9   :  { %3975 = vmatprep.subr.bf16.mxu0 %v4544_v19 }
 0x1fb   :  { %2115 = vmatpush1.bf16.msra.mxu1 %v4541_v20 }
 0x1fc   :  { %3976 = vmatpush3.bf16.msra.mxu0 %v4544_v19  ;;  %2116 = vmatprep.subr.bf16.mxu1 %v4547_v21 }
 0x1fd   :  { %3977 = vmatprep.subr.bf16.mxu0 %v4548_v22 }
 0x1ff   :  { %2117 = vmatpush1.bf16.msra.mxu1 %v4545_v23  ;;  %v2534_v23 = vld [vmem:[%s6230_s3 + $0x8] sm:$0xff] }
 0x200   :  { %3978 = vmatpush3.bf16.msra.mxu0 %v4548_v22  ;;  %2139 = vmatprep.subr.bf16.mxu1 %v4551_v25  ;;  %v2537_v25 = vld [vmem:[%s6230_s3 + $0x20] sm:$0xff] }
 0x202   :  { %2119 = vmatmul.mubr.bf16.vlgmr.msra.gmra.mrb[4].mxu1 %v5185_v6  ;;  %v4555_v6 = vld [vmem:[%s6229_s2 + $0x4b0] ss:$12 sps:$4 sm:$0xff]  }
 0x203   :  { %3980 = vmatmul.mubr.bf16.vlgmr.msra.gmra.mrb[40].mxu0 %v5381_v29  ;;  %2128 = vmatprep.mubr.bf16.mxu1 %v5193_v9  ;;  %v4560_v9 = vld [vmem:[%s6229_s2 + $0x4cc] ss:$12 sps:$4 sm:$0xff]  }
 0x204   :  { %2140 = vmatpush1.bf16.msra.mxu1 %v4549_v27  ;;  %v2533_v27 = vld [vmem:[%s6230_s3] sm:$0xff] }
 0x205   :  { %2141 = vmatprep.subr.bf16.mxu1 %v4554_v28  ;;  %v4021_v28 = vpack.c.bf16 %v2537_v25, %v2534_v23  ;;  %v2582_v23 = vld [vmem:[%s6230_s3 + $0x188] sm:$0xff] }
 0x207   :  { %4022 = vmatprep.subr.bf16.mxu0 %v4021_v28 }
 0x208   :  { %2142 = vmatpush1.bf16.msra.mxu1 %v4552_v30 }
 0x209   :  { %2143 = vmatprep.subr.bf16.mxu1 %v4557_v31 }
 0x20a   :  { %2129 = vmatmul.mubr.bf16.gmra.mrb[8].mxu1 %v5219_v24  ;;  %v4566_v24 = vld [vmem:[%s6229_s2 + $0x4fc] ss:$12 sps:$4 sm:$0xff]  }
 0x20b   :  { %2171 = vmatprep.mubr.bf16.mxu1 %v5227_v26  ;;  %v4564_v26 = vld [vmem:[%s6229_s2 + $0x4f8] ss:$12 sps:$4 sm:$0xff]  }
 0x20c   :  { %2144 = vmatpush1.bf16.msra.mxu1 %v4555_v6  ;;  %v2539_v6 = vld [vmem:[%s6230_s3 + $0x30] sm:$0xff] }
 0x20d   :  { %2145 = vmatprep.subr.bf16.mxu1 %v4560_v9  ;;  %v2542_v9 = vld [vmem:[%s6230_s3 + $0x48] sm:$0xff] }
 0x210   :  { %2146 = vmatpush1.bf16.msra.mxu1 %v4558_v32  ;;  %v2546_v32 = vld [vmem:[%s6230_s3 + $0x68] sm:$0xff] }
 0x211   :  { %2147 = vmatprep.subr.bf16.mxu1 %v4563_v33  ;;  %v2549_v33 = vld [vmem:[%s6230_s3 + $0x80] sm:$0xff] }
 0x214   :  { %2148 = vmatpush1.bf16.msra.mxu1 %v4561_v34  ;;  %v4027_v34 = vpack.c.bf16 %v2542_v9, %v2539_v6 }
 0x215   :  { %2149 = vmatprep.subr.bf16.mxu1 %v4566_v24  ;;  %v4029_v24 = vpack.c.bf16 %v2549_v33, %v2546_v32 }
 0x218   :  { %2150 = vmatpush1.bf16.msra.mxu1 %v4564_v26  ;;  %v2545_v26 = vld [vmem:[%s6230_s3 + $0x60] sm:$0xff] }
 0x219   :  { %2151 = vmatprep.subr.bf16.mxu1 %v4569_v35  ;;  %v2548_v35 = vld [vmem:[%s6230_s3 + $0x78] sm:$0xff] }
 0x21c   :  { %2152 = vmatpush1.bf16.msra.mxu1 %v4567_v36  ;;  %v2552_v36 = vld [vmem:[%s6230_s3 + $0x98] sm:$0xff] }
 0x21d   :  { %2153 = vmatprep.subr.bf16.mxu1 %v4572_v37  ;;  %v2555_v37 = vld [vmem:[%s6230_s3 + $0xb0] sm:$0xff] }
 0x220   :  { %2154 = vmatpush1.bf16.msra.mxu1 %v4570_v38  ;;  %v4031_v38 = vpack.c.bf16 %v2548_v35, %v2545_v26 }
 0x221   :  { %2155 = vmatprep.subr.bf16.mxu1 %v4575_v39 }
 0x224   :  { %2156 = vmatpush1.bf16.msra.mxu1 %v4573_v40  ;;  %v4033_v40 = vpack.c.bf16 %v2555_v37, %v2552_v36 }
 0x225   :  { %2157 = vmatprep.subr.bf16.mxu1 %v4578_v41  ;;  %v2551_v41 = vld [vmem:[%s6230_s3 + $0x90] sm:$0xff] }
 0x228   :  { %2158 = vmatpush1.bf16.msra.mxu1 %v4576_v42  ;;  %v2554_v42 = vld [vmem:[%s6230_s3 + $0xa8] sm:$0xff] }
 0x229   :  { %2159 = vmatprep.subr.bf16.mxu1 %v4581_v43 }
 0x22c   :  { %2160 = vmatpush1.bf16.msra.mxu1 %v4579_v44  ;;  %v2558_v44 = vld [vmem:[%s6230_s3 + $0xc8] sm:$0xff] }
 0x22d   :  { %2161 = vmatprep.subr.bf16.mxu1 %v4584_v45  ;;  %v2561_v45 = vld [vmem:[%s6230_s3 + $0xe0] sm:$0xff] }
 0x230   :  { %2162 = vmatpush1.bf16.msra.mxu1 %v4582_v46 }
 0x231   :  { %2163 = vmatprep.subr.bf16.mxu1 %v4587_v47 }
 0x234   :  { %2164 = vmatpush1.bf16.msra.mxu1 %v4585_v48 }
 0x235   :  { %2165 = vmatprep.subr.bf16.mxu1 %v4590_v49  ;;  %v4035_v49 = vpack.c.bf16 %v2554_v42, %v2551_v41 }
 0x238   :  { %2166 = vmatpush1.bf16.msra.mxu1 %v4588_v50 }
 0x239   :  { %2167 = vmatprep.subr.bf16.mxu1 %v4593_v51 }
 0x23c   :  { %2168 = vmatpush1.bf16.msra.mxu1 %v4591_v52  ;;  %v4037_v52 = vpack.c.bf16 %v2561_v45, %v2558_v44  ;;  %v2591_v44 = vld [vmem:[%s6230_s3 + $0x1d0] sm:$0xff] }
 0x23d   :  { %2169 = vmatprep.subr.bf16.mxu1 %v4596_v53  ;;  %v2557_v53 = vld [vmem:[%s6230_s3 + $0xc0] sm:$0xff] }
 0x240   :  { %2170 = vmatpush1.bf16.msra.mxu1 %v4594_v55  ;;  %v2560_v55 = vld [vmem:[%s6230_s3 + $0xd8] sm:$0xff] }
 0x241   :  { %2192 = vmatprep.subr.bf16.mxu1 %v4599_v56  ;;  %v2564_v56 = vld [vmem:[%s6230_s3 + $0xf8] sm:$0xff] }
 0x243   :  { %2172 = vmatmul.mubr.bf16.vlgmr.msra.gmra.mrb[4].mxu1 %v5300_v59  ;;  %v4608_v59 = vld [vmem:[%s6229_s2 + $0x64c] ss:$12 sps:$4 sm:$0xff]  }
 0x244   :  { %2181 = vmatprep.mubr.bf16.mxu1 %v5304_v60  ;;  %2193 = vmatpush1.bf16.msra.mxu1 %v4597_v57  ;;  %v4606_v60 = vld [vmem:[%s6229_s2 + $0x648] ss:$12 sps:$4 sm:$0xff]  }
 0x245   :  { %2194 = vmatprep.subr.bf16.mxu1 %v4602_v58  ;;  %v2567_v57 = vld [vmem:[%s6230_s3 + $0x110] sm:$0xff] }
 0x248   :  { %2195 = vmatpush1.bf16.msra.mxu1 %v4600_v61  ;;  %v4039_v61 = vpack.c.bf16 %v2560_v55, %v2557_v53 }
 0x249   :  { %2196 = vmatprep.subr.bf16.mxu1 %v4605_v62 }
 0x24b   :  { %2182 = vmatmul.mubr.bf16.gmra.mrb[8].mxu1 %v5326_v10 }
 0x24c   :  { %2197 = vmatpush1.bf16.msra.mxu1 %v4603_v63  ;;  %2224 = vmatprep.mubr.bf16.mxu1 %v4663_v54  ;;  %v4041_v63 = vpack.c.bf16 %v2567_v57, %v2564_v56  ;;  %v2594_v56 = vld [vmem:[%s6230_s3 + $0x1e8] sm:$0xff]  ;;  %v2597_v57 = vld [vmem:[%s6230_s3 + $0x200] sm:$0xff] }
 0x24d   :  { %2198 = vmatprep.subr.bf16.mxu1 %v4608_v59  ;;  %v2563_v59 = vld [vmem:[%s6230_s3 + $0xf0] sm:$0xff] }
 0x250   :  { %2199 = vmatpush1.bf16.msra.mxu1 %v4606_v60  ;;  %v2566_v60 = vld [vmem:[%s6230_s3 + $0x108] sm:$0xff] }
 0x251   :  { %2200 = vmatprep.subr.bf16.mxu1 %v4611_v0 }
 0x254   :  { %2201 = vmatpush1.bf16.msra.mxu1 %v4609_v1  ;;  %v3757_v4 = vpop.f32.mrb[8].mxu0  ;;  %v2570_v1 = vld [vmem:[%s6230_s3 + $0x128] sm:$0xff] }
 0x255   :  { %2202 = vmatprep.subr.bf16.mxu1 %v4614_v2  ;;  %v3758_v5 = vpop.f32.mrb[9].mxu0  ;;  %v2573_v2 = vld [vmem:[%s6230_s3 + $0x140] sm:$0xff] }
 0x256   :  { %v5517_v10 = vadd.f32 %v3758_v5, %v3757_v4  ;;  %v3760_v7 = vpop.f32.mrb[10].mxu0 }
 0x257   :  { %v3761_v13 = vpop.f32.mrb[11].mxu0 }
 0x258   :  { %2203 = vmatpush1.bf16.msra.mxu1 %v4612_v3  ;;  %v5519_v14 = vadd.f32 %v3761_v13, %v3760_v7  ;;  %v4045_v13 = vpack.c.bf16 %v2573_v2, %v2570_v1 }
 0x259   :  { %2204 = vmatprep.subr.bf16.mxu1 %v4617_v8  ;;  %v4043_v8 = vpack.c.bf16 %v2566_v60, %v2563_v59 }
 0x25c   :  { %2205 = vmatpush1.bf16.msra.mxu1 %v4615_v11  ;;  %v3763_v17 = vpop.f32.mrb[12].mxu0  ;;  %v2572_v11 = vld [vmem:[%s6230_s3 + $0x138] sm:$0xff] }
 0x25d   :  { %2206 = vmatprep.subr.bf16.mxu1 %v4620_v15  ;;  %v3764_v18 = vpop.f32.mrb[13].mxu0  ;;  %v2576_v15 = vld [vmem:[%s6230_s3 + $0x158] sm:$0xff] }
 0x25e   :  { %v5530_v19 = vadd.f32 %v3764_v18, %v3763_v17  ;;  %v3766_v20 = vpop.f32.mrb[14].mxu0 }
 0x25f   :  { %v3767_v21 = vpop.f32.mrb[15].mxu0 }
 0x260   :  { %2207 = vmatpush1.bf16.msra.mxu1 %v4618_v16  ;;  %v5532_v22 = vadd.f32 %v3767_v21, %v3766_v20  ;;  %v2579_v16 = vld [vmem:[%s6230_s3 + $0x170] sm:$0xff]  ;;  %v2578_v21 = vld [vmem:[%s6230_s3 + $0x168] sm:$0xff] }
 0x261   :  { %4146 = vmatprep.subr.bf16.mxu1 %v4021_v28  ;;  %v2575_v20 = vld [vmem:[%s6230_s3 + $0x150] sm:$0xff]  ;;  %v2581_v28 = vld [vmem:[%s6230_s3 + $0x180] sm:$0xff] }
 0x262   :  { %v4051_v25 = vpack.c.bf16 %v2578_v21, %v2575_v20  ;;  %v2612_v20 = vld [vmem:[%s6230_s3 + $0x278] sm:$0xff]  ;;  %v2615_v21 = vld [vmem:[%s6230_s3 + $0x290] sm:$0xff] }
 0x263   :  { %2225 = vmatmul.mubr.bf16.vlgmr.msra.gmra.mrb[4].mxu1 %v5329_v12  ;;  %v2536_v12 = vld [vmem:[%s6230_s3 + $0x18] sm:$0xff] }
 0x264   :  { %2234 = vmatprep.mubr.bf16.mxu1 %v4663_v54  ;;  %v2540_v54 = vld [vmem:[%s6230_s3 + $0x38] sm:$0xff]  ;;  %v4023_v30 = vpack.c.bf16 %v2536_v12, %v2533_v27 }
 0x265   :  { %v2584_v12 = vld [vmem:[%s6230_s3 + $0x198] sm:$0xff] }
 0x266   :  { %4024 = vmatpush1.bf16.msra.mxu0 %v4023_v30  ;;  %4148 = vmatpush1.bf16.msra.mxu1 %v4023_v30 }
 0x26b   :  { %2235 = vmatmul.mubr.bf16.gmra.mrb[8].mxu1 %v5381_v29  ;;  %v2543_v29 = vld [vmem:[%s6230_s3 + $0x50] sm:$0xff] }
 0x26c   :  { %v4025_v31 = vpack.c.bf16 %v2543_v29, %v2540_v54  ;;  %v4055_v54 = vpack.c.bf16 %v2584_v12, %v2581_v28  ;;  %v2618_v28 = vld [vmem:[%s6230_s3 + $0x2a8] sm:$0xff]  ;;  %v2621_v12 = vld [vmem:[%s6230_s3 + $0x2c0] sm:$0xff] }
 0x26e   :  { %4026 = vmatprep.subr.bf16.mxu0 %v4025_v31  ;;  %4150 = vmatprep.subr.bf16.mxu1 %v4025_v31 }
 0x26f   :  { %4028 = vmatpush1.bf16.msra.mxu0 %v4027_v34  ;;  %4152 = vmatpush1.bf16.msra.mxu1 %v4027_v34 }
 0x270   :  { %4030 = vmatprep.subr.bf16.mxu0 %v4029_v24  ;;  %4154 = vmatprep.subr.bf16.mxu1 %v4029_v24 }
 0x273   :  { %4032 = vmatpush1.bf16.msra.mxu0 %v4031_v38  ;;  %4156 = vmatpush1.bf16.msra.mxu1 %v4031_v38 }
 0x274   :  { %v3785_v39 = vpop.f32.mrb[16].mxu0  ;;  %4034 = vmatprep.subr.bf16.mxu0 %v4033_v40  ;;  %4158 = vmatprep.subr.bf16.mxu1 %v4033_v40 }
 0x275   :  { %v3786_v43 = vpop.f32.mrb[17].mxu0 }
 0x276   :  { %v3787_v46 = vadd.f32 %v3786_v43, %v3785_v39  ;;  %v3788_v47 = vpop.f32.mrb[18].mxu0  ;;  %v2588_v43 = vld [vmem:[%s6230_s3 + $0x1b8] sm:$0xff] }
 0x277   :  { %v3789_v48 = vpop.f32.mrb[19].mxu0  ;;  %4036 = vmatpush1.bf16.msra.mxu0 %v4035_v49  ;;  %4160 = vmatpush1.bf16.msra.mxu1 %v4035_v49  ;;  %v2590_v49 = vld [vmem:[%s6230_s3 + $0x1c8] sm:$0xff] }
 0x278   :  { %v5592_v50 = vadd.f32 %v3787_v46, %v5517_v10  ;;  %v3790_v51 = vadd.f32 %v3789_v48, %v3788_v47  ;;  %4038 = vmatprep.subr.bf16.mxu0 %v4037_v52  ;;  %4162 = vmatprep.subr.bf16.mxu1 %v4037_v52  ;;  %v4057_v47 = vpack.c.bf16 %v2591_v44, %v2588_v43  ;;  %v2587_v48 = vld [vmem:[%s6230_s3 + $0x1b0] sm:$0xff] }
 0x27a   :  { %v2332_v58 = vadd.f32 %v3790_v51, %v5519_v14  ;;  %v2569_v14 = vld [vmem:[%s6230_s3 + $0x120] sm:$0xff]  ;;  %v4059_v51 = vpack.c.bf16 %v2590_v49, %v2587_v48 }
 0x27b   :  { %4040 = vmatpush1.bf16.msra.mxu0 %v4039_v61  ;;  %4164 = vmatpush1.bf16.msra.mxu1 %v4039_v61  ;;  %v4047_v18 = vpack.c.bf16 %v2572_v11, %v2569_v14  ;;  %v4061_v61 = vpack.c.bf16 %v2597_v57, %v2594_v56  ;;  %v4630_v57 = vld [vmem:[%s6227_s0 + $0x20] sm:$0xff] }
 0x27c   :  { %v3791_v62 = vpop.f32.mrb[20].mxu0  ;;  %4042 = vmatprep.subr.bf16.mxu0 %v4041_v63  ;;  %4166 = vmatprep.subr.bf16.mxu1 %v4041_v63 }
 0x27d   :  { %v3792_v0 = vpop.f32.mrb[21].mxu0 }
 0x27e   :  { %v3793_v3 = vadd.f32 %v3792_v0, %v3791_v62  ;;  %v3794_v4 = vpop.f32.mrb[22].mxu0  ;;  %v2596_v62 = vld [vmem:[%s6230_s3 + $0x1f8] sm:$0xff] }
 0x27f   :  { %v3795_v5 = vpop.f32.mrb[23].mxu0  ;;  %4044 = vmatpush1.bf16.msra.mxu0 %v4043_v8  ;;  %4168 = vmatpush1.bf16.msra.mxu1 %v4043_v8 }
 0x280   :  { %v2337_v10 = vadd.f32 %v3793_v3, %v5530_v19  ;;  %v3796_v7 = vadd.f32 %v3795_v5, %v3794_v4  ;;  %4046 = vmatprep.subr.bf16.mxu0 %v4045_v13  ;;  %v4049_v19 = vpack.c.bf16 %v2579_v16, %v2576_v15  ;;  %4170 = vmatprep.subr.bf16.mxu1 %v4045_v13  ;;  %v2600_v3 = vld [vmem:[%s6230_s3 + $0x218] sm:$0xff]  ;;  %v2603_v4 = vld [vmem:[%s6230_s3 + $0x230] sm:$0xff]  ;;  %v2602_v13 = vld [vmem:[%s6230_s3 + $0x228] sm:$0xff] }
 0x281   :  { %v2606_v15 = vld [vmem:[%s6230_s3 + $0x248] sm:$0xff]  ;;  %v2609_v16 = vld [vmem:[%s6230_s3 + $0x260] sm:$0xff] }
 0x282   :  { %v2340_v17 = vadd.f32 %v3796_v7, %v5532_v22  ;;  %v2585_v22 = vld [vmem:[%s6230_s3 + $0x1a0] sm:$0xff]  ;;  %v2599_v7 = vld [vmem:[%s6230_s3 + $0x210] sm:$0xff] }
 0x283   :  { %4048 = vmatpush1.bf16.msra.mxu0 %v4047_v18  ;;  %4172 = vmatpush1.bf16.msra.mxu1 %v4047_v18  ;;  %v4053_v27 = vpack.c.bf16 %v2585_v22, %v2582_v23  ;;  %v4067_v14 = vpack.c.bf16 %v2602_v13, %v2599_v7  ;;  %v4069_v18 = vpack.c.bf16 %v2609_v16, %v2606_v15  ;;  %v4635_v13 = vld [vmem:[%s6227_s0 + $0x38] sm:$0xff] }
 0x284   :  { %4050 = vmatprep.subr.bf16.mxu0 %v4049_v19  ;;  %4174 = vmatprep.subr.bf16.mxu1 %v4049_v19  ;;  %v2608_v19 = vld [vmem:[%s6230_s3 + $0x258] sm:$0xff]  ;;  %v4073_v22 = vpack.c.bf16 %v2615_v21, %v2612_v20  ;;  %v4637_v21 = vld [vmem:[%s6227_s0 + $0x50] sm:$0xff] }
 0x287   :  { %4052 = vmatpush1.bf16.msra.mxu0 %v4051_v25  ;;  %4176 = vmatpush1.bf16.msra.mxu1 %v4051_v25  ;;  %v2611_v25 = vld [vmem:[%s6230_s3 + $0x270] sm:$0xff] }
 0x288   :  { %4054 = vmatprep.subr.bf16.mxu0 %v4053_v27  ;;  %4178 = vmatprep.subr.bf16.mxu1 %v4053_v27  ;;  %v2614_v27 = vld [vmem:[%s6230_s3 + $0x288] sm:$0xff] }
 0x28b   :  { %4056 = vmatpush1.bf16.msra.mxu0 %v4055_v54  ;;  %4180 = vmatpush1.bf16.msra.mxu1 %v4055_v54  ;;  %v4075_v54 = vpack.c.bf16 %v2614_v27, %v2611_v25  ;;  %v4638_v27 = vld [vmem:[%s6227_s0 + $0x58] sm:$0xff] }
 0x28c   :  { %4058 = vmatprep.subr.bf16.mxu0 %v4057_v47  ;;  %4182 = vmatprep.subr.bf16.mxu1 %v4057_v47 }
 0x28f   :  { %4060 = vmatpush1.bf16.msra.mxu0 %v4059_v51  ;;  %4184 = vmatpush1.bf16.msra.mxu1 %v4059_v51 }
 0x290   :  { %4062 = vmatprep.subr.bf16.mxu0 %v4061_v61  ;;  %4186 = vmatprep.subr.bf16.mxu1 %v4061_v61  ;;  %v4631_v61 = vld [vmem:[%s6227_s0] sm:$0xff] }
 0x295   :  { %v3813_v29 = vpop.f32.mrb[24].mxu0 }
 0x296   :  { %v3814_v30 = vpop.f32.mrb[25].mxu0 }
 0x297   :  { %v3815_v31 = vadd.f32 %v3814_v30, %v3813_v29  ;;  %v3816_v6 = vpop.f32.mrb[26].mxu0  ;;  %v4077_v29 = vpack.c.bf16 %v2621_v12, %v2618_v28  ;;  %v2617_v30 = vld [vmem:[%s6230_s3 + $0x2a0] sm:$0xff] }
 0x298   :  { %v3817_v9 = vpop.f32.mrb[27].mxu0 }
 0x299   :  { %v2378_v32 = vadd.f32 %v3815_v31, %v5592_v50  ;;  %v3818_v33 = vadd.f32 %v3817_v9, %v3816_v6  ;;  %v2620_v31 = vld [vmem:[%s6230_s3 + $0x2b8] sm:$0xff]  ;;  %v2627_v9 = vld [vmem:[%s6230_s3 + $0x2f0] sm:$0xff] }
 0x29a   :  { %v2624_v6 = vld [vmem:[%s6230_s3 + $0x2d8] sm:$0xff] }
 0x29b   :  { %v2381_v34 = vadd.f32 %v3818_v33, %v2332_v58  ;;  %v2593_v58 = vld [vmem:[%s6230_s3 + $0x1e0] sm:$0xff] }
 0x29c   :  { %v4063_v59 = vpack.c.bf16 %v2596_v62, %v2593_v58 }
 0x29d   :  { %v3819_v24 = vpop.f32.mrb[28].mxu0 }
 0x29e   :  { %v3820_v26 = vpop.f32.mrb[29].mxu0  ;;  %4064 = vmatpush1.bf16.msra.mxu0 %v4063_v59  ;;  %4188 = vmatpush1.bf16.msra.mxu1 %v4063_v59  ;;  %v4632_v59 = vld [vmem:[%s6227_s0 + $0x8] sm:$0xff] }
 0x29f   :  { %v3821_v35 = vadd.f32 %v3820_v26, %v3819_v24  ;;  %v3822_v36 = vpop.f32.mrb[30].mxu0  ;;  %v2623_v24 = vld [vmem:[%s6230_s3 + $0x2d0] sm:$0xff]  ;;  %v2626_v26 = vld [vmem:[%s6230_s3 + $0x2e8] sm:$0xff] }
 0x2a0   :  { %v3823_v37 = vpop.f32.mrb[31].mxu0  ;;  %v4083_v43 = vpack.c.bf16 %v2626_v26, %v2623_v24 }
 0x2a1   :  { %v2386_v38 = vadd.f32 %v3821_v35, %v2337_v10  ;;  %v3824_v39 = vadd.f32 %v3823_v37, %v3822_v36  ;;  %v4065_v10 = vpack.c.bf16 %v2603_v4, %v2600_v3  ;;  %v2630_v37 = vld [vmem:[%s6230_s3 + $0x308] sm:$0xff] }
 0x2a3   :  { %v2389_v40 = vadd.f32 %v3824_v39, %v2340_v17  ;;  %4066 = vmatprep.subr.bf16.mxu0 %v4065_v10  ;;  %4190 = vmatprep.subr.bf16.mxu1 %v4065_v10  ;;  %v2605_v17 = vld [vmem:[%s6230_s3 + $0x240] sm:$0xff] }
 0x2a4   :  { %4068 = vmatpush1.bf16.msra.mxu0 %v4067_v14  ;;  %4192 = vmatpush1.bf16.msra.mxu1 %v4067_v14  ;;  %v4071_v23 = vpack.c.bf16 %v2608_v19, %v2605_v17  ;;  %v4636_v17 = vld [vmem:[%s6227_s0 + $0x48] sm:$0xff] }
 0x2a5   :  { %4070 = vmatprep.subr.bf16.mxu0 %v4069_v18  ;;  %4194 = vmatprep.subr.bf16.mxu1 %v4069_v18 }
 0x2a8   :  { %4072 = vmatpush1.bf16.msra.mxu0 %v4071_v23  ;;  %4196 = vmatpush1.bf16.msra.mxu1 %v4071_v23 }
 0x2a9   :  { %4074 = vmatprep.subr.bf16.mxu0 %v4073_v22  ;;  %4198 = vmatprep.subr.bf16.mxu1 %v4073_v22 }
 0x2ac   :  { %4076 = vmatpush1.bf16.msra.mxu0 %v4075_v54  ;;  %4200 = vmatpush1.bf16.msra.mxu1 %v4075_v54 }
 0x2ad   :  { %4078 = vmatprep.subr.bf16.mxu0 %v4077_v29  ;;  %4202 = vmatprep.subr.bf16.mxu1 %v4077_v29 }
 0x2b6   :  { %v3841_v41 = vpop.f32.mrb[32].mxu0 }
 0x2b7   :  { %v3842_v42 = vpop.f32.mrb[33].mxu0 }
 0x2b8   :  { %v3843_v45 = vadd.f32 %v3842_v42, %v3841_v41  ;;  %v3844_v46 = vpop.f32.mrb[34].mxu0 }
 0x2b9   :  { %v3845_v50 = vpop.f32.mrb[35].mxu0 }
 0x2ba   :  { %v3846_v52 = vadd.f32 %v3845_v50, %v3844_v46  ;;  %v5664_v53 = vadd.f32 %v3843_v45, %v2378_v32  ;;  %v4079_v32 = vpack.c.bf16 %v2620_v31, %v2617_v30  ;;  %v4627_v50 = vld [vmem:[%s6227_s0 + $0x28] sm:$0xff] }
 0x2bc   :  { %v5666_v55 = vadd.f32 %v3846_v52, %v2381_v34  ;;  %v4081_v34 = vpack.c.bf16 %v2627_v9, %v2624_v6  ;;  %4080 = vmatpush1.bf16.msra.mxu0 %v4079_v32  ;;  %4204 = vmatpush1.bf16.msra.mxu1 %v4079_v32  ;;  %v4628_v52 = vld [vmem:[%s6227_s0 + $0x18] sm:$0xff] }
 0x2be   :  { %v3847_v63 = vpop.f32.mrb[36].mxu0  ;;  %4082 = vmatprep.subr.bf16.mxu0 %v4081_v34  ;;  %4206 = vmatprep.subr.bf16.mxu1 %v4081_v34 }
 0x2bf   :  { %v3848_v60 = vpop.f32.mrb[37].mxu0 }
 0x2c0   :  { %v3849_v0 = vadd.f32 %v3848_v60, %v3847_v63  ;;  %v3850_v1 = vpop.f32.mrb[38].mxu0  ;;  %4084 = vmatpush1.bf16.msra.mxu0 %v4083_v43  ;;  %4208 = vmatpush1.bf16.msra.mxu1 %v4083_v43 }
 0x2c1   :  { %v3851_v2 = vpop.f32.mrb[39].mxu0 }
 0x2c2   :  { %v3852_v5 = vadd.f32 %v3851_v2, %v3850_v1  ;;  %v2435_v8 = vadd.f32 %v3849_v0, %v2386_v38  ;;  %v2633_v38 = vld [vmem:[%s6230_s3 + $0x320] sm:$0xff]  ;;  %v4633_v2 = vld [vmem:[%s6227_s0 + $0x30] sm:$0xff] }
 0x2c3   :  { %v4085_v45 = vpack.c.bf16 %v2633_v38, %v2630_v37  ;;  %v2629_v37 = vld [vmem:[%s6230_s3 + $0x300] sm:$0xff]  ;;  %v2632_v38 = vld [vmem:[%s6230_s3 + $0x318] sm:$0xff] }
 0x2c4   :  { %v2438_v11 = vadd.f32 %v3852_v5, %v2389_v40  ;;  %v4634_v5 = vld [vmem:[%s6227_s0 + $0x40] sm:$0xff]  ;;  %v5836_v43 = vpack.c.bf16 %v2632_v38, %v2629_v37  ;;  %v2556_v37 = vld [vmem:[%s6230_s3 + $0xb8] sm:$0xff]  ;;  %v2607_v38 = vld [vmem:[%s6230_s3 + $0x250] sm:$0xff] }
 0x2c5   :  { %4086 = vmatprep.subr.bf16.mxu0 %v4085_v45  ;;  %4210 = vmatprep.subr.bf16.mxu1 %v4085_v45 }
 0x2d6   :  { %v3981_v33 = vpop.f32.mrb[40].mxu0 }
 0x2d7   :  { %v2484_v35 = vadd.f32 %v3981_v33, %v2435_v8  ;;  %v2475_v36 = vpop.f32.mrb[41].mxu0 }
 0x2d8   :  { %v2476_v39 = vadd.f32 %v2475_v36, %v5664_v53  ;;  %v3982_v40 = vpop.f32.mrb[42].mxu0 }
 0x2d9   :  { %v2487_v41 = vadd.f32 %v3982_v40, %v2438_v11  ;;  %v2478_v42 = vpop.f32.mrb[43].mxu0  ;;  %v5790_v8 = vadd.f32 %v4634_v5, %v2484_v35  ;;  %v2636_v40 = vld [vmem:[%s6230_s3 + $0x338] sm:$0xff] }
 0x2da   :  { %v2479_v44 = vadd.f32 %v2478_v42, %v5666_v55  ;;  %v4629_v55 = vld [vmem:[%s6227_s0 + $0x10] sm:$0xff] }
 0x2db   :  { %v5761_v56 = vadd.f32 %v4629_v55, %v2476_v39  ;;  %v2523_v25 = vsel %vm206_vm0, %v5790_v8, 0.0  ;;  %v5819_v28 = vadd.f32 %v4638_v27, %v2487_v41  ;;  %v2639_v41 = vld [vmem:[%s6230_s3 + $0x350] sm:$0xff]  ;;  %v4665_v55 = vmov 0.0  }
 0x2dc   :  { %v5751_v51 = vadd.f32 %v4627_v50, %v2479_v44  ;;  %v2645_v50 = vld [vmem:[%s6230_s3 + $0x380] sm:$0xff] }
 0x2dd   :  { %v2520_v10 = vsel %vm206_vm0, %v5761_v56, 0.0  ;;  %v2525_v6 = vsel %vm206_vm0, %v5819_v28, 0.0 }
 0x2de   :  { %v2521_v63 = vsel %vm206_vm0, %v5751_v51, 0.0 }
 0x2df   :  { %v2522_v15 = vadd.f32 %v2521_v63, %v2520_v10  ;;  %v2641_v63 = vld [vmem:[%s6230_s3 + $0x360] sm:$0xff]  ;;  %v2647_v10 = vld [vmem:[%s6230_s3 + $0x390] sm:$0xff] }
 0x2e1   :  { %v2524_v54 = vadd.f32 %v2523_v25, %v2522_v15 }
 0x2e3   :  { %v2526_v32 = vadd.f32 %v2525_v6, %v2524_v54  ;;  %v2541_v54 = vld [vmem:[%s6230_s3 + $0x40] sm:$0xff] }
 0x2e5   :  { %v2527_v35 = vrot.slane %v2526_v32, 4 }
 0x2e7   :  { %v2528_v44 = vadd.f32 %v2527_v35, %v2526_v32  ;;  %v2547_v32 = vld [vmem:[%s6230_s3 + $0x70] sm:$0xff] }
 0x336   :  { %v2226_v46 = vpop.f32.mrb[4].mxu1 }
 0x337   :  { %v2228_v47 = vpop.f32.mrb[5].mxu1  ;;  %v5771_v62 = vadd.f32 %v4631_v61, %v2226_v46  ;;  %v5840_v46 = vpack.c.bf16 %v2639_v41, %v2636_v40 }
 0x338   :  { %v2230_v48 = vpop.f32.mrb[6].mxu1  ;;  %v5778_v60 = vadd.f32 %v4632_v59, %v2228_v47  ;;  %v2635_v47 = vld [vmem:[%s6230_s3 + $0x330] sm:$0xff]  ;;  %v2644_v59 = vld [vmem:[%s6230_s3 + $0x378] sm:$0xff] }
 0x339   :  { %v2232_v49 = vpop.f32.mrb[7].mxu1  ;;  %v5756_v53 = vadd.f32 %v4628_v52, %v2230_v48  ;;  %v2638_v48 = vld [vmem:[%s6230_s3 + $0x348] sm:$0xff] }
 0x33a   :  { %v5766_v58 = vadd.f32 %v4630_v57, %v2232_v49  ;;  %v2642_v49 = vld [vmem:[%s6230_s3 + $0x368] sm:$0xff]  ;;  %v5856_v52 = vpack.c.bf16 %v2638_v48, %v2635_v47  ;;  %v2529_v57 = vrot.slane %v2528_v44, 2  ;;  %v2613_v47 = vld [vmem:[%s6230_s3 + $0x280] sm:$0xff]  ;;  %v2616_v48 = vld [vmem:[%s6230_s3 + $0x298] sm:$0xff] }
 0x33b   :  { %v2502_v1 = vadd.f32 %v5756_v53, %v5771_v62  ;;  %v5860_v61 = vpack.c.bf16 %v2645_v50, %v2642_v49  ;;  %v4121_v50 = vpack.c.bf16 %v2616_v48, %v2613_v47 }
 0x33c   :  { %v2511_v7 = vadd.f32 %v5766_v58, %v5778_v60 }
 0x33e   :  { %v2236_v0 = vpop.f32.mrb[8].mxu1 }
 0x33f   :  { %v5785_v3 = vadd.f32 %v4633_v2, %v2236_v0  ;;  %v2238_v4 = vpop.f32.mrb[9].mxu1  ;;  %v2648_v0 = vld [vmem:[%s6230_s3 + $0x398] sm:$0xff]  ;;  %v5875_v2 = vpack.c.bf16 %v2644_v59, %v2641_v63  ;;  %v2619_v59 = vld [vmem:[%s6230_s3 + $0x2b0] sm:$0xff] }
 0x340   :  { %v5799_v14 = vadd.f32 %v4635_v13, %v2238_v4  ;;  %v2240_v11 = vpop.f32.mrb[10].mxu1  ;;  %v2530_v4 = vadd.f32 %v2529_v57, %v2528_v44  ;;  %v2583_v13 = vld [vmem:[%s6230_s3 + $0x190] sm:$0xff]  ;;  %v2562_v44 = vld [vmem:[%s6230_s3 + $0xe8] sm:$0xff]  ;;  %v2565_v57 = vld [vmem:[%s6230_s3 + $0x100] sm:$0xff] }
 0x341   :  { %v2503_v16 = vadd.f32 %v2502_v1, %v5785_v3  ;;  %v5805_v18 = vadd.f32 %v4636_v17, %v2240_v11  ;;  %v2242_v19 = vpop.f32.mrb[11].mxu1  ;;  %v2651_v1 = vld [vmem:[%s6230_s3 + $0x3b0] sm:$0xff]  ;;  %v2586_v11 = vld [vmem:[%s6230_s3 + $0x1a8] sm:$0xff]  ;;  %v2568_v63 = vld [vmem:[%s6230_s3 + $0x118] sm:$0xff] }
 0x342   :  { %v2512_v20 = vadd.f32 %v2511_v7, %v5799_v14  ;;  %v5811_v23 = vadd.f32 %v4637_v21, %v2242_v19  ;;  %v5878_v5 = vpack.c.bf16 %v2651_v1, %v2648_v0  ;;  %v2650_v7 = vld [vmem:[%s6230_s3 + $0x3a8] sm:$0xff]  ;;  %v5896_v17 = vpack.c.bf16 %v2586_v11, %v2583_v13  ;;  %v2535_v19 = vld [vmem:[%s6230_s3 + $0x10] sm:$0xff]  ;;  %v2589_v21 = vld [vmem:[%s6230_s3 + $0x1c0] sm:$0xff] }
 0x343   :  { %v2504_v22 = vadd.f32 %v2503_v16, %v5805_v18  ;;  %v5893_v15 = vpack.c.bf16 %v2650_v7, %v2647_v10  ;;  %v2531_v16 = vrot.slane %v2530_v4, 1  ;;  %v2622_v0 = vld [vmem:[%s6230_s3 + $0x2c8] sm:$0xff]  ;;  %v4123_v1 = vpack.c.bf16 %v2568_v63, %v2565_v57  ;;  %v2571_v10 = vld [vmem:[%s6230_s3 + $0x130] sm:$0xff]  ;;  %v2625_v13 = vld [vmem:[%s6230_s3 + $0x2e0] sm:$0xff] }
 0x344   :  { %v2513_v12 = vadd.f32 %v2512_v20, %v5811_v23  ;;  %v2538_v20 = vld [vmem:[%s6230_s3 + $0x28] sm:$0xff]  ;;  %v2628_v11 = vld [vmem:[%s6230_s3 + $0x2f8] sm:$0xff] }
 0x345   :  { %v2505_v29 = vrot.slane %v2504_v22, 4  ;;  %v5911_v25 = vpack.c.bf16 %v2538_v20, %v2535_v19  ;;  %v5913_v27 = vadd.f32 %v2531_v16, %v2530_v4  ;;  %v4125_v4 = vpack.c.bf16 %v2622_v0, %v2619_v59  ;;  %v2574_v7 = vld [vmem:[%s6230_s3 + $0x148] sm:$0xff]  ;;  %v2577_v20 = vld [vmem:[%s6230_s3 + $0x160] sm:$0xff] }
 0x346   :  { %v2514_v30 = vrot.slane %v2513_v12, 4  ;;  %v4127_v16 = vpack.c.bf16 %v2574_v7, %v2571_v10  ;;  %v4129_v19 = vpack.c.bf16 %v2628_v11, %v2625_v13 }
 0x347   :  { %v2506_v31 = vadd.f32 %v2505_v29, %v2504_v22  ;;  %v2592_v22 = vld [vmem:[%s6230_s3 + $0x1d8] sm:$0xff] }
 0x348   :  { %v2515_v9 = vadd.f32 %v2514_v30, %v2513_v12  ;;  %v5916_v12 = vpack.c.bf16 %v2592_v22, %v2589_v21  ;;  %v2544_v29 = vld [vmem:[%s6230_s3 + $0x58] sm:$0xff]  ;;  %v2595_v30 = vld [vmem:[%s6230_s3 + $0x1f0] sm:$0xff] }
 0x349   :  { %v2507_v33 = vrot.slane %v2506_v31, 2  ;;  %v5933_v6 = vpack.c.bf16 %v2544_v29, %v2541_v54  ;;  %v2580_v21 = vld [vmem:[%s6230_s3 + $0x178] sm:$0xff]  ;;  %v2631_v54 = vld [vmem:[%s6230_s3 + $0x310] sm:$0xff]  ;;  %v2634_v29 = vld [vmem:[%s6230_s3 + $0x328] sm:$0xff] }
 0x34a   :  { %v2516_v34 = vrot.slane %v2515_v9, 2  ;;  %v4131_v22 = vpack.c.bf16 %v2580_v21, %v2577_v20 }
 0x34b   :  { %v2508_v24 = vadd.f32 %v2507_v33, %v2506_v31  ;;  %v2598_v31 = vld [vmem:[%s6230_s3 + $0x208] sm:$0xff] }
 0x34c   :  { %v2517_v26 = vadd.f32 %v2516_v34, %v2515_v9  ;;  %v5936_v9 = vpack.c.bf16 %v2598_v31, %v2595_v30  ;;  %v2550_v33 = vld [vmem:[%s6230_s3 + $0x88] sm:$0xff]  ;;  %v2601_v34 = vld [vmem:[%s6230_s3 + $0x220] sm:$0xff]  ;;  %v6024_v30 = vpack.c.bf16 %v2634_v29, %v2631_v54  ;;  %v4666_v31 = vmov 0.0|0.0  }
 0x34d   :  { %v2509_v36 = vrot.slane %v2508_v24, 1 }
 0x34e   :  { %v2518_v39 = vrot.slane %v2517_v26, 1 }
 0x34f   :  { %v5838_v45 = vadd.f32 %v2509_v36, %v2508_v24  ;;  %v2604_v24 = vld [vmem:[%s6230_s3 + $0x238] sm:$0xff]  ;;  %v2553_v36 = vld [vmem:[%s6230_s3 + $0xa0] sm:$0xff] }
 0x350   :  { %v2519_v42 = vadd.f32 %v2518_v39, %v2517_v26  ;;  %v5951_v26 = vpack.c.bf16 %v2550_v33, %v2547_v32  ;;  %v5954_v35 = vpack.c.bf16 %v2604_v24, %v2601_v34  ;;  %v2610_v39 = vld [vmem:[%s6230_s3 + $0x268] sm:$0xff]  ;;  %v5969_v40 = vpack.c.bf16 %v2556_v37, %v2553_v36  ;;  %v2637_v32 = vld [vmem:[%s6230_s3 + $0x340] sm:$0xff]  ;;  %v2640_v33 = vld [vmem:[%s6230_s3 + $0x358] sm:$0xff] }
 0x351   :  { %v5972_v41 = vpack.c.bf16 %v2610_v39, %v2607_v38  ;;  %v6035_v34 = vpack.c.bf16 %v2640_v33, %v2637_v32  ;;  %v2643_v24 = vld [vmem:[%s6230_s3 + $0x370] sm:$0xff]  ;;  %v2646_v36 = vld [vmem:[%s6230_s3 + $0x388] sm:$0xff]  ;;  %v2649_v37 = vld [vmem:[%s6230_s3 + $0x3a0] sm:$0xff] }
 0x352   :  { %2720 = vmatprep.mubr.f32.mxu0 %v2519_v42  ;;  %v2652_v38 = vld [vmem:[%s6230_s3 + $0x3b8] sm:$0xff] }
 0x353   :  { %2721 = vmatmul.mubr.f32.vlgmr.msra.gmra.mrb[44].mxu0 %v5838_v45  ;;  %v6057_v39 = vpack.c.bf16 %v2652_v38, %v2649_v37 }
 0x354   :  { %4088 = vmatpush1.bf16.msra.mxu0 %v5836_v43  ;;  %2791 = vmatprep.mubr.f32.mxu0 %v4665_v55 }
 0x355   :  { %4090 = vmatprep.subr.bf16.mxu0 %v5840_v46 }
 0x358   :  { %4092 = vmatpush1.bf16.msra.mxu0 %v5856_v52 }
 0x359   :  { %4094 = vmatprep.subr.bf16.mxu0 %v5860_v61 }
 0x35c   :  { %4096 = vmatpush1.bf16.msra.mxu0 %v5875_v2 }
 0x35d   :  { %4098 = vmatprep.subr.bf16.mxu0 %v5878_v5 }
 0x360   :  { %4100 = vmatpush1.bf16.msra.mxu0 %v5893_v15 }
 0x361   :  { %4102 = vmatprep.subr.bf16.mxu0 %v5896_v17 }
 0x363   :  { %3703 = vmatmul.mubr.msk.f32.vlgmr.msra.gmra.mrb[44].mxu0 %vm206_vm0, %v5913_v27 }
 0x364   :  { %4104 = vmatpush3.bf16.msra.mxu0 %v5911_v25  ;;  %2862 = vmatprep.mubr.f32.mxu0 %v2519_v42  ;;  %v2559_v42 = vld [vmem:[%s6230_s3 + $0xd0] sm:$0xff] }
 0x365   :  { %4106 = vmatprep.subr.bf16.mxu0 %v5916_v12  ;;  %v4119_v49 = vpack.c.bf16 %v2562_v44, %v2559_v42 }
 0x368   :  { %4108 = vmatpush3.bf16.msra.mxu0 %v5933_v6 }
 0x369   :  { %4110 = vmatprep.subr.bf16.mxu0 %v5936_v9 }
 0x36c   :  { %4112 = vmatpush3.bf16.msra.mxu0 %v5951_v26 }
 0x36d   :  { %4114 = vmatprep.subr.bf16.mxu0 %v5954_v35 }
 0x370   :  { %4116 = vmatpush3.bf16.msra.mxu0 %v5969_v40 }
 0x371   :  { %4118 = vmatprep.subr.bf16.mxu0 %v5972_v41 }
 0x374   :  { %4120 = vmatpush3.bf16.msra.mxu0 %v4119_v49 }
 0x375   :  { %4122 = vmatprep.subr.bf16.mxu0 %v4121_v50 }
 0x378   :  { %4124 = vmatpush3.bf16.msra.mxu0 %v4123_v1 }
 0x379   :  { %4126 = vmatprep.subr.bf16.mxu0 %v4125_v4 }
 0x37c   :  { %4128 = vmatpush3.bf16.msra.mxu0 %v4127_v16 }
 0x37d   :  { %4130 = vmatprep.subr.bf16.mxu0 %v4129_v19 }
 0x380   :  { %4132 = vmatpush3.bf16.msra.mxu0 %v4131_v22 }
 0x381   :  { %4133 = vmatprep.subr.bf16.mxu0 %v4666_v31 }
 0x383   :  { %2863 = vmatmul.mubr.f32.vlgmr.msra.gmra.mrb[46].mxu0 %v5838_v45  ;;  %v6047_v45 = vpack.c.bf16 %v2646_v36, %v2643_v24 }
 0x384   :  { %4135 = vmatpush3.bf16.msra.mxu0 %v6024_v30  ;;  %3999 = vmatprep.mubr.msk.f32.mxu0 %vm4667_vm10, %v4665_v55 }
 0x385   :  { %4136 = vmatprep.subr.bf16.mxu0 %v4666_v31 }
 0x388   :  { %4138 = vmatpush3.bf16.msra.mxu0 %v6035_v34 }
 0x389   :  { %4139 = vmatprep.subr.bf16.mxu0 %v4666_v31 }
 0x38c   :  { %4141 = vmatpush3.bf16.msra.mxu0 %v6047_v45 }
 0x38d   :  { %4142 = vmatprep.subr.bf16.mxu0 %v4666_v31 }
 0x390   :  { %4144 = vmatpush3.bf16.msra.mxu0 %v6057_v39 }
 0x391   :  { %4226 = vmatprep.subr.bf16.mxu0 %v5896_v17  ;;  %v2941_v17 = vlaneseq }
 0x393   :  { %4000 = vmatmul.mubr.msk.f32.vlgmr.msra.gmra.mrb[48].mxu0 %vm206_vm0, %v5913_v27 }
 0x394   :  { %4228 = vmatpush3.bf16.msra.mxu0 %v5911_v25  ;;  %v6073_v25 = vshrl.u32 %v2941_v17, 7 }
 0x395   :  { %4230 = vmatprep.subr.bf16.mxu0 %v5916_v12 }
 0x396   :  { %v6076_v27 = vsub.s32 0, %v6073_v25 }
 0x398   :  { %4232 = vmatpush3.bf16.msra.mxu0 %v5933_v6 }
 0x399   :  { %4234 = vmatprep.subr.bf16.mxu0 %v5936_v9 }
 0x39c   :  { %4236 = vmatpush3.bf16.msra.mxu0 %v5951_v26 }
 0x39d   :  { %4238 = vmatprep.subr.bf16.mxu0 %v5954_v35 }
 0x3a0   :  { %4240 = vmatpush3.bf16.msra.mxu0 %v5969_v40 }
 0x3a1   :  { %4242 = vmatprep.subr.bf16.mxu0 %v5972_v41 }
 0x3a4   :  { %4244 = vmatpush3.bf16.msra.mxu0 %v4119_v49 }
 0x3a5   :  { %4246 = vmatprep.subr.bf16.mxu0 %v4121_v50 }
 0x3a8   :  { %4248 = vmatpush3.bf16.msra.mxu0 %v4123_v1 }
 0x3a9   :  { %4250 = vmatprep.subr.bf16.mxu0 %v4125_v4 }
 0x3ac   :  { %4252 = vmatpush3.bf16.msra.mxu0 %v4127_v16 }
 0x3ad   :  { %4254 = vmatprep.subr.bf16.mxu0 %v4129_v19 }
 0x3b0   :  { %4256 = vmatpush3.bf16.msra.mxu0 %v4131_v22 }
 0x3b1   :  { %4257 = vmatprep.subr.bf16.mxu0 %v4666_v31 }
 0x436   :  { %v2793_v12 = vpop.f32.mrb[44].mxu0 }
 0x437   :  { %v2938_v6 = vmul.f32 0.001953125, %v2793_v12  ;;  %v2795_v9 = vpop.f32.mrb[45].mxu0 }
 0x438   :  { %v2939_v26 = vmul.f32 0.001953125, %v2795_v9 }
 0x439   :  { %v2944_v35 = vrot.slane %v2938_v6, %v6076_v27 }
 0x43a   :  { %v2948_v40 = vrot.slane %v2939_v26, %v6076_v27 }
 0x43b   :  { %v6081_v41 = vsub.f32 %v5771_v62, %v2944_v35  ;;  %v6084_v42 = vsub.f32 %v5756_v53, %v2944_v35  ;;  %v6087_v44 = vsub.f32 %v5785_v3, %v2944_v35  ;;  %v6099_v50 = vsub.f32 %v5805_v18, %v2944_v35 }
 0x43c   :  { %v6090_v47 = vsub.f32 %v5778_v60, %v2948_v40  ;;  %v6093_v48 = vsub.f32 %v5766_v58, %v2948_v40  ;;  %v6096_v49 = vsub.f32 %v5799_v14, %v2948_v40  ;;  %v6106_v3 = vsub.f32 %v5811_v23, %v2948_v40 }
 0x43d   :  { %v2965_v62 = vmul.f32 %v6081_v41, %v6081_v41  ;;  %v2968_v53 = vmul.f32 %v6084_v42, %v6084_v42  ;;  %v2971_v14 = vmul.f32 %v6087_v44, %v6087_v44  ;;  %v2974_v59 = vmul.f32 %v6099_v50, %v6099_v50 }
 0x43e   :  { %v2966_v60 = vmul.f32 %v6090_v47, %v6090_v47  ;;  %v2969_v58 = vmul.f32 %v6093_v48, %v6093_v48  ;;  %v2972_v57 = vmul.f32 %v6096_v49, %v6096_v49  ;;  %v2975_v23 = vmul.f32 %v6106_v3, %v6106_v3 }
 0x43f   :  { %v2977_v18 = vadd.f32 %v2968_v53, %v2965_v62 }
 0x440   :  { %v2986_v63 = vadd.f32 %v2969_v58, %v2966_v60 }
 0x441   :  { %v2978_v0 = vadd.f32 %v2977_v18, %v2971_v14 }
 0x442   :  { %v2987_v1 = vadd.f32 %v2986_v63, %v2972_v57 }
 0x443   :  { %v2979_v4 = vadd.f32 %v2978_v0, %v2974_v59 }
 0x444   :  { %v2988_v10 = vadd.f32 %v2987_v1, %v2975_v23 }
 0x445   :  { %v2980_v7 = vrot.slane %v2979_v4, 4 }
 0x446   :  { %v2989_v13 = vrot.slane %v2988_v10, 4 }
 0x447   :  { %v2981_v11 = vadd.f32 %v2980_v7, %v2979_v4 }
 0x448   :  { %v2990_v16 = vadd.f32 %v2989_v13, %v2988_v10  ;;  %v3326_v13 = vld [vmem:[%s6231_s4] sm:$0x7]  ;;  %s4668_s4 = smov [#allocation4]  }
 0x449   :  { %v2982_v19 = vrot.slane %v2981_v11, 2 }
 0x44a   :  { %v2991_v20 = vrot.slane %v2990_v16, 2 }
 0x44b   :  { %v2983_v21 = vadd.f32 %v2982_v19, %v2981_v11  ;;  %v3355_v11 = vld [vmem:[%s6232_s5] sm:$0x7]  ;;  %v3338_v19 = vsub.s32 2, %v6073_v25  ;;  %s3454_s5 = sshll.u32 %s4668_s4, 4  ;;  %s3455_s5 = int_to_ptr.vmem [resolvable:$true] %s3454_s5 }
 0x44c   :  { %v2992_v22 = vadd.f32 %v2991_v20, %v2990_v16  ;;  %v3396_v16 = vld [vmem:[%s6233_s6] sm:$0x7]  ;;  %v3334_v20 = vsub.s32 1, %v6073_v25  ;;  %s4639_s6 = scalar_lea.vmem %s3455_s5, 1536  ;;  %p4644_p1 = scmp.lt.s32.totalorder %s3455_s5, %s3455_s5 }
 0x44d   :  { %v2984_v54 = vrot.slane %v2983_v21, 1  ;;  %p4640_p0 = scmp.ne.s32.totalorder %s3455_s5, %s4639_s6  ;;  %p4645_p2 = scmp.lt.s32.totalorder %s4639_s6, %s4639_s6 }
 0x44e   :  { %v2993_v29 = vrot.slane %v2992_v22, 1  ;;  %v6184_v25 = vrot.slane %v3396_v16, %v3334_v20 }
 0x44f   :  { %v2985_v33 = vadd.f32 %v2984_v54, %v2983_v21  ;;  %v3360_v54 = vrot.slane %v3355_v11, %v6076_v27  ;;  %p4646_p3 = por %p4645_p2, %p4644_p1 }
 0x450   :  { %v2994_v32 = vadd.f32 %v2993_v29, %v2992_v22  ;;  %v3331_v22 = vrot.slane %v3326_v13, %v6076_v27  ;;  %v3401_v29 = vrot.slane %v3396_v16, %v6076_v27 }
 0x451   :  { %p4647_p4 = pnand %p4646_p3, %p4640_p0 }
 0x452   :  { %3075 = vmatprep.mubr.f32.mxu1 %v2994_v32  ;;  %3217 = vmatprep.mubr.f32.mxu0 %v2994_v32 }
 0x453   :  { %3076 = vmatmul.mubr.f32.vlgmr.msra.gmra.mrb[12].mxu1 %v2985_v33  ;;  %3218 = vmatmul.mubr.f32.vlgmr.msra.gmra.mrb[50].mxu0 %v2985_v33 }
 0x454   :  { %4212 = vmatpush1.bf16.msra.mxu1 %v5836_v43  ;;  %4259 = vmatpush3.bf16.msra.mxu0 %v6024_v30 }
 0x455   :  { %4214 = vmatprep.subr.bf16.mxu1 %v5840_v46  ;;  %4260 = vmatprep.subr.bf16.mxu0 %v4666_v31 }
 0x456   :  { %v3895_v24 = vpop.f32.mrb[46].mxu0  ;;  %3146 = vmatprep.mubr.f32.mxu1 %v4665_v55  ;;  %4018 = vmatprep.mubr.msk.f32.mxu0 %vm4667_vm10, %v4665_v55 }
 0x457   :  { %v3896_v36 = vpop.f32.mrb[47].mxu0 }
 0x458   :  { %v3897_v37 = vadd.f32 %v3896_v36, %v3895_v24  ;;  %4216 = vmatpush1.bf16.msra.mxu1 %v5856_v52  ;;  %4262 = vmatpush3.bf16.msra.mxu0 %v6035_v34  ;;  %v3339_v24 = vrot.slane %v3326_v13, %v3338_v19  ;;  %v3368_v36 = vrot.slane %v3355_v11, %v3338_v19 }
 0x459   :  { %4218 = vmatprep.subr.bf16.mxu1 %v5860_v61  ;;  %4263 = vmatprep.subr.bf16.mxu0 %v4666_v31 }
 0x45c   :  { %4220 = vmatpush1.bf16.msra.mxu1 %v5875_v2  ;;  %4265 = vmatpush3.bf16.msra.mxu0 %v6047_v45 }
 0x45d   :  { %4222 = vmatprep.subr.bf16.mxu1 %v5878_v5  ;;  %4266 = vmatprep.subr.bf16.mxu0 %v4666_v31 }
 0x460   :  { %4224 = vmatpush1.bf16.msra.mxu1 %v5893_v15  ;;  %4268 = vmatpush3.bf16.msra.mxu0 %v6057_v39 }
 0x466   :  { %v2934_v43 = vpop.f32.mrb[48].mxu0 }
 0x467   :  { %v2935_v46 = vadd.f32 %v3897_v37, %v2934_v43  ;;  %v4001_v52 = vpop.f32.mrb[49].mxu0  ;;  %v3409_v37 = vrot.slane %v3396_v16, %v3338_v19 }
 0x468   :  { %v6180_v52 = vrot.slane %v3326_v13, %v3334_v20 }
 0x469   :  { %v2940_v55 = vmul.f32 0.001953125, %v2935_v46 }
 0x46b   :  { %v2952_v61 = vrot.slane %v2940_v55, %v6076_v27  ;;  %v6182_v55 = vrot.slane %v3355_v11, %v3334_v20 }
 0x46d   :  { %v6139_v30 = vsub.f32 %v5761_v56, %v2952_v61  ;;  %v6142_v2 = vsub.f32 %v5751_v51, %v2952_v61  ;;  %v6145_v5 = vsub.f32 %v5790_v8, %v2952_v61  ;;  %v6148_v31 = vsub.f32 %v5819_v28, %v2952_v61 }
 0x46f   :  { %v2967_v15 = vmul.f32 %v6139_v30, %v6139_v30  ;;  %v2970_v34 = vmul.f32 %v6142_v2, %v6142_v2  ;;  %v2973_v45 = vmul.f32 %v6145_v5, %v6145_v5  ;;  %v2976_v56 = vmul.f32 %v6148_v31, %v6148_v31 }
 0x471   :  { %v2995_v51 = vsel %vm206_vm0, %v2967_v15, 0.0  ;;  %v2996_v8 = vsel %vm206_vm0, %v2970_v34, 0.0  ;;  %v2998_v28 = vsel %vm206_vm0, %v2973_v45, 0.0  ;;  %v3000_v17 = vsel %vm206_vm0, %v2976_v56, 0.0 }
 0x472   :  { %v2997_v38 = vadd.f32 %v2996_v8, %v2995_v51 }
 0x474   :  { %v2999_v39 = vadd.f32 %v2998_v28, %v2997_v38 }
 0x476   :  { %v3001_v12 = vadd.f32 %v3000_v17, %v2999_v39 }
 0x478   :  { %v3002_v6 = vrot.slane %v3001_v12, 4 }
 0x47a   :  { %v3003_v9 = vadd.f32 %v3002_v6, %v3001_v12 }
 0x47c   :  { %v3004_v26 = vrot.slane %v3003_v9, 2 }
 0x47e   :  { %v3005_v35 = vadd.f32 %v3004_v26, %v3003_v9 }
 0x480   :  { %v3006_v40 = vrot.slane %v3005_v35, 1 }
 0x482   :  { %v3007_v62 = vadd.f32 %v3006_v40, %v3005_v35 }
 0x484   :  { %3705 = vmatmul.mubr.msk.f32.vlgmr.msra.gmra.mrb[12].mxu1 %vm206_vm0, %v3007_v62  ;;  %4019 = vmatmul.mubr.msk.f32.vlgmr.msra.gmra.mrb[52].mxu0 %vm206_vm0, %v3007_v62 }
 0x526   :  { %v3939_v53 = vpop.f32.mrb[50].mxu0 }
 0x527   :  { %v3940_v60 = vpop.f32.mrb[51].mxu0 }
 0x528   :  { %v3941_v58 = vadd.f32 %v3940_v60, %v3939_v53 }
 0x557   :  { %v3148_v14 = vpop.f32.mrb[12].mxu1  ;;  %v3289_v18 = vpop.f32.mrb[52].mxu0 }
 0x558   :  { %v3293_v57 = vmul.f32 0.001953125, %v3148_v14  ;;  %v3290_v63 = vadd.f32 %v3941_v58, %v3289_v18  ;;  %v3150_v59 = vpop.f32.mrb[13].mxu1  ;;  %v4020_v0 = vpop.f32.mrb[53].mxu0 }
 0x559   :  { %v3294_v23 = vmul.f32 0.001953125, %v3150_v59 }
 0x55a   :  { %v3296_v1 = vadd.f32 0.001, %v3293_v57  ;;  %v3295_v4 = vmul.f32 0.001953125, %v3290_v63 }
 0x55b   :  { %v3297_v10 = vadd.f32 0.001, %v3294_v23 }
 0x55c   :  { %4621 = vrsqrt.f32 %v3296_v1  ;;  %v3298_v7 = vadd.f32 0.001, %v3295_v4 }
 0x55d   :  { %4623 = vrsqrt.f32 %v3297_v10 }
 0x55e   :  { %4625 = vrsqrt.f32 %v3298_v7 }
 0x566   :  { %v4622_v21 = vpop.eup %4621 }
 0x567   :  { %v4624_v32 = vpop.eup %4623  ;;  %v3305_v33 = vrot.slane %v4622_v21, %v6076_v27 }
 0x568   :  { %v4626_v43 = vpop.eup %4625  ;;  %v3309_v46 = vrot.slane %v4624_v32, %v6076_v27 }
 0x569   :  { %v3314_v61 = vmul.f32 %v3305_v33, %v6081_v41  ;;  %v3317_v15 = vmul.f32 %v3305_v33, %v6084_v42  ;;  %v3320_v34 = vmul.f32 %v3305_v33, %v6087_v44  ;;  %v3323_v45 = vmul.f32 %v3305_v33, %v6099_v50 }
 0x56a   :  { %v3313_v56 = vrot.slane %v4626_v43, %v6076_v27  ;;  %v3315_v51 = vmul.f32 %v3309_v46, %v6090_v47  ;;  %v3318_v8 = vmul.f32 %v3309_v46, %v6093_v48  ;;  %v3321_v38 = vmul.f32 %v3309_v46, %v6096_v49 }
 0x56b   :  { %v3343_v28 = vmul.f32 %v3331_v22, %v3314_v61  ;;  %v3346_v39 = vmul.f32 %v3331_v22, %v3317_v15  ;;  %v3349_v17 = vmul.f32 %v3331_v22, %v3320_v34  ;;  %v3352_v12 = vmul.f32 %v3331_v22, %v3323_v45 }
 0x56c   :  { %v3316_v41 = vmul.f32 %v3313_v56, %v6139_v30  ;;  %v3319_v42 = vmul.f32 %v3313_v56, %v6142_v2  ;;  %v3322_v44 = vmul.f32 %v3313_v56, %v6145_v5  ;;  %v3325_v50 = vmul.f32 %v3313_v56, %v6148_v31 }
 0x56d   :  { %v3372_v6 = vadd.f32 %v3360_v54, %v3343_v28  ;;  %v3375_v27 = vadd.f32 %v3360_v54, %v3346_v39  ;;  %v3378_v9 = vadd.f32 %v3360_v54, %v3349_v17  ;;  %v3381_v47 = vadd.f32 %v3360_v54, %v3352_v12 }
 0x56e   :  { %v3345_v26 = vmul.f32 %v3339_v24, %v3316_v41  ;;  %v3348_v48 = vmul.f32 %v3339_v24, %v3319_v42  ;;  %v3351_v35 = vmul.f32 %v3339_v24, %v3322_v44  ;;  %v3354_v49 = vmul.f32 %v3339_v24, %v3325_v50 }
 0x56f   :  { %vm3384_vm11 = vcmp.ge.f32.partialorder %v3372_v6, 0.0  ;;  %vm3387_vm12 = vcmp.ge.f32.partialorder %v3375_v27, 0.0  ;;  %vm3390_vm13 = vcmp.ge.f32.partialorder %v3378_v9, 0.0  ;;  %vm3393_vm14 = vcmp.ge.f32.partialorder %v3381_v47, 0.0 }
 0x570   :  { %v3413_v40 = vmul.f32 %v3401_v29, %v3372_v6  ;;  %v3416_v30 = vmul.f32 %v3401_v29, %v3375_v27  ;;  %v3419_v62 = vmul.f32 %v3401_v29, %v3378_v9  ;;  %v3422_v2 = vmul.f32 %v3401_v29, %v3381_v47 }
 0x571   :  { %v3374_v53 = vadd.f32 %v3368_v36, %v3345_v26  ;;  %v3377_v5 = vadd.f32 %v3368_v36, %v3348_v48  ;;  %v3380_v60 = vadd.f32 %v3368_v36, %v3351_v35  ;;  %v3383_v31 = vadd.f32 %v3368_v36, %v3354_v49 }
 0x572   :  { %v3425_v58 = vsel %vm3384_vm11, %v3372_v6, %v3413_v40  ;;  %v3428_v14 = vsel %vm3387_vm12, %v3375_v27, %v3416_v30  ;;  %v3431_v18 = vsel %vm3390_vm13, %v3378_v9, %v3419_v62  ;;  %v3434_v57 = vsel %vm3393_vm14, %v3381_v47, %v3422_v2 }
 0x573   :  { %3437 = vst [vmem:[#allocation4] sm:$0xff] %v3425_v58  ;;  %3440 = vst [vmem:[#allocation4 + $0x18] sm:$0xff] %v3428_v14  ;;  %vm3386_vm15 = vcmp.ge.f32.partialorder %v3374_v53, 0.0  ;;  %vm3389_vm1 = vcmp.ge.f32.partialorder %v3377_v5, 0.0  ;;  %vm3392_vm2 = vcmp.ge.f32.partialorder %v3380_v60, 0.0  ;;  %vm3395_vm3 = vcmp.ge.f32.partialorder %v3383_v31, 0.0 }
 0x574   :  { %3443 = vst [vmem:[#allocation4 + $0x30] sm:$0xff] %v3431_v18  ;;  %3446 = vst [vmem:[#allocation4 + $0x48] sm:$0xff] %v3434_v57  ;;  %v3415_v63 = vmul.f32 %v3409_v37, %v3374_v53  ;;  %v3418_v59 = vmul.f32 %v3409_v37, %v3377_v5  ;;  %v3421_v0 = vmul.f32 %v3409_v37, %v3380_v60 }
 0x575   :  { %v3424_v23 = vmul.f32 %v3409_v37, %v3383_v31  ;;  %v3324_v1 = vmul.f32 %v3309_v46, %v6106_v3  ;;  %v3344_v4 = vmul.f32 %v6180_v52, %v3315_v51  ;;  %v3347_v10 = vmul.f32 %v6180_v52, %v3318_v8 }
 0x576   :  { %v3350_v7 = vmul.f32 %v6180_v52, %v3321_v38  ;;  %v3427_v13 = vsel %vm3386_vm15, %v3374_v53, %v3415_v63  ;;  %v3430_v11 = vsel %vm3389_vm1, %v3377_v5, %v3418_v59  ;;  %v3433_v16 = vsel %vm3392_vm2, %v3380_v60, %v3421_v0 }
 0x577   :  { %v3436_v19 = vsel %vm3395_vm3, %v3383_v31, %v3424_v23  ;;  %3439 = vst.msk [vmem:[#allocation4 + $0x10] sm:$0xff] %vm206_vm0, %v3427_v13  ;;  %3442 = vst.msk [vmem:[#allocation4 + $0x28] sm:$0xff] %vm206_vm0, %v3430_v11  ;;  %v3353_v3 = vmul.f32 %v6180_v52, %v3324_v1  ;;  %v3373_v20 = vadd.f32 %v6182_v55, %v3344_v4 }
 0x578   :  { %3445 = vst.msk [vmem:[#allocation4 + $0x40] sm:$0xff] %vm206_vm0, %v3433_v16  ;;  %3448 = vst.msk [vmem:[#allocation4 + $0x58] sm:$0xff] %vm206_vm0, %v3436_v19  ;;  %v3376_v21 = vadd.f32 %v6182_v55, %v3347_v10  ;;  %v3379_v22 = vadd.f32 %v6182_v55, %v3350_v7 }
 0x579   :  { %v3382_v54 = vadd.f32 %v6182_v55, %v3353_v3  ;;  %vm3385_vm4 = vcmp.ge.f32.partialorder %v3373_v20, 0.0  ;;  %v3414_v29 = vmul.f32 %v6184_v25, %v3373_v20 }
 0x57a   :  { %vm3388_vm5 = vcmp.ge.f32.partialorder %v3376_v21, 0.0  ;;  %vm3391_vm6 = vcmp.ge.f32.partialorder %v3379_v22, 0.0  ;;  %v3417_v32 = vmul.f32 %v6184_v25, %v3376_v21  ;;  %v3420_v33 = vmul.f32 %v6184_v25, %v3379_v22 }
 0x57b   :  { %vm3394_vm0 = vcmp.ge.f32.partialorder %v3382_v54, 0.0  ;;  %v3423_v24 = vmul.f32 %v6184_v25, %v3382_v54  ;;  %v3426_v36 = vsel %vm3385_vm4, %v3373_v20, %v3414_v29 }
 0x57c   :  { %v3429_v37 = vsel %vm3388_vm5, %v3376_v21, %v3417_v32  ;;  %v3432_v43 = vsel %vm3391_vm6, %v3379_v22, %v3420_v33  ;;  %3438 = vst [vmem:[#allocation4 + $0x8] sm:$0xff] %v3426_v36 }
 0x57d   :  { %v3435_v46 = vsel %vm3394_vm0, %v3382_v54, %v3423_v24  ;;  %3441 = vst [vmem:[#allocation4 + $0x20] sm:$0xff] %v3429_v37  ;;  %3444 = vst [vmem:[#allocation4 + $0x38] sm:$0xff] %v3432_v43 }
 0x57e   :  { %3447 = vst [vmem:[#allocation4 + $0x50] sm:$0xff] %v3435_v46 }
 0x57f   :  { %4650 = shalt.err (!%p4647_p4)
}
 0x580   :  { %s4651_s11 = scalar_lea.hbm %s6234_s7, 1536 }
 0x581   :  { %p4652_p5 = scmp.ne.s32.totalorder %s6234_s7, %s4651_s11  ;;  %p4655_p6 = scmp.lt.u32.totalorder %s4651_s11, %s6234_s7 }
 0x583   :  { %p4657_p7 = pnand %p4655_p6, %p4652_p5 }
 0x585   :  { %4660 = shalt.err (!%p4657_p7)
}
 0x586   :  { %s4669_s15 = smov 384   ;;  %s4670_s16 = smov 24  }
 0x587   :  { %3460 = dma.vmem_to_hbm [thread:$0]  %s3455_s5, 1536, %s6234_s7, [#allocation5], %s4669_s15, %s4669_s15, %s4670_s16  }
 0x588   :  { %4661 = dma.done.wait [#allocation5], 1536  }
 0x589   :  { %4662 = vsyncadd [#allocation5], 4294965760 }
 0x58a   :  { %3464 = vsyncpa [#allocation5], 1 }

// kernel: tpu_custom_call.1
= control target key start
LH: loop header
LB: loop body
LE: loop exit
PB: predicated region body
PF: predicated region fallthrough
CT: control target
= control target key end

     0   :  { %vm206_vm0 = vcmask 523264   ;;  %s6873_s0 = inlined_call_operand.vmem [shape: f32[32,320], index: 0, kind: input, shape index: {}]   ;;  %s6874_s1 = inlined_call_operand.vmem [shape: bf16[320,64], index: 1, kind: input, shape index: {}]   ;;  %s6875_s2 = inlined_call_operand.vmem [shape: bf16[1152,320], index: 2, kind: input, shape index: {}]   ;;  %s6876_s3 = inlined_call_operand.vmem [shape: f32[320,320], index: 3, kind: input, shape index: {}]   ;;  %s6877_s4 = inlined_call_operand.vmem [shape: f32[1,320], index: 4, kind: input, shape index: {}]   ;;  %s6878_s5 = inlined_call_operand.vmem [shape: f32[1,320], index: 5, kind: input, shape index: {}]   ;;  %s6879_s6 = inlined_call_operand.vmem [shape: f32[1,320], index: 6, kind: input, shape index: {}]   ;;  %s6880_s7 = inlined_call_operand.hbm [shape: f32[32,320], index: 7, kind: output, shape index: {}]  }
   0x1   :  { %v4851_v0 = vld [vmem:[%s6874_s1 + $0x40] sm:$0xff]   ;;  %v4853_v2 = vld [vmem:[%s6874_s1 + $0x48] sm:$0xff]   ;;  %v4855_v4 = vld [vmem:[%s6874_s1 + $0x50] sm:$0xff]  }
   0x2   :  { %v4852_v1 = vld [vmem:[%s6874_s1] sm:$0xff]   ;;  %4053 = vmatprep.subr.bf16.mxu0 %v4851_v0  ;;  %v4854_v3 = vld [vmem:[%s6874_s1 + $0x8] sm:$0xff]   ;;  %v4856_v5 = vld [vmem:[%s6874_s1 + $0x10] sm:$0xff]  }
   0x3   :  { %4054 = vmatpush3.bf16.msra.mxu0 %v4852_v1  ;;  %v4857_v6 = vld [vmem:[%s6874_s1 + $0x58] sm:$0xff]   ;;  %v4859_v7 = vld [vmem:[%s6874_s1 + $0x80] sm:$0xff]   ;;  %v4862_v9 = vld [vmem:[%s6874_s1 + $0x88] sm:$0xff]  }
   0x4   :  { %4055 = vmatprep.subr.bf16.mxu0 %v4853_v2  ;;  %v4858_v8 = vld [vmem:[%s6874_s1 + $0x18] sm:$0xff]   ;;  %4265 = vmatprep.subr.bf16.mxu1 %v4859_v7  ;;  %v4860_v10 = vld [vmem:[%s6874_s1 + $0x60] sm:$0xff]   ;;  %v4865_v11 = vld [vmem:[%s6874_s1 + $0x90] sm:$0xff]  }
   0x5   :  { %4266 = vmatpush3.bf16.msra.mxu1 %v4859_v7  ;;  %v4861_v12 = vld [vmem:[%s6874_s1 + $0x20] sm:$0xff]   ;;  %v4863_v13 = vld [vmem:[%s6874_s1 + $0x68] sm:$0xff]   ;;  %v4868_v14 = vld [vmem:[%s6874_s1 + $0x98] sm:$0xff]  }
   0x6   :  { %4267 = vmatprep.subr.bf16.mxu1 %v4862_v9  ;;  %v4864_v15 = vld [vmem:[%s6874_s1 + $0x28] sm:$0xff]   ;;  %v4866_v16 = vld [vmem:[%s6874_s1 + $0x70] sm:$0xff]   ;;  %v32_v21 = vld [vmem:[%s6873_s0 + $0x20] sm:$0xff] }
   0x7   :  { %4056 = vmatpush3.bf16.msra.mxu0 %v4854_v3  ;;  %v30_v17 = vld [vmem:[%s6873_s0 + $0x10] sm:$0xff]  ;;  %v33_v18 = vld [vmem:[%s6873_s0 + $0x28] sm:$0xff]  ;;  %v36_v22 = vld [vmem:[%s6873_s0 + $0x40] sm:$0xff] }
   0x8   :  { %4057 = vmatprep.subr.bf16.mxu0 %v4855_v4  ;;  %v29_v19 = vld [vmem:[%s6873_s0 + $0x8] sm:$0xff]  ;;  %v42_v20 = vpack.c.bf16 %v33_v18, %v30_v17  ;;  %v39_v23 = vld [vmem:[%s6873_s0 + $0x58] sm:$0xff]  ;;  %v4867_v26 = vld [vmem:[%s6874_s1 + $0x30] sm:$0xff]  }
   0x9   :  { %4268 = vmatpush3.bf16.msra.mxu1 %v4862_v9  ;;  %v41_v24 = vpack.c.bf16 %v32_v21, %v29_v19  ;;  %v45_v25 = vpack.c.bf16 %v39_v23, %v36_v22  ;;  %v4869_v27 = vld [vmem:[%s6874_s1 + $0x78] sm:$0xff]   ;;  %v28_v29 = vld [vmem:[%s6873_s0] sm:$0xff]  ;;  %v38_v32 = vld [vmem:[%s6873_s0 + $0x50] sm:$0xff] }
   0xa   :  { %4269 = vmatprep.subr.bf16.mxu1 %v4865_v11  ;;  %4273 = vmatprep.mubr.msk.bf16.mxu1 %vm206_vm0, %v42_v20  ;;  %v4870_v28 = vld [vmem:[%s6874_s1 + $0x38] sm:$0xff]   ;;  %v34_v35 = vld [vmem:[%s6873_s0 + $0x30] sm:$0xff]  ;;  %v37_v36 = vld [vmem:[%s6873_s0 + $0x48] sm:$0xff] }
   0xb   :  { %4058 = vmatpush3.bf16.msra.mxu0 %v4856_v5  ;;  %245 = vmatprep.mubr.bf16.mxu0 %v41_v24  ;;  %v31_v30 = vld [vmem:[%s6873_s0 + $0x18] sm:$0xff]  ;;  %v43_v37 = vpack.c.bf16 %v37_v36, %v34_v35 }
   0xc   :  { %4059 = vmatprep.subr.bf16.mxu0 %v4857_v6  ;;  %v35_v31 = vld [vmem:[%s6873_s0 + $0x38] sm:$0xff]  ;;  %v40_v33 = vpack.c.bf16 %v31_v30, %v28_v29 }
   0xd   :  { %4270 = vmatpush3.bf16.msra.mxu1 %v4865_v11  ;;  %v44_v34 = vpack.c.bf16 %v38_v32, %v35_v31 }
   0xe   :  { %4271 = vmatprep.subr.bf16.mxu1 %v4868_v14 }
   0xf   :  { %4060 = vmatpush3.bf16.msra.mxu0 %v4858_v8 }
  0x10   :  { %4061 = vmatprep.subr.bf16.mxu0 %v4860_v10 }
  0x11   :  { %4272 = vmatpush3.bf16.msra.mxu1 %v4868_v14 }
  0x13   :  { %4062 = vmatpush3.bf16.msra.mxu0 %v4861_v12 }
  0x14   :  { %4063 = vmatprep.subr.bf16.mxu0 %v4863_v13  ;;  %4274 = vmatmul.mubr.msk.bf16.vlgmr.msra.gmra.mrb[0].mxu1 %vm206_vm0, %v45_v25 }
  0x17   :  { %4064 = vmatpush3.bf16.msra.mxu0 %v4864_v15 }
  0x18   :  { %4065 = vmatprep.subr.bf16.mxu0 %v4866_v16 }
  0x1b   :  { %4066 = vmatpush3.bf16.msra.mxu0 %v4867_v26 }
  0x1c   :  { %4067 = vmatprep.subr.bf16.mxu0 %v4869_v27 }
  0x1f   :  { %4068 = vmatpush3.bf16.msra.mxu0 %v4870_v28 }
  0x22   :  { %246 = vmatmul.mubr.bf16.vlgmr.msra.gmra.mrb[0].mxu0 %v40_v33 }
  0x23   :  { %253 = vmatprep.mubr.bf16.mxu0 %v44_v34 }
  0x2a   :  { %254 = vmatmul.mubr.bf16.gmra.mrb[4].mxu0 %v43_v37 }
  0x2b   :  { %12 = vsyncpa [#allocation5], 0  ;;  %v4871_v38 = vld [vmem:[%s6875_s2 + $0xc0] ss:$12 sps:$4 sm:$0xff]   ;;  %v4873_v39 = vld [vmem:[%s6875_s2 + $0xc4] ss:$12 sps:$4 sm:$0xff]  }
  0x2c   :  { %v4876_v40 = vld [vmem:[%s6875_s2 + $0xdc] ss:$12 sps:$4 sm:$0xff]   ;;  %544 = vmatprep.subr.bf16.mxu1 %v4873_v39  ;;  %v4874_v42 = vld [vmem:[%s6875_s2 + $0xd8] ss:$12 sps:$4 sm:$0xff]   ;;  %v4884_v43 = vld [vmem:[%s6875_s2 + $0xe0] ss:$12 sps:$4 sm:$0xff]  }
  0x2d   :  { %v4880_v41 = vld [vmem:[%s6875_s2 + $0xc8] ss:$12 sps:$4 sm:$0xff]   ;;  %545 = vmatpush1.bf16.msra.mxu1 %v4871_v38  ;;  %v5202_v45 = vmov 0.0   ;;  %v4888_v46 = vld [vmem:[%s6875_s2 + $0xf8] ss:$12 sps:$4 sm:$0xff]   ;;  %s5203_s18 = smov 32  }
  0x2e   :  { %546 = vmatprep.subr.bf16.mxu1 %v4876_v40  ;;  %v4879_v44 = vld [vmem:[%s6875_s2 + $0xf4] ss:$12 sps:$4 sm:$0xff]   ;;  %4277 = vmatprep.subr.bf16.mxu0 %v4880_v41  ;;  %312 = vst [vmem:[#allocation2 + $0x8] sm:$0xff] %v5202_v45  ;;  %311 = vst [vmem:[#allocation2] sm:$0xff] %v5202_v45  ;;  %v4877_v47 = vld [vmem:[%s6875_s2 + $0xf0] ss:$12 sps:$4 sm:$0xff]  }
  0x2f   :  { %4278 = vmatpush3.bf16.msra.mxu0 %v4880_v41  ;;  %313 = vst [vmem:[#allocation2 + $0x10] sm:$0xff] %v5202_v45  ;;  %314 = vst [vmem:[#allocation2 + $0x18] sm:$0xff] %v5202_v45  ;;  %v4883_v48 = vld [vmem:[%s6875_s2 + $0x10c] ss:$12 sps:$4 sm:$0xff]   ;;  %v4881_v49 = vld [vmem:[%s6875_s2 + $0x108] ss:$12 sps:$4 sm:$0xff]  }
  0x30   :  { %315 = vst [vmem:[#allocation2 + $0x20] sm:$0xff] %v5202_v45  ;;  %316 = vst [vmem:[#allocation2 + $0x28] sm:$0xff] %v5202_v45  ;;  %4279 = vmatprep.subr.bf16.mxu0 %v4884_v43  ;;  %v4887_v50 = vld [vmem:[%s6875_s2 + $0x124] ss:$12 sps:$4 sm:$0xff]   ;;  %v4885_v51 = vld [vmem:[%s6875_s2 + $0x120] ss:$12 sps:$4 sm:$0xff]  }
  0x31   :  { %317 = vst [vmem:[#allocation2 + $0x30] sm:$0xff] %v5202_v45  ;;  %318 = vst [vmem:[#allocation2 + $0x38] sm:$0xff] %v5202_v45  ;;  %547 = vmatpush1.bf16.msra.mxu1 %v4874_v42  ;;  %v4891_v53 = vld [vmem:[%s6875_s2 + $0x13c] ss:$12 sps:$4 sm:$0xff]   ;;  %v4889_v56 = vld [vmem:[%s6875_s2 + $0x138] ss:$12 sps:$4 sm:$0xff]  }
  0x32   :  { %548 = vmatprep.subr.bf16.mxu1 %v4879_v44  ;;  %v4892_v54 = vld [vmem:[%s6875_s2 + $0x110] ss:$12 sps:$4 sm:$0xff]   ;;  %v4895_v59 = vld [vmem:[%s6875_s2 + $0x154] ss:$12 sps:$4 sm:$0xff]   ;;  %v4899_v63 = vld [vmem:[%s6875_s2 + $0x16c] ss:$12 sps:$4 sm:$0xff]  }
  0x33   :  { %4280 = vmatpush3.bf16.msra.mxu0 %v4884_v43  ;;  %v4896_v60 = vld [vmem:[%s6875_s2 + $0x128] ss:$12 sps:$4 sm:$0xff]   ;;  %v4893_v61 = vld [vmem:[%s6875_s2 + $0x150] ss:$12 sps:$4 sm:$0xff]   ;;  %v4900_v0 = vld [vmem:[%s6875_s2 + $0x140] ss:$12 sps:$4 sm:$0xff]  }
  0x34   :  { %4281 = vmatprep.subr.bf16.mxu0 %v4888_v46  ;;  %v4897_v2 = vld [vmem:[%s6875_s2 + $0x168] ss:$12 sps:$4 sm:$0xff]   ;;  %v4901_v8 = vld [vmem:[%s6875_s2 + $0x158] ss:$12 sps:$4 sm:$0xff]   ;;  %v5204_v11 = vmov 0   ;;  %vm335_vm1 = vcmask 785664  }
  0x35   :  { %549 = vmatpush1.bf16.msra.mxu1 %v4877_v47  ;;  %v4904_v9 = vld [vmem:[%s6875_s2 + $0x4] ss:$12 sps:$4 sm:$0xff]   ;;  %576 = vmatprep.mubr.bf16.mxu1 %v5204_v11  ;;  %v4912_v20 = vld [vmem:[%s6875_s2 + $0x8] ss:$12 sps:$4 sm:$0xff]   ;;  %v4902_v26 = vld [vmem:[%s6875_s2] ss:$12 sps:$4 sm:$0xff]  }
  0x36   :  { %550 = vmatprep.subr.bf16.mxu1 %v4883_v48  ;;  %v4905_v13 = vld [vmem:[%s6875_s2 + $0x170] ss:$12 sps:$4 sm:$0xff]   ;;  %v4906_v31 = vld [vmem:[%s6875_s2 + $0x18] ss:$12 sps:$4 sm:$0xff]   ;;  %v4911_v32 = vld [vmem:[%s6875_s2 + $0x34] ss:$12 sps:$4 sm:$0xff]  }
  0x37   :  { %4282 = vmatpush3.bf16.msra.mxu0 %v4888_v46  ;;  %v4908_v30 = vld [vmem:[%s6875_s2 + $0x1c] ss:$12 sps:$4 sm:$0xff]   ;;  %v4915_v38 = vld [vmem:[%s6875_s2 + $0x4c] ss:$12 sps:$4 sm:$0xff]   ;;  %v4919_v42 = vld [vmem:[%s6875_s2 + $0x64] ss:$12 sps:$4 sm:$0xff]  }
  0x38   :  { %4283 = vmatprep.subr.bf16.mxu0 %v4892_v54  ;;  %v4909_v33 = vld [vmem:[%s6875_s2 + $0x30] ss:$12 sps:$4 sm:$0xff]   ;;  %v4916_v39 = vld [vmem:[%s6875_s2 + $0x20] ss:$12 sps:$4 sm:$0xff]   ;;  %v4913_v41 = vld [vmem:[%s6875_s2 + $0x48] ss:$12 sps:$4 sm:$0xff]  }
  0x39   :  { %551 = vmatpush1.bf16.msra.mxu1 %v4881_v49  ;;  %v4920_v43 = vld [vmem:[%s6875_s2 + $0x38] ss:$12 sps:$4 sm:$0xff]   ;;  %v4917_v44 = vld [vmem:[%s6875_s2 + $0x60] ss:$12 sps:$4 sm:$0xff]   ;;  %v4923_v46 = vld [vmem:[%s6875_s2 + $0x7c] ss:$12 sps:$4 sm:$0xff]  }
  0x3a   :  { %552 = vmatprep.subr.bf16.mxu1 %v4887_v50  ;;  %v4924_v47 = vld [vmem:[%s6875_s2 + $0x50] ss:$12 sps:$4 sm:$0xff]   ;;  %v4921_v48 = vld [vmem:[%s6875_s2 + $0x78] ss:$12 sps:$4 sm:$0xff]   ;;  %v4927_v49 = vld [vmem:[%s6875_s2 + $0x94] ss:$12 sps:$4 sm:$0xff]  }
  0x3b   :  { %4284 = vmatpush3.bf16.msra.mxu0 %v4892_v54  ;;  %v4928_v50 = vld [vmem:[%s6875_s2 + $0x68] ss:$12 sps:$4 sm:$0xff]   ;;  %vm5206_vm2 = vmmov 0  }
  0x3c   :  { %4285 = vmatprep.subr.bf16.mxu0 %v4896_v60  ;;  %v4929_v54 = vld [vmem:[%s6875_s2 + $0xa8] ss:$12 sps:$4 sm:$0xff]  }
  0x3d   :  { %553 = vmatpush1.bf16.msra.mxu1 %v4885_v51  ;;  %v4925_v51 = vld [vmem:[%s6875_s2 + $0x90] ss:$12 sps:$4 sm:$0xff]  }
  0x3e   :  { %554 = vmatprep.subr.bf16.mxu1 %v4891_v53  ;;  %v4932_v53 = vld [vmem:[%s6875_s2 + $0x80] ss:$12 sps:$4 sm:$0xff]  }
  0x3f   :  { %4286 = vmatpush3.bf16.msra.mxu0 %v4896_v60  ;;  %v4938_v60 = vld [vmem:[%s6875_s2 + $0x198] ss:$12 sps:$4 sm:$0xff]  }
  0x40   :  { %4287 = vmatprep.subr.bf16.mxu0 %v4900_v0 }
  0x41   :  { %555 = vmatpush1.bf16.msra.mxu1 %v4889_v56  ;;  %v4936_v56 = vld [vmem:[%s6875_s2 + $0x184] ss:$12 sps:$4 sm:$0xff]  }
  0x42   :  { %556 = vmatprep.subr.bf16.mxu1 %v4895_v59  ;;  %v4940_v59 = vld [vmem:[%s6875_s2 + $0x19c] ss:$12 sps:$4 sm:$0xff]  }
  0x43   :  { %4288 = vmatpush3.bf16.msra.mxu0 %v4900_v0  ;;  %v4941_v0 = vld [vmem:[%s6875_s2 + $0x1b0] ss:$12 sps:$4 sm:$0xff]  }
  0x44   :  { %4289 = vmatprep.subr.bf16.mxu0 %v4901_v8 }
  0x45   :  { %557 = vmatpush1.bf16.msra.mxu1 %v4893_v61  ;;  %v4943_v61 = vld [vmem:[%s6875_s2 + $0x1b4] ss:$12 sps:$4 sm:$0xff]  }
  0x46   :  { %558 = vmatprep.subr.bf16.mxu1 %v4899_v63 }
  0x47   :  { %4290 = vmatpush3.bf16.msra.mxu0 %v4901_v8  ;;  %v4952_v8 = vld [vmem:[%s6875_s2 + $0x1b8] ss:$12 sps:$4 sm:$0xff]  }
  0x48   :  { %4291 = vmatprep.subr.bf16.mxu0 %v4905_v13 }
  0x49   :  { %559 = vmatpush1.bf16.msra.mxu1 %v4897_v2 }
  0x4a   :  { %774 = vmatprep.subr.bf16.mxu1 %v4904_v9  ;;  %v4949_v9 = vld [vmem:[%s6875_s2 + $0x1e0] ss:$12 sps:$4 sm:$0xff]  }
  0x4b   :  { %4292 = vmatpush3.bf16.msra.mxu0 %v4905_v13  ;;  %v4953_v13 = vld [vmem:[%s6875_s2 + $0x1f8] ss:$12 sps:$4 sm:$0xff]  }
  0x4c   :  { %4297 = vmatprep.subr.bf16.mxu0 %v4912_v20 }
  0xe7   :  { %v4275_v52 = vpop.f32.mrb[0].mxu1 }
  0xe8   :  { %v296_v55 = vpop.f32.mrb[1].mxu1 }
  0xe9   :  { %v4276_v57 = vpop.f32.mrb[2].mxu1 }
  0xea   :  { %v299_v58 = vpop.f32.mrb[3].mxu1 }
  0xf5   :  { %v4069_v62 = vpop.f32.mrb[0].mxu0 }
  0xf6   :  { %v4070_v1 = vpop.f32.mrb[1].mxu0 }
  0xf7   :  { %v4071_v3 = vadd.f32 %v4070_v1, %v4069_v62  ;;  %v4072_v4 = vpop.f32.mrb[2].mxu0  ;;  %v4944_v62 = vld [vmem:[%s6875_s2 + $0x188] ss:$12 sps:$4 sm:$0xff]  }
  0xf8   :  { %v4073_v5 = vpop.f32.mrb[3].mxu0 }
  0xf9   :  { %v4074_v6 = vadd.f32 %v4073_v5, %v4072_v4  ;;  %v297_v7 = vadd.f32 %v4071_v3, %v296_v55  ;;  %v4933_v55 = vld [vmem:[%s6875_s2 + $0x98] ss:$12 sps:$4 sm:$0xff]   ;;  %v4948_v5 = vld [vmem:[%s6875_s2 + $0x1a0] ss:$12 sps:$4 sm:$0xff]  }
  0xfa   :  { %v4947_v3 = vld [vmem:[%s6875_s2 + $0x1cc] ss:$12 sps:$4 sm:$0xff]  }
  0xfb   :  { %v300_v10 = vadd.f32 %v4074_v6, %v299_v58  ;;  %323 = vrot.lane.b32.xlu0 %v297_v7, %s5203_s18  ;;  %v4937_v58 = vld [vmem:[%s6875_s2 + $0xb0] ss:$12 sps:$4 sm:$0xff]  }
  0xfc   :  { %v4951_v7 = vld [vmem:[%s6875_s2 + $0x1e4] ss:$12 sps:$4 sm:$0xff]  }
  0xfd   :  { %v4075_v12 = vpop.f32.mrb[4].mxu0 }
  0xfe   :  { %v4076_v14 = vpop.f32.mrb[5].mxu0 }
  0xff   :  { %v4077_v15 = vadd.f32 %v4076_v14, %v4075_v12  ;;  %v4078_v16 = vpop.f32.mrb[6].mxu0  ;;  %325 = vrot.lane.b32.xlu0 %v300_v10, %s5203_s18  ;;  %v4955_v10 = vld [vmem:[%s6875_s2 + $0x1fc] ss:$12 sps:$4 sm:$0xff]   ;;  %v4959_v14 = vld [vmem:[%s6875_s2 + $0x214] ss:$12 sps:$4 sm:$0xff]  }
 0x100   :  { %v4079_v17 = vpop.f32.mrb[7].mxu0  ;;  %v4956_v12 = vld [vmem:[%s6875_s2 + $0x1d0] ss:$12 sps:$4 sm:$0xff]  }
 0x101   :  { %v4080_v18 = vadd.f32 %v4079_v17, %v4078_v16  ;;  %v305_v19 = vadd.f32 %v4275_v52, %v4077_v15  ;;  %v4931_v52 = vld [vmem:[%s6875_s2 + $0xac] ss:$12 sps:$4 sm:$0xff]   ;;  %v4960_v15 = vld [vmem:[%s6875_s2 + $0x1e8] ss:$12 sps:$4 sm:$0xff]   ;;  %v4957_v16 = vld [vmem:[%s6875_s2 + $0x210] ss:$12 sps:$4 sm:$0xff]  }
 0x102   :  { %v4963_v17 = vld [vmem:[%s6875_s2 + $0x22c] ss:$12 sps:$4 sm:$0xff]  }
 0x103   :  { %v308_v21 = vadd.f32 %v4276_v57, %v4080_v18  ;;  %327 = vrot.lane.b32.xlu1 %v305_v19, %s5203_s18  ;;  %v4934_v57 = vld [vmem:[%s6875_s2 + $0x180] ss:$12 sps:$4 sm:$0xff]   ;;  %v4961_v19 = vld [vmem:[%s6875_s2 + $0x228] ss:$12 sps:$4 sm:$0xff]  }
 0x104   :  { %v4964_v18 = vld [vmem:[%s6875_s2 + $0x200] ss:$12 sps:$4 sm:$0xff]  }
 0x107   :  { %329 = vrot.lane.b32.xlu1 %v308_v21, %s5203_s18  ;;  %v4968_v21 = vld [vmem:[%s6875_s2 + $0x244] ss:$12 sps:$4 sm:$0xff]  }
 0x16d   :  { %v324_v22 = vpop.permute.xlu0 %323 }
 0x16e   :  { %336 = vst.msk [vmem:[#allocation2 + $0x8] sm:$0xff] %vm335_vm1, %v324_v22  ;;  %v4966_v22 = vld [vmem:[%s6875_s2 + $0x240] ss:$12 sps:$4 sm:$0xff]  }
 0x171   :  { %v326_v23 = vpop.permute.xlu0 %325 }
 0x172   :  { %337 = vst.msk [vmem:[#allocation2 + $0x10] sm:$0xff] %vm335_vm1, %v326_v23  ;;  %v4969_v23 = vld [vmem:[%s6875_s2 + $0x230] ss:$12 sps:$4 sm:$0xff]  }
 0x175   :  { %v328_v24 = vpop.permute.xlu1 %327  ;;  %v378_v27 = vld [vmem:[#allocation2 + $0x4] sm:$0xff] }
 0x176   :  { %338 = vst.msk [vmem:[#allocation2 + $0x28] sm:$0xff] %vm335_vm1, %v328_v24  ;;  %v5451_v36 = vld [vmem:[#allocation2 + $0x8] sm:$0xff] }
 0x177   :  { %v344_v40 = vpack.c.bf16 %v5451_v36, %v5202_v45  ;;  %v876_v4 = vld [vmem:[#allocation2 + $0x6] sm:$0xff] }
 0x178   :  { %v4972_v24 = vld [vmem:[%s6875_s2 + $0x25c] ss:$12 sps:$4 sm:$0xff]  }
 0x179   :  { %v330_v25 = vpop.permute.xlu1 %329  ;;  %v379_v28 = vld [vmem:[#allocation2 + $0xc] sm:$0xff] }
 0x17a   :  { %339 = vst.msk [vmem:[#allocation2 + $0x30] sm:$0xff] %vm335_vm1, %v330_v25  ;;  %v382_v29 = vpack.c.bf16 %v379_v28, %v378_v27  ;;  %v877_v1 = vld [vmem:[#allocation2 + $0xe] sm:$0xff]  ;;  %v4970_v25 = vld [vmem:[%s6875_s2 + $0x258] ss:$12 sps:$4 sm:$0xff]  }
 0x17b   :  { %v880_v6 = vpack.c.bf16 %v877_v1, %v876_v4  ;;  %v4976_v27 = vld [vmem:[%s6875_s2 + $0x248] ss:$12 sps:$4 sm:$0xff]  }
 0x17c   :  { %577 = vmatmul.mubr.bf16.vlgmr.msra.gmra.mrb[4].mxu1 %v382_v29  ;;  %4293 = vmatprep.mubr.bf16.mxu0 %v382_v29 }
 0x17d   :  { %775 = vmatpush1.bf16.msra.mxu1 %v4902_v26  ;;  %586 = vmatprep.mubr.bf16.mxu1 %v5204_v11  ;;  %v380_v34 = vld [vmem:[#allocation2 + $0x24] sm:$0xff]  ;;  %v4975_v26 = vld [vmem:[%s6875_s2 + $0x274] ss:$12 sps:$4 sm:$0xff]  }
 0x17e   :  { %776 = vmatprep.subr.bf16.mxu1 %v4908_v30  ;;  %v5526_v63 = vld [vmem:[#allocation2 + $0x28] sm:$0xff]  ;;  %v4973_v30 = vld [vmem:[%s6875_s2 + $0x270] ss:$12 sps:$4 sm:$0xff]  }
 0x17f   :  { %v345_v2 = vpack.c.bf16 %v5526_v63, %v5202_v45  ;;  %v4945_v45 = vld [vmem:[%s6875_s2 + $0x1c8] ss:$12 sps:$4 sm:$0xff]  }
 0x180   :  { %v878_v29 = vld [vmem:[#allocation2 + $0x26] sm:$0xff] }
 0x181   :  { %777 = vmatpush1.bf16.msra.mxu1 %v4906_v31  ;;  %v381_v35 = vld [vmem:[#allocation2 + $0x2c] sm:$0xff] }
 0x182   :  { %778 = vmatprep.subr.bf16.mxu1 %v4911_v32  ;;  %v383_v37 = vpack.c.bf16 %v381_v35, %v380_v34  ;;  %v879_v28 = vld [vmem:[#allocation2 + $0x2e] sm:$0xff] }
 0x183   :  { %v1157_v31 = vld [vmem:[#allocation2 + $0xf] sm:$0xff]  ;;  %v881_v32 = vpack.c.bf16 %v879_v28, %v878_v29  ;;  %v1156_v34 = vld [vmem:[#allocation2 + $0x7] sm:$0xff] }
 0x184   :  { %587 = vmatmul.mubr.bf16.gmra.mrb[8].mxu1 %v383_v37  ;;  %4294 = vmatmul.mubr.bf16.vlgmr.msra.gmra.mrb[8].mxu0 %v383_v37  ;;  %v4980_v35 = vld [vmem:[%s6875_s2 + $0x260] ss:$12 sps:$4 sm:$0xff]   ;;  %v1160_v37 = vpack.c.bf16 %v1157_v31, %v1156_v34  ;;  %v1717_v28 = vld [vmem:[#allocation2 + $0x11] sm:$0xff] }
 0x185   :  { %779 = vmatpush1.bf16.msra.mxu1 %v4909_v33  ;;  %4298 = vmatpush3.bf16.msra.mxu0 %v4912_v20  ;;  %v4965_v20 = vld [vmem:[%s6875_s2 + $0x218] ss:$12 sps:$4 sm:$0xff]   ;;  %v5044_v31 = vld [vmem:[%s6875_s2 + $0x3e0] ss:$12 sps:$4 sm:$0xff]  }
 0x186   :  { %4313 = vmatprep.mubr.bf16.mxu0 %v344_v40  ;;  %780 = vmatprep.subr.bf16.mxu1 %v4915_v38  ;;  %v4979_v33 = vld [vmem:[%s6875_s2 + $0x28c] ss:$12 sps:$4 sm:$0xff]   ;;  %v4977_v38 = vld [vmem:[%s6875_s2 + $0x288] ss:$12 sps:$4 sm:$0xff]  }
 0x187   :  { %4299 = vmatprep.subr.bf16.mxu0 %v4916_v39  ;;  %806 = vmatprep.mubr.bf16.mxu1 %v5204_v11  ;;  %v5048_v34 = vld [vmem:[%s6875_s2 + $0x3f8] ss:$12 sps:$4 sm:$0xff]  }
 0x189   :  { %781 = vmatpush1.bf16.msra.mxu1 %v4913_v41  ;;  %4300 = vmatpush3.bf16.msra.mxu0 %v4916_v39  ;;  %v4983_v39 = vld [vmem:[%s6875_s2 + $0x2a4] ss:$12 sps:$4 sm:$0xff]   ;;  %v4981_v41 = vld [vmem:[%s6875_s2 + $0x2a0] ss:$12 sps:$4 sm:$0xff]  }
 0x18a   :  { %782 = vmatprep.subr.bf16.mxu1 %v4919_v42  ;;  %4301 = vmatprep.subr.bf16.mxu0 %v4920_v43  ;;  %v4987_v42 = vld [vmem:[%s6875_s2 + $0x2bc] ss:$12 sps:$4 sm:$0xff]  }
 0x18d   :  { %783 = vmatpush1.bf16.msra.mxu1 %v4917_v44  ;;  %4302 = vmatpush3.bf16.msra.mxu0 %v4920_v43  ;;  %v4988_v43 = vld [vmem:[%s6875_s2 + $0x290] ss:$12 sps:$4 sm:$0xff]   ;;  %v4985_v44 = vld [vmem:[%s6875_s2 + $0x2b8] ss:$12 sps:$4 sm:$0xff]  }
 0x18e   :  { %784 = vmatprep.subr.bf16.mxu1 %v4923_v46  ;;  %4303 = vmatprep.subr.bf16.mxu0 %v4924_v47  ;;  %v4991_v46 = vld [vmem:[%s6875_s2 + $0x2d4] ss:$12 sps:$4 sm:$0xff]  }
 0x191   :  { %785 = vmatpush1.bf16.msra.mxu1 %v4921_v48  ;;  %4304 = vmatpush3.bf16.msra.mxu0 %v4924_v47  ;;  %v4992_v47 = vld [vmem:[%s6875_s2 + $0x2a8] ss:$12 sps:$4 sm:$0xff]   ;;  %v4989_v48 = vld [vmem:[%s6875_s2 + $0x2d0] ss:$12 sps:$4 sm:$0xff]  }
 0x192   :  { %786 = vmatprep.subr.bf16.mxu1 %v4927_v49  ;;  %4305 = vmatprep.subr.bf16.mxu0 %v4928_v50  ;;  %v4995_v49 = vld [vmem:[%s6875_s2 + $0x2ec] ss:$12 sps:$4 sm:$0xff]  }
 0x195   :  { %787 = vmatpush1.bf16.msra.mxu1 %v4925_v51  ;;  %4306 = vmatpush3.bf16.msra.mxu0 %v4928_v50  ;;  %v4996_v50 = vld [vmem:[%s6875_s2 + $0x2c0] ss:$12 sps:$4 sm:$0xff]   ;;  %v4993_v51 = vld [vmem:[%s6875_s2 + $0x2e8] ss:$12 sps:$4 sm:$0xff]  }
 0x196   :  { %788 = vmatprep.subr.bf16.mxu1 %v4931_v52  ;;  %4307 = vmatprep.subr.bf16.mxu0 %v4932_v53  ;;  %v4997_v52 = vld [vmem:[%s6875_s2 + $0x2d8] ss:$12 sps:$4 sm:$0xff]  }
 0x199   :  { %789 = vmatpush1.bf16.msra.mxu1 %v4929_v54  ;;  %4308 = vmatpush3.bf16.msra.mxu0 %v4932_v53  ;;  %v5000_v53 = vld [vmem:[%s6875_s2 + $0x304] ss:$12 sps:$4 sm:$0xff]   ;;  %v4998_v54 = vld [vmem:[%s6875_s2 + $0x300] ss:$12 sps:$4 sm:$0xff]  }
 0x19a   :  { %4309 = vmatprep.subr.bf16.mxu0 %v4933_v55  ;;  %1042 = vmatprep.subr.bf16.mxu1 %v4936_v56  ;;  %v5004_v56 = vld [vmem:[%s6875_s2 + $0x31c] ss:$12 sps:$4 sm:$0xff]  }
 0x19c   :  { %807 = vmatmul.mubr.bf16.vlgmr.msra.gmra.mrb[4].mxu1 %v344_v40  ;;  %v4984_v40 = vld [vmem:[%s6875_s2 + $0x278] ss:$12 sps:$4 sm:$0xff]  }
 0x19d   :  { %4310 = vmatpush3.bf16.msra.mxu0 %v4933_v55  ;;  %1043 = vmatpush1.bf16.msra.mxu1 %v4934_v57  ;;  %v5001_v55 = vld [vmem:[%s6875_s2 + $0x2f0] ss:$12 sps:$4 sm:$0xff]   ;;  %v5002_v57 = vld [vmem:[%s6875_s2 + $0x318] ss:$12 sps:$4 sm:$0xff]  }
 0x19e   :  { %4311 = vmatprep.subr.bf16.mxu0 %v4937_v58  ;;  %1044 = vmatprep.subr.bf16.mxu1 %v4940_v59  ;;  %v5008_v59 = vld [vmem:[%s6875_s2 + $0x308] ss:$12 sps:$4 sm:$0xff]  }
 0x19f   :  { %816 = vmatprep.mubr.bf16.mxu1 %v5204_v11 }
 0x1a1   :  { %4312 = vmatpush3.bf16.msra.mxu0 %v4937_v58  ;;  %1045 = vmatpush1.bf16.msra.mxu1 %v4938_v60  ;;  %v5007_v58 = vld [vmem:[%s6875_s2 + $0x334] ss:$12 sps:$4 sm:$0xff]  }
 0x1a2   :  { %1046 = vmatprep.subr.bf16.mxu1 %v4943_v61  ;;  %4317 = vmatprep.subr.bf16.mxu0 %v4944_v62  ;;  %v1159_v60 = vld [vmem:[#allocation2 + $0x2f] sm:$0xff]  ;;  %v1158_v61 = vld [vmem:[#allocation2 + $0x27] sm:$0xff] }
 0x1a3   :  { %v1161_v1 = vpack.c.bf16 %v1159_v60, %v1158_v61  ;;  %v5075_v61 = vld [vmem:[%s6875_s2 + $0x4cc] ss:$12 sps:$4 sm:$0xff]  }
 0x1a4   :  { %817 = vmatmul.mubr.bf16.gmra.mrb[8].mxu1 %v345_v2  ;;  %4314 = vmatmul.mubr.bf16.vlgmr.msra.gmra.mrb[8].mxu0 %v345_v2  ;;  %v5011_v2 = vld [vmem:[%s6875_s2 + $0x34c] ss:$12 sps:$4 sm:$0xff]  }
 0x1a5   :  { %1047 = vmatpush1.bf16.msra.mxu1 %v4941_v0  ;;  %4318 = vmatpush3.bf16.msra.mxu0 %v4944_v62  ;;  %v5005_v62 = vld [vmem:[%s6875_s2 + $0x330] ss:$12 sps:$4 sm:$0xff]  }
 0x1a6   :  { %4333 = vmatprep.mubr.bf16.mxu0 %v880_v6  ;;  %1048 = vmatprep.subr.bf16.mxu1 %v4947_v3  ;;  %v5681_v0 = vld [vmem:[#allocation2 + $0x10] sm:$0xff]  ;;  %v5012_v3 = vld [vmem:[%s6875_s2 + $0x320] ss:$12 sps:$4 sm:$0xff]  }
 0x1a7   :  { %4319 = vmatprep.subr.bf16.mxu0 %v4948_v5  ;;  %1074 = vmatprep.mubr.bf16.mxu1 %v5204_v11  ;;  %v1440_v4 = vpack.c.bf16 %v5681_v0, %v5451_v36  ;;  %v5013_v36 = vld [vmem:[%s6875_s2 + $0x360] ss:$12 sps:$4 sm:$0xff]  }
 0x1a9   :  { %1049 = vmatpush1.bf16.msra.mxu1 %v4945_v45  ;;  %4320 = vmatpush3.bf16.msra.mxu0 %v4948_v5  ;;  %v5009_v5 = vld [vmem:[%s6875_s2 + $0x348] ss:$12 sps:$4 sm:$0xff]   ;;  %v5016_v45 = vld [vmem:[%s6875_s2 + $0x338] ss:$12 sps:$4 sm:$0xff]  }
 0x1aa   :  { %1050 = vmatprep.subr.bf16.mxu1 %v4951_v7  ;;  %4321 = vmatprep.subr.bf16.mxu0 %v4952_v8  ;;  %v5019_v7 = vld [vmem:[%s6875_s2 + $0x37c] ss:$12 sps:$4 sm:$0xff]  }
 0x1ad   :  { %1051 = vmatpush1.bf16.msra.mxu1 %v4949_v9  ;;  %4322 = vmatpush3.bf16.msra.mxu0 %v4952_v8  ;;  %v5020_v8 = vld [vmem:[%s6875_s2 + $0x350] ss:$12 sps:$4 sm:$0xff]   ;;  %v5017_v9 = vld [vmem:[%s6875_s2 + $0x378] ss:$12 sps:$4 sm:$0xff]  }
 0x1ae   :  { %1052 = vmatprep.subr.bf16.mxu1 %v4955_v10  ;;  %4323 = vmatprep.subr.bf16.mxu0 %v4956_v12  ;;  %v5023_v10 = vld [vmem:[%s6875_s2 + $0x394] ss:$12 sps:$4 sm:$0xff]  }
 0x1b1   :  { %1053 = vmatpush1.bf16.msra.mxu1 %v4953_v13  ;;  %4324 = vmatpush3.bf16.msra.mxu0 %v4956_v12  ;;  %v5024_v12 = vld [vmem:[%s6875_s2 + $0x368] ss:$12 sps:$4 sm:$0xff]   ;;  %v5021_v13 = vld [vmem:[%s6875_s2 + $0x390] ss:$12 sps:$4 sm:$0xff]  }
 0x1b2   :  { %1054 = vmatprep.subr.bf16.mxu1 %v4959_v14  ;;  %4325 = vmatprep.subr.bf16.mxu0 %v4960_v15  ;;  %v5027_v14 = vld [vmem:[%s6875_s2 + $0x3ac] ss:$12 sps:$4 sm:$0xff]  }
 0x1b5   :  { %1055 = vmatpush1.bf16.msra.mxu1 %v4957_v16  ;;  %4326 = vmatpush3.bf16.msra.mxu0 %v4960_v15  ;;  %v5028_v15 = vld [vmem:[%s6875_s2 + $0x380] ss:$12 sps:$4 sm:$0xff]   ;;  %v5025_v16 = vld [vmem:[%s6875_s2 + $0x3a8] ss:$12 sps:$4 sm:$0xff]  }
 0x1b6   :  { %1056 = vmatprep.subr.bf16.mxu1 %v4963_v17  ;;  %4327 = vmatprep.subr.bf16.mxu0 %v4964_v18  ;;  %v5029_v17 = vld [vmem:[%s6875_s2 + $0x398] ss:$12 sps:$4 sm:$0xff]  }
 0x1b9   :  { %1057 = vmatpush1.bf16.msra.mxu1 %v4961_v19  ;;  %4328 = vmatpush3.bf16.msra.mxu0 %v4964_v18  ;;  %v5032_v18 = vld [vmem:[%s6875_s2 + $0x3c4] ss:$12 sps:$4 sm:$0xff]   ;;  %v5030_v19 = vld [vmem:[%s6875_s2 + $0x3c0] ss:$12 sps:$4 sm:$0xff]  }
 0x1ba   :  { %4329 = vmatprep.subr.bf16.mxu0 %v4965_v20  ;;  %1322 = vmatprep.subr.bf16.mxu1 %v4968_v21  ;;  %v5036_v21 = vld [vmem:[%s6875_s2 + $0x3dc] ss:$12 sps:$4 sm:$0xff]  }
 0x1bc   :  { %1075 = vmatmul.mubr.bf16.vlgmr.msra.gmra.mrb[4].mxu1 %v880_v6  ;;  %v5015_v6 = vld [vmem:[%s6875_s2 + $0x364] ss:$12 sps:$4 sm:$0xff]  }
 0x1bd   :  { %4330 = vmatpush3.bf16.msra.mxu0 %v4965_v20  ;;  %1323 = vmatpush1.bf16.msra.mxu1 %v4966_v22  ;;  %v5033_v20 = vld [vmem:[%s6875_s2 + $0x3b0] ss:$12 sps:$4 sm:$0xff]   ;;  %v5034_v22 = vld [vmem:[%s6875_s2 + $0x3d8] ss:$12 sps:$4 sm:$0xff]  }
 0x1be   :  { %4331 = vmatprep.subr.bf16.mxu0 %v4969_v23  ;;  %1324 = vmatprep.subr.bf16.mxu1 %v4972_v24  ;;  %v5040_v24 = vld [vmem:[%s6875_s2 + $0x3c8] ss:$12 sps:$4 sm:$0xff]  }
 0x1bf   :  { %1084 = vmatprep.mubr.bf16.mxu1 %v5204_v11 }
 0x1c1   :  { %4332 = vmatpush3.bf16.msra.mxu0 %v4969_v23  ;;  %1325 = vmatpush1.bf16.msra.mxu1 %v4970_v25  ;;  %v5039_v23 = vld [vmem:[%s6875_s2 + $0x3f4] ss:$12 sps:$4 sm:$0xff]  }
 0x1c2   :  { %1326 = vmatprep.subr.bf16.mxu1 %v4975_v26  ;;  %4337 = vmatprep.subr.bf16.mxu0 %v4976_v27  ;;  %v5756_v25 = vld [vmem:[#allocation2 + $0x30] sm:$0xff] }
 0x1c3   :  { %v5037_v26 = vld [vmem:[%s6875_s2 + $0x3f0] ss:$12 sps:$4 sm:$0xff]   ;;  %v1441_v29 = vpack.c.bf16 %v5756_v25, %v5526_v63 }
 0x1c4   :  { %1085 = vmatmul.mubr.bf16.gmra.mrb[8].mxu1 %v881_v32  ;;  %4334 = vmatmul.mubr.bf16.vlgmr.msra.gmra.mrb[8].mxu0 %v881_v32  ;;  %v5047_v63 = vld [vmem:[%s6875_s2 + $0x424] ss:$12 sps:$4 sm:$0xff]  }
 0x1c5   :  { %1327 = vmatpush1.bf16.msra.mxu1 %v4973_v30  ;;  %4338 = vmatpush3.bf16.msra.mxu0 %v4976_v27  ;;  %v1716_v27 = vld [vmem:[#allocation2 + $0x9] sm:$0xff] }
 0x1c6   :  { %4353 = vmatprep.mubr.bf16.mxu0 %v1160_v37  ;;  %1328 = vmatprep.subr.bf16.mxu1 %v4979_v33  ;;  %v5043_v30 = vld [vmem:[%s6875_s2 + $0x40c] ss:$12 sps:$4 sm:$0xff]   ;;  %v1720_v32 = vpack.c.bf16 %v1717_v28, %v1716_v27  ;;  %v5041_v33 = vld [vmem:[%s6875_s2 + $0x408] ss:$12 sps:$4 sm:$0xff]  }
 0x1c7   :  { %4339 = vmatprep.subr.bf16.mxu0 %v4980_v35  ;;  %1354 = vmatprep.mubr.bf16.mxu1 %v5204_v11  ;;  %v2277_v27 = vld [vmem:[#allocation2 + $0x14] sm:$0xff] }
 0x1c9   :  { %1329 = vmatpush1.bf16.msra.mxu1 %v4977_v38  ;;  %4340 = vmatpush3.bf16.msra.mxu0 %v4980_v35  ;;  %v5045_v35 = vld [vmem:[%s6875_s2 + $0x420] ss:$12 sps:$4 sm:$0xff]   ;;  %v5052_v38 = vld [vmem:[%s6875_s2 + $0x410] ss:$12 sps:$4 sm:$0xff]  }
 0x1ca   :  { %1330 = vmatprep.subr.bf16.mxu1 %v4983_v39  ;;  %4341 = vmatprep.subr.bf16.mxu0 %v4984_v40  ;;  %v5049_v39 = vld [vmem:[%s6875_s2 + $0x438] ss:$12 sps:$4 sm:$0xff]  }
 0x1cd   :  { %1331 = vmatpush1.bf16.msra.mxu1 %v4981_v41  ;;  %4342 = vmatpush3.bf16.msra.mxu0 %v4984_v40  ;;  %v5055_v40 = vld [vmem:[%s6875_s2 + $0x454] ss:$12 sps:$4 sm:$0xff]  }
 0x1ce   :  { %1332 = vmatprep.subr.bf16.mxu1 %v4987_v42  ;;  %4343 = vmatprep.subr.bf16.mxu0 %v4988_v43  ;;  %v5056_v41 = vld [vmem:[%s6875_s2 + $0x428] ss:$12 sps:$4 sm:$0xff]   ;;  %v5053_v42 = vld [vmem:[%s6875_s2 + $0x450] ss:$12 sps:$4 sm:$0xff]  }
 0x1d1   :  { %1333 = vmatpush1.bf16.msra.mxu1 %v4985_v44  ;;  %4344 = vmatpush3.bf16.msra.mxu0 %v4988_v43  ;;  %v5059_v43 = vld [vmem:[%s6875_s2 + $0x46c] ss:$12 sps:$4 sm:$0xff]  }
 0x1d2   :  { %1334 = vmatprep.subr.bf16.mxu1 %v4991_v46  ;;  %4345 = vmatprep.subr.bf16.mxu0 %v4992_v47  ;;  %v5060_v44 = vld [vmem:[%s6875_s2 + $0x440] ss:$12 sps:$4 sm:$0xff]   ;;  %v5057_v46 = vld [vmem:[%s6875_s2 + $0x468] ss:$12 sps:$4 sm:$0xff]  }
 0x1d5   :  { %1335 = vmatpush1.bf16.msra.mxu1 %v4989_v48  ;;  %4346 = vmatpush3.bf16.msra.mxu0 %v4992_v47  ;;  %v5061_v47 = vld [vmem:[%s6875_s2 + $0x458] ss:$12 sps:$4 sm:$0xff]  }
 0x1d6   :  { %1336 = vmatprep.subr.bf16.mxu1 %v4995_v49  ;;  %4347 = vmatprep.subr.bf16.mxu0 %v4996_v50  ;;  %v5064_v48 = vld [vmem:[%s6875_s2 + $0x484] ss:$12 sps:$4 sm:$0xff]   ;;  %v5062_v49 = vld [vmem:[%s6875_s2 + $0x480] ss:$12 sps:$4 sm:$0xff]  }
 0x1d9   :  { %1337 = vmatpush1.bf16.msra.mxu1 %v4993_v51  ;;  %4348 = vmatpush3.bf16.msra.mxu0 %v4996_v50  ;;  %v5065_v50 = vld [vmem:[%s6875_s2 + $0x470] ss:$12 sps:$4 sm:$0xff]  }
 0x1da   :  { %4349 = vmatprep.subr.bf16.mxu0 %v4997_v52  ;;  %1602 = vmatprep.subr.bf16.mxu1 %v5000_v53  ;;  %v5068_v51 = vld [vmem:[%s6875_s2 + $0x49c] ss:$12 sps:$4 sm:$0xff]   ;;  %v5071_v53 = vld [vmem:[%s6875_s2 + $0x4b4] ss:$12 sps:$4 sm:$0xff]  }
 0x1dc   :  { %1355 = vmatmul.mubr.bf16.vlgmr.msra.gmra.mrb[4].mxu1 %v1160_v37  ;;  %v5051_v37 = vld [vmem:[%s6875_s2 + $0x43c] ss:$12 sps:$4 sm:$0xff]  }
 0x1dd   :  { %4350 = vmatpush3.bf16.msra.mxu0 %v4997_v52  ;;  %1603 = vmatpush1.bf16.msra.mxu1 %v4998_v54  ;;  %v5066_v52 = vld [vmem:[%s6875_s2 + $0x498] ss:$12 sps:$4 sm:$0xff]   ;;  %v5072_v54 = vld [vmem:[%s6875_s2 + $0x488] ss:$12 sps:$4 sm:$0xff]  }
 0x1de   :  { %4351 = vmatprep.subr.bf16.mxu0 %v5001_v55  ;;  %1604 = vmatprep.subr.bf16.mxu1 %v5004_v56  ;;  %v1719_v56 = vld [vmem:[#allocation2 + $0x31] sm:$0xff] }
 0x1df   :  { %1364 = vmatprep.mubr.bf16.mxu1 %v5204_v11 }
 0x1e1   :  { %4352 = vmatpush3.bf16.msra.mxu0 %v5001_v55  ;;  %1605 = vmatpush1.bf16.msra.mxu1 %v5002_v57  ;;  %v1718_v55 = vld [vmem:[#allocation2 + $0x29] sm:$0xff] }
 0x1e2   :  { %1606 = vmatprep.subr.bf16.mxu1 %v5007_v58  ;;  %4357 = vmatprep.subr.bf16.mxu0 %v5008_v59  ;;  %v5069_v57 = vld [vmem:[%s6875_s2 + $0x4b0] ss:$12 sps:$4 sm:$0xff]   ;;  %v1721_v60 = vpack.c.bf16 %v1719_v56, %v1718_v55  ;;  %v2279_v55 = vld [vmem:[#allocation2 + $0x34] sm:$0xff] }
 0x1e3   :  { %v1996_v58 = vld [vmem:[#allocation2 + $0xa] sm:$0xff] }
 0x1e4   :  { %1365 = vmatmul.mubr.bf16.gmra.mrb[8].mxu1 %v1161_v1  ;;  %4354 = vmatmul.mubr.bf16.vlgmr.msra.gmra.mrb[8].mxu0 %v1161_v1  ;;  %v5133_v56 = vld [vmem:[%s6875_s2 + $0x630] ss:$12 sps:$4 sm:$0xff]  }
 0x1e5   :  { %1607 = vmatpush1.bf16.msra.mxu1 %v5005_v62  ;;  %4358 = vmatpush3.bf16.msra.mxu0 %v5008_v59  ;;  %v1997_v59 = vld [vmem:[#allocation2 + $0x12] sm:$0xff]  ;;  %v5076_v62 = vld [vmem:[%s6875_s2 + $0x4a0] ss:$12 sps:$4 sm:$0xff]  }
 0x1e6   :  { %4373 = vmatprep.mubr.bf16.mxu0 %v1440_v4  ;;  %1608 = vmatprep.subr.bf16.mxu1 %v5011_v2  ;;  %v2000_v1 = vpack.c.bf16 %v1997_v59, %v1996_v58  ;;  %v5073_v2 = vld [vmem:[%s6875_s2 + $0x4c8] ss:$12 sps:$4 sm:$0xff]   ;;  %v5139_v58 = vld [vmem:[%s6875_s2 + $0x64c] ss:$12 sps:$4 sm:$0xff]  }
 0x1e7   :  { %4359 = vmatprep.subr.bf16.mxu0 %v5012_v3  ;;  %1634 = vmatprep.mubr.bf16.mxu1 %v5204_v11  ;;  %v5140_v59 = vld [vmem:[%s6875_s2 + $0x620] ss:$12 sps:$4 sm:$0xff]  }
 0x1e9   :  { %1609 = vmatpush1.bf16.msra.mxu1 %v5009_v5  ;;  %4360 = vmatpush3.bf16.msra.mxu0 %v5012_v3  ;;  %v5079_v3 = vld [vmem:[%s6875_s2 + $0x4e4] ss:$12 sps:$4 sm:$0xff]   ;;  %v5077_v5 = vld [vmem:[%s6875_s2 + $0x4e0] ss:$12 sps:$4 sm:$0xff]  }
 0x1ea   :  { %1610 = vmatprep.subr.bf16.mxu1 %v5015_v6  ;;  %4361 = vmatprep.subr.bf16.mxu0 %v5016_v45  ;;  %v5083_v6 = vld [vmem:[%s6875_s2 + $0x4fc] ss:$12 sps:$4 sm:$0xff]  }
 0x1ed   :  { %1611 = vmatpush1.bf16.msra.mxu1 %v5013_v36  ;;  %4362 = vmatpush3.bf16.msra.mxu0 %v5016_v45  ;;  %v5084_v45 = vld [vmem:[%s6875_s2 + $0x4d0] ss:$12 sps:$4 sm:$0xff]   ;;  %v5081_v36 = vld [vmem:[%s6875_s2 + $0x4f8] ss:$12 sps:$4 sm:$0xff]  }
 0x1ee   :  { %1612 = vmatprep.subr.bf16.mxu1 %v5019_v7  ;;  %4363 = vmatprep.subr.bf16.mxu0 %v5020_v8  ;;  %v5087_v7 = vld [vmem:[%s6875_s2 + $0x514] ss:$12 sps:$4 sm:$0xff]  }
 0x1f1   :  { %1613 = vmatpush1.bf16.msra.mxu1 %v5017_v9  ;;  %4364 = vmatpush3.bf16.msra.mxu0 %v5020_v8  ;;  %v5088_v8 = vld [vmem:[%s6875_s2 + $0x4e8] ss:$12 sps:$4 sm:$0xff]   ;;  %v5085_v9 = vld [vmem:[%s6875_s2 + $0x510] ss:$12 sps:$4 sm:$0xff]  }
 0x1f2   :  { %1614 = vmatprep.subr.bf16.mxu1 %v5023_v10  ;;  %4365 = vmatprep.subr.bf16.mxu0 %v5024_v12  ;;  %v5091_v10 = vld [vmem:[%s6875_s2 + $0x52c] ss:$12 sps:$4 sm:$0xff]  }
 0x1f5   :  { %1615 = vmatpush1.bf16.msra.mxu1 %v5021_v13  ;;  %4366 = vmatpush3.bf16.msra.mxu0 %v5024_v12  ;;  %v5092_v12 = vld [vmem:[%s6875_s2 + $0x500] ss:$12 sps:$4 sm:$0xff]   ;;  %v5089_v13 = vld [vmem:[%s6875_s2 + $0x528] ss:$12 sps:$4 sm:$0xff]  }
 0x1f6   :  { %1616 = vmatprep.subr.bf16.mxu1 %v5027_v14  ;;  %4367 = vmatprep.subr.bf16.mxu0 %v5028_v15  ;;  %v5093_v14 = vld [vmem:[%s6875_s2 + $0x518] ss:$12 sps:$4 sm:$0xff]  }
 0x1f9   :  { %1617 = vmatpush1.bf16.msra.mxu1 %v5025_v16  ;;  %4368 = vmatpush3.bf16.msra.mxu0 %v5028_v15  ;;  %v5096_v15 = vld [vmem:[%s6875_s2 + $0x544] ss:$12 sps:$4 sm:$0xff]   ;;  %v5094_v16 = vld [vmem:[%s6875_s2 + $0x540] ss:$12 sps:$4 sm:$0xff]  }
 0x1fa   :  { %4369 = vmatprep.subr.bf16.mxu0 %v5029_v17  ;;  %1882 = vmatprep.subr.bf16.mxu1 %v5032_v18  ;;  %v5100_v18 = vld [vmem:[%s6875_s2 + $0x55c] ss:$12 sps:$4 sm:$0xff]  }
 0x1fc   :  { %1635 = vmatmul.mubr.bf16.vlgmr.msra.gmra.mrb[4].mxu1 %v1440_v4  ;;  %v5080_v4 = vld [vmem:[%s6875_s2 + $0x4b8] ss:$12 sps:$4 sm:$0xff]  }
 0x1fd   :  { %4370 = vmatpush3.bf16.msra.mxu0 %v5029_v17  ;;  %1883 = vmatpush1.bf16.msra.mxu1 %v5030_v19  ;;  %v5097_v17 = vld [vmem:[%s6875_s2 + $0x530] ss:$12 sps:$4 sm:$0xff]   ;;  %v5098_v19 = vld [vmem:[%s6875_s2 + $0x558] ss:$12 sps:$4 sm:$0xff]  }
 0x1fe   :  { %4371 = vmatprep.subr.bf16.mxu0 %v5033_v20  ;;  %1884 = vmatprep.subr.bf16.mxu1 %v5036_v21  ;;  %v5104_v21 = vld [vmem:[%s6875_s2 + $0x548] ss:$12 sps:$4 sm:$0xff]  }
 0x1ff   :  { %1644 = vmatprep.mubr.bf16.mxu1 %v5204_v11 }
 0x201   :  { %4372 = vmatpush3.bf16.msra.mxu0 %v5033_v20  ;;  %1885 = vmatpush1.bf16.msra.mxu1 %v5034_v22  ;;  %v5103_v20 = vld [vmem:[%s6875_s2 + $0x574] ss:$12 sps:$4 sm:$0xff]   ;;  %v1998_v22 = vld [vmem:[#allocation2 + $0x2a] sm:$0xff] }
 0x202   :  { %1886 = vmatprep.subr.bf16.mxu1 %v5039_v23  ;;  %4377 = vmatprep.subr.bf16.mxu0 %v5040_v24  ;;  %v1999_v23 = vld [vmem:[#allocation2 + $0x32] sm:$0xff] }
 0x203   :  { %v2001_v28 = vpack.c.bf16 %v1999_v23, %v1998_v22  ;;  %v2888_v23 = vld [vmem:[%s6876_s3 + $0x48] sm:$0xff] }
 0x204   :  { %1645 = vmatmul.mubr.bf16.gmra.mrb[8].mxu1 %v1441_v29  ;;  %4374 = vmatmul.mubr.bf16.vlgmr.msra.gmra.mrb[8].mxu0 %v1441_v29  ;;  %v5107_v29 = vld [vmem:[%s6875_s2 + $0x58c] ss:$12 sps:$4 sm:$0xff]  }
 0x205   :  { %1887 = vmatpush1.bf16.msra.mxu1 %v5037_v26  ;;  %4378 = vmatpush3.bf16.msra.mxu0 %v5040_v24  ;;  %v5101_v24 = vld [vmem:[%s6875_s2 + $0x570] ss:$12 sps:$4 sm:$0xff]  }
 0x206   :  { %4393 = vmatprep.mubr.bf16.mxu0 %v1720_v32  ;;  %1888 = vmatprep.subr.bf16.mxu1 %v5043_v30  ;;  %v2276_v26 = vld [vmem:[#allocation2 + $0xc] sm:$0xff] }
 0x207   :  { %4379 = vmatprep.subr.bf16.mxu0 %v5044_v31  ;;  %1914 = vmatprep.mubr.bf16.mxu1 %v5204_v11  ;;  %v5108_v30 = vld [vmem:[%s6875_s2 + $0x560] ss:$12 sps:$4 sm:$0xff]  }
 0x209   :  { %1889 = vmatpush1.bf16.msra.mxu1 %v5041_v33  ;;  %4380 = vmatpush3.bf16.msra.mxu0 %v5044_v31  ;;  %v2280_v31 = vpack.c.bf16 %v2277_v27, %v2276_v26  ;;  %v5111_v33 = vld [vmem:[%s6875_s2 + $0x5a4] ss:$12 sps:$4 sm:$0xff]   ;;  %v2932_v26 = vld [vmem:[%s6876_s3 + $0x1a8] sm:$0xff] }
 0x20a   :  { %1890 = vmatprep.subr.bf16.mxu1 %v5047_v63  ;;  %4381 = vmatprep.subr.bf16.mxu0 %v5048_v34  ;;  %v5112_v63 = vld [vmem:[%s6875_s2 + $0x578] ss:$12 sps:$4 sm:$0xff]   ;;  %v2892_v27 = vld [vmem:[%s6876_s3 + $0x68] sm:$0xff] }
 0x20d   :  { %1891 = vmatpush1.bf16.msra.mxu1 %v5045_v35  ;;  %4382 = vmatpush3.bf16.msra.mxu0 %v5048_v34  ;;  %v5109_v34 = vld [vmem:[%s6875_s2 + $0x5a0] ss:$12 sps:$4 sm:$0xff]   ;;  %v5115_v35 = vld [vmem:[%s6875_s2 + $0x5bc] ss:$12 sps:$4 sm:$0xff]  }
 0x20e   :  { %1892 = vmatprep.subr.bf16.mxu1 %v5051_v37  ;;  %4383 = vmatprep.subr.bf16.mxu0 %v5052_v38  ;;  %v5116_v37 = vld [vmem:[%s6875_s2 + $0x590] ss:$12 sps:$4 sm:$0xff]  }
 0x211   :  { %1893 = vmatpush1.bf16.msra.mxu1 %v5049_v39  ;;  %4384 = vmatpush3.bf16.msra.mxu0 %v5052_v38  ;;  %v5113_v38 = vld [vmem:[%s6875_s2 + $0x5b8] ss:$12 sps:$4 sm:$0xff]   ;;  %v5119_v39 = vld [vmem:[%s6875_s2 + $0x5d4] ss:$12 sps:$4 sm:$0xff]  }
 0x212   :  { %1894 = vmatprep.subr.bf16.mxu1 %v5055_v40  ;;  %4385 = vmatprep.subr.bf16.mxu0 %v5056_v41  ;;  %v5120_v40 = vld [vmem:[%s6875_s2 + $0x5a8] ss:$12 sps:$4 sm:$0xff]  }
 0x215   :  { %1895 = vmatpush1.bf16.msra.mxu1 %v5053_v42  ;;  %4386 = vmatpush3.bf16.msra.mxu0 %v5056_v41  ;;  %v5117_v41 = vld [vmem:[%s6875_s2 + $0x5d0] ss:$12 sps:$4 sm:$0xff]   ;;  %v5123_v42 = vld [vmem:[%s6875_s2 + $0x5ec] ss:$12 sps:$4 sm:$0xff]  }
 0x216   :  { %1896 = vmatprep.subr.bf16.mxu1 %v5059_v43  ;;  %4387 = vmatprep.subr.bf16.mxu0 %v5060_v44  ;;  %v5124_v43 = vld [vmem:[%s6875_s2 + $0x5c0] ss:$12 sps:$4 sm:$0xff]  }
 0x219   :  { %1897 = vmatpush1.bf16.msra.mxu1 %v5057_v46  ;;  %4388 = vmatpush3.bf16.msra.mxu0 %v5060_v44  ;;  %v5121_v44 = vld [vmem:[%s6875_s2 + $0x5e8] ss:$12 sps:$4 sm:$0xff]   ;;  %v5125_v46 = vld [vmem:[%s6875_s2 + $0x5d8] ss:$12 sps:$4 sm:$0xff]  }
 0x21a   :  { %4389 = vmatprep.subr.bf16.mxu0 %v5061_v47  ;;  %2162 = vmatprep.subr.bf16.mxu1 %v5064_v48  ;;  %v5126_v48 = vld [vmem:[%s6875_s2 + $0x600] ss:$12 sps:$4 sm:$0xff]  }
 0x21c   :  { %1915 = vmatmul.mubr.bf16.vlgmr.msra.gmra.mrb[4].mxu1 %v1720_v32  ;;  %v5105_v32 = vld [vmem:[%s6875_s2 + $0x588] ss:$12 sps:$4 sm:$0xff]  }
 0x21d   :  { %4390 = vmatpush3.bf16.msra.mxu0 %v5061_v47  ;;  %2163 = vmatpush1.bf16.msra.mxu1 %v5062_v49  ;;  %v5128_v47 = vld [vmem:[%s6875_s2 + $0x604] ss:$12 sps:$4 sm:$0xff]  }
 0x21e   :  { %4391 = vmatprep.subr.bf16.mxu0 %v5065_v50  ;;  %2164 = vmatprep.subr.bf16.mxu1 %v5068_v51  ;;  %v5129_v49 = vld [vmem:[%s6875_s2 + $0x5f0] ss:$12 sps:$4 sm:$0xff]   ;;  %v5130_v51 = vld [vmem:[%s6875_s2 + $0x618] ss:$12 sps:$4 sm:$0xff]  }
 0x21f   :  { %1924 = vmatprep.mubr.bf16.mxu1 %v5204_v11 }
 0x221   :  { %4392 = vmatpush3.bf16.msra.mxu0 %v5065_v50  ;;  %2165 = vmatpush1.bf16.msra.mxu1 %v5066_v52  ;;  %v5132_v50 = vld [vmem:[%s6875_s2 + $0x61c] ss:$12 sps:$4 sm:$0xff]   ;;  %v5135_v52 = vld [vmem:[%s6875_s2 + $0x634] ss:$12 sps:$4 sm:$0xff]  }
 0x222   :  { %2166 = vmatprep.subr.bf16.mxu1 %v5071_v53  ;;  %4397 = vmatprep.subr.bf16.mxu0 %v5072_v54  ;;  %v5136_v53 = vld [vmem:[%s6875_s2 + $0x608] ss:$12 sps:$4 sm:$0xff]  }
 0x224   :  { %1925 = vmatmul.mubr.bf16.gmra.mrb[8].mxu1 %v1721_v60  ;;  %4394 = vmatmul.mubr.bf16.vlgmr.msra.gmra.mrb[8].mxu0 %v1721_v60  ;;  %v5991_v60 = vld [vmem:[#allocation2] sm:$0xff] }
 0x225   :  { %2167 = vmatpush1.bf16.msra.mxu1 %v5069_v57  ;;  %4398 = vmatpush3.bf16.msra.mxu0 %v5072_v54  ;;  %v2278_v54 = vld [vmem:[#allocation2 + $0x2c] sm:$0xff] }
 0x226   :  { %4413 = vmatprep.mubr.bf16.mxu0 %v2000_v1  ;;  %2168 = vmatprep.subr.bf16.mxu1 %v5075_v61  ;;  %v2281_v57 = vpack.c.bf16 %v2279_v55, %v2278_v54  ;;  %v2560_v61 = vpack.c.bf16 %v5991_v60, %v5681_v0  ;;  %v5141_v0 = vld [vmem:[%s6875_s2 + $0x660] ss:$12 sps:$4 sm:$0xff]  }
 0x227   :  { %4399 = vmatprep.subr.bf16.mxu0 %v5076_v62  ;;  %2194 = vmatprep.mubr.bf16.mxu1 %v5204_v11  ;;  %v2912_v54 = vld [vmem:[%s6876_s3 + $0x108] sm:$0xff] }
 0x228   :  { %v2916_v55 = vld [vmem:[%s6876_s3 + $0x128] sm:$0xff] }
 0x229   :  { %2169 = vmatpush1.bf16.msra.mxu1 %v5073_v2  ;;  %4400 = vmatpush3.bf16.msra.mxu0 %v5076_v62  ;;  %v5137_v62 = vld [vmem:[%s6875_s2 + $0x648] ss:$12 sps:$4 sm:$0xff]   ;;  %v5144_v2 = vld [vmem:[%s6875_s2 + $0x638] ss:$12 sps:$4 sm:$0xff]  }
 0x22a   :  { %2170 = vmatprep.subr.bf16.mxu1 %v5079_v3  ;;  %4401 = vmatprep.subr.bf16.mxu0 %v5080_v4  ;;  %v5147_v3 = vld [vmem:[%s6875_s2 + $0x67c] ss:$12 sps:$4 sm:$0xff]  }
 0x22d   :  { %2171 = vmatpush1.bf16.msra.mxu1 %v5077_v5  ;;  %4402 = vmatpush3.bf16.msra.mxu0 %v5080_v4  ;;  %v5148_v4 = vld [vmem:[%s6875_s2 + $0x650] ss:$12 sps:$4 sm:$0xff]   ;;  %v5145_v5 = vld [vmem:[%s6875_s2 + $0x678] ss:$12 sps:$4 sm:$0xff]  }
 0x22e   :  { %2172 = vmatprep.subr.bf16.mxu1 %v5083_v6  ;;  %4403 = vmatprep.subr.bf16.mxu0 %v5084_v45  ;;  %v5151_v6 = vld [vmem:[%s6875_s2 + $0x694] ss:$12 sps:$4 sm:$0xff]  }
 0x231   :  { %2173 = vmatpush1.bf16.msra.mxu1 %v5081_v36  ;;  %4404 = vmatpush3.bf16.msra.mxu0 %v5084_v45  ;;  %v5152_v45 = vld [vmem:[%s6875_s2 + $0x668] ss:$12 sps:$4 sm:$0xff]   ;;  %v5149_v36 = vld [vmem:[%s6875_s2 + $0x690] ss:$12 sps:$4 sm:$0xff]  }
 0x232   :  { %2174 = vmatprep.subr.bf16.mxu1 %v5087_v7  ;;  %4405 = vmatprep.subr.bf16.mxu0 %v5088_v8  ;;  %v5155_v7 = vld [vmem:[%s6875_s2 + $0x6ac] ss:$12 sps:$4 sm:$0xff]  }
 0x235   :  { %2175 = vmatpush1.bf16.msra.mxu1 %v5085_v9  ;;  %4406 = vmatpush3.bf16.msra.mxu0 %v5088_v8  ;;  %v5156_v8 = vld [vmem:[%s6875_s2 + $0x680] ss:$12 sps:$4 sm:$0xff]  }
 0x236   :  { %2176 = vmatprep.subr.bf16.mxu1 %v5091_v10  ;;  %4407 = vmatprep.subr.bf16.mxu0 %v5092_v12  ;;  %v2880_v9 = vld [vmem:[%s6876_s3 + $0x8] sm:$0xff]  ;;  %v2883_v10 = vld [vmem:[%s6876_s3 + $0x20] sm:$0xff] }
 0x239   :  { %2177 = vmatpush1.bf16.msra.mxu1 %v5089_v13  ;;  %4408 = vmatpush3.bf16.msra.mxu0 %v5092_v12  ;;  %v5153_v12 = vld [vmem:[%s6875_s2 + $0x6a8] ss:$12 sps:$4 sm:$0xff]   ;;  %v5157_v13 = vld [vmem:[%s6875_s2 + $0x698] ss:$12 sps:$4 sm:$0xff]  }
 0x23a   :  { %4409 = vmatprep.subr.bf16.mxu0 %v5093_v14  ;;  %2442 = vmatprep.subr.bf16.mxu1 %v5096_v15  ;;  %v2879_v15 = vld [vmem:[%s6876_s3] sm:$0xff] }
 0x23c   :  { %2195 = vmatmul.mubr.bf16.vlgmr.msra.gmra.mrb[4].mxu1 %v2000_v1  ;;  %v5143_v1 = vld [vmem:[%s6875_s2 + $0x664] ss:$12 sps:$4 sm:$0xff]  }
 0x23d   :  { %4410 = vmatpush3.bf16.msra.mxu0 %v5093_v14  ;;  %2443 = vmatpush1.bf16.msra.mxu1 %v5094_v16  ;;  %v6044_v14 = vpack.c.bf16 %v2883_v10, %v2880_v9  ;;  %v2882_v16 = vld [vmem:[%s6876_s3 + $0x18] sm:$0xff] }
 0x23e   :  { %4411 = vmatprep.subr.bf16.mxu0 %v5097_v17  ;;  %2444 = vmatprep.subr.bf16.mxu1 %v5100_v18  ;;  %v2889_v18 = vld [vmem:[%s6876_s3 + $0x50] sm:$0xff]  ;;  %v2934_v10 = vld [vmem:[%s6876_s3 + $0x1b8] sm:$0xff] }
 0x23f   :  { %2204 = vmatprep.mubr.bf16.mxu1 %v5204_v11 }
 0x241   :  { %4412 = vmatpush3.bf16.msra.mxu0 %v5097_v17  ;;  %2445 = vmatpush1.bf16.msra.mxu1 %v5098_v19  ;;  %v2886_v17 = vld [vmem:[%s6876_s3 + $0x38] sm:$0xff] }
 0x242   :  { %2446 = vmatprep.subr.bf16.mxu1 %v5103_v20  ;;  %4417 = vmatprep.subr.bf16.mxu0 %v5104_v21  ;;  %v5158_v19 = vld [vmem:[%s6875_s2 + $0x6b0] ss:$12 sps:$4 sm:$0xff]   ;;  %v6062_v20 = vpack.c.bf16 %v2882_v16, %v2879_v15  ;;  %v6067_v22 = vpack.c.bf16 %v2889_v18, %v2886_v17  ;;  %v2936_v18 = vld [vmem:[%s6876_s3 + $0x1c8] sm:$0xff] }
 0x243   :  { %v2938_v16 = vld [vmem:[%s6876_s3 + $0x1d8] sm:$0xff]  ;;  %v2933_v17 = vld [vmem:[%s6876_s3 + $0x1b0] sm:$0xff] }
 0x244   :  { %2205 = vmatmul.mubr.bf16.gmra.mrb[8].mxu1 %v2001_v28  ;;  %4414 = vmatmul.mubr.bf16.vlgmr.msra.gmra.mrb[8].mxu0 %v2001_v28  ;;  %v2895_v28 = vld [vmem:[%s6876_s3 + $0x80] sm:$0xff] }
 0x245   :  { %2447 = vmatpush1.bf16.msra.mxu1 %v5101_v24  ;;  %4418 = vmatpush3.bf16.msra.mxu0 %v5104_v21  ;;  %v2885_v21 = vld [vmem:[%s6876_s3 + $0x30] sm:$0xff] }
 0x246   :  { %4433 = vmatprep.mubr.bf16.mxu0 %v2280_v31  ;;  %2448 = vmatprep.subr.bf16.mxu1 %v5107_v29  ;;  %v2929_v24 = vld [vmem:[%s6876_s3 + $0x190] sm:$0xff]  ;;  %v6086_v29 = vpack.c.bf16 %v2888_v23, %v2885_v21  ;;  %v6246_v21 = vpack.c.bf16 %v2936_v18, %v2933_v17  ;;  %v2887_v23 = vld [vmem:[%s6876_s3 + $0x40] sm:$0xff]  ;;  %v2958_v18 = vld [vmem:[%s6876_s3 + $0x278] sm:$0xff] }
 0x247   :  { %4419 = vmatprep.subr.bf16.mxu0 %v5108_v30  ;;  %2474 = vmatprep.mubr.bf16.mxu1 %v5204_v11 }
 0x249   :  { %2449 = vmatpush1.bf16.msra.mxu1 %v5105_v32  ;;  %4420 = vmatpush3.bf16.msra.mxu0 %v5108_v30  ;;  %v6088_v30 = vpack.c.bf16 %v2932_v26, %v2929_v24  ;;  %v2884_v32 = vld [vmem:[%s6876_s3 + $0x28] sm:$0xff]  ;;  %v2890_v24 = vld [vmem:[%s6876_s3 + $0x58] sm:$0xff] }
 0x24a   :  { %2450 = vmatprep.subr.bf16.mxu1 %v5111_v33  ;;  %4421 = vmatprep.subr.bf16.mxu0 %v5112_v63  ;;  %v6097_v33 = vpack.c.bf16 %v2895_v28, %v2892_v27  ;;  %v6255_v26 = vpack.c.bf16 %v2890_v24, %v2887_v23  ;;  %v2940_v27 = vld [vmem:[%s6876_s3 + $0x1e8] sm:$0xff]  ;;  %v2943_v28 = vld [vmem:[%s6876_s3 + $0x200] sm:$0xff]  ;;  %v2961_v23 = vld [vmem:[%s6876_s3 + $0x290] sm:$0xff] }
 0x24b   :  { %v2959_v24 = vld [vmem:[%s6876_s3 + $0x280] sm:$0xff] }
 0x24d   :  { %2451 = vmatpush1.bf16.msra.mxu1 %v5109_v34  ;;  %4422 = vmatpush3.bf16.msra.mxu0 %v5112_v63  ;;  %v2894_v63 = vld [vmem:[%s6876_s3 + $0x78] sm:$0xff] }
 0x24e   :  { %2452 = vmatprep.subr.bf16.mxu1 %v5115_v35  ;;  %4423 = vmatprep.subr.bf16.mxu0 %v5116_v37  ;;  %v2898_v34 = vld [vmem:[%s6876_s3 + $0x98] sm:$0xff]  ;;  %v2901_v35 = vld [vmem:[%s6876_s3 + $0xb0] sm:$0xff] }
 0x251   :  { %2453 = vmatpush1.bf16.msra.mxu1 %v5113_v38  ;;  %4424 = vmatpush3.bf16.msra.mxu0 %v5116_v37  ;;  %v2561_v38 = vpack.c.bf16 %v5991_v60, %v5756_v25  ;;  %v2904_v25 = vld [vmem:[%s6876_s3 + $0xc8] sm:$0xff] }
 0x252   :  { %2454 = vmatprep.subr.bf16.mxu1 %v5119_v39  ;;  %4425 = vmatprep.subr.bf16.mxu0 %v5120_v40 }
 0x255   :  { %2455 = vmatpush1.bf16.msra.mxu1 %v5117_v41  ;;  %4426 = vmatpush3.bf16.msra.mxu0 %v5120_v40  ;;  %v6120_v40 = vpack.c.bf16 %v2901_v35, %v2898_v34  ;;  %v2897_v41 = vld [vmem:[%s6876_s3 + $0x90] sm:$0xff]  ;;  %v2942_v34 = vld [vmem:[%s6876_s3 + $0x1f8] sm:$0xff] }
 0x256   :  { %2456 = vmatprep.subr.bf16.mxu1 %v5123_v42  ;;  %4427 = vmatprep.subr.bf16.mxu0 %v5124_v43  ;;  %v2900_v42 = vld [vmem:[%s6876_s3 + $0xa8] sm:$0xff] }
 0x259   :  { %2457 = vmatpush1.bf16.msra.mxu1 %v5121_v44  ;;  %4428 = vmatpush3.bf16.msra.mxu0 %v5124_v43  ;;  %v2907_v43 = vld [vmem:[%s6876_s3 + $0xe0] sm:$0xff]  ;;  %v6136_v44 = vpack.c.bf16 %v2900_v42, %v2897_v41  ;;  %v2893_v41 = vld [vmem:[%s6876_s3 + $0x70] sm:$0xff]  ;;  %v2896_v42 = vld [vmem:[%s6876_s3 + $0x88] sm:$0xff] }
 0x25a   :  { %4429 = vmatprep.subr.bf16.mxu0 %v5125_v46  ;;  %2722 = vmatprep.subr.bf16.mxu1 %v5128_v47  ;;  %v2903_v47 = vld [vmem:[%s6876_s3 + $0xc0] sm:$0xff] }
 0x25c   :  { %2475 = vmatmul.mubr.bf16.vlgmr.msra.gmra.mrb[4].mxu1 %v2280_v31  ;;  %v2881_v31 = vld [vmem:[%s6876_s3 + $0x10] sm:$0xff] }
 0x25d   :  { %4430 = vmatpush3.bf16.msra.mxu0 %v5125_v46  ;;  %2723 = vmatpush1.bf16.msra.mxu1 %v5126_v48  ;;  %v6111_v37 = vpack.c.bf16 %v2884_v32, %v2881_v31  ;;  %v6139_v46 = vpack.c.bf16 %v2907_v43, %v2904_v25  ;;  %v2906_v48 = vld [vmem:[%s6876_s3 + $0xd8] sm:$0xff]  ;;  %v2941_v31 = vld [vmem:[%s6876_s3 + $0x1f0] sm:$0xff]  ;;  %v6269_v32 = vpack.c.bf16 %v2943_v28, %v2940_v27 }
 0x25e   :  { %4431 = vmatprep.subr.bf16.mxu0 %v5129_v49  ;;  %2724 = vmatprep.subr.bf16.mxu1 %v5132_v50  ;;  %v2913_v50 = vld [vmem:[%s6876_s3 + $0x110] sm:$0xff]  ;;  %v6291_v25 = vpack.c.bf16 %v2896_v42, %v2893_v41  ;;  %v2946_v43 = vld [vmem:[%s6876_s3 + $0x218] sm:$0xff]  ;;  %v6377_v27 = vpack.c.bf16 %v2961_v23, %v2958_v18  ;;  %v2911_v41 = vld [vmem:[%s6876_s3 + $0x100] sm:$0xff] }
 0x25f   :  { %2484 = vmatprep.mubr.bf16.mxu1 %v5204_v11  ;;  %v2962_v28 = vld [vmem:[%s6876_s3 + $0x298] sm:$0xff] }
 0x260   :  { %6902 = vst [vmem:[#allocation7_spill] sm:$0xff] %v6377_v27  ;;  %v2914_v42 = vld [vmem:[%s6876_s3 + $0x118] sm:$0xff] }
 0x261   :  { %4432 = vmatpush3.bf16.msra.mxu0 %v5129_v49  ;;  %2725 = vmatpush1.bf16.msra.mxu1 %v5130_v51  ;;  %v2910_v49 = vld [vmem:[%s6876_s3 + $0xf8] sm:$0xff]  ;;  %v6154_v51 = vpack.c.bf16 %v2906_v48, %v2903_v47  ;;  %v2949_v47 = vld [vmem:[%s6876_s3 + $0x230] sm:$0xff]  ;;  %v2947_v48 = vld [vmem:[%s6876_s3 + $0x220] sm:$0xff] }
 0x262   :  { %2726 = vmatprep.subr.bf16.mxu1 %v5135_v52  ;;  %4437 = vmatprep.subr.bf16.mxu0 %v5136_v53  ;;  %v6157_v52 = vpack.c.bf16 %v2913_v50, %v2910_v49  ;;  %v6305_v49 = vpack.c.bf16 %v2949_v47, %v2946_v43  ;;  %v2950_v50 = vld [vmem:[%s6876_s3 + $0x238] sm:$0xff]  ;;  %v6399_v43 = vpack.c.bf16 %v2914_v42, %v2911_v41  ;;  %v2964_v47 = vld [vmem:[%s6876_s3 + $0x2a8] sm:$0xff]  ;;  %v2923_v41 = vld [vmem:[%s6876_s3 + $0x160] sm:$0xff] }
 0x263   :  { %v2974_v23 = vld [vmem:[%s6876_s3 + $0x2f8] sm:$0xff] }
 0x264   :  { %2485 = vmatmul.mubr.bf16.gmra.mrb[8].mxu1 %v2281_v57  ;;  %4434 = vmatmul.mubr.bf16.vlgmr.msra.gmra.mrb[8].mxu0 %v2281_v57  ;;  %v2926_v42 = vld [vmem:[%s6876_s3 + $0x178] sm:$0xff] }
 0x265   :  { %2727 = vmatpush1.bf16.msra.mxu1 %v5133_v56  ;;  %4438 = vmatpush3.bf16.msra.mxu0 %v5136_v53  ;;  %v2909_v53 = vld [vmem:[%s6876_s3 + $0xf0] sm:$0xff]  ;;  %v2919_v56 = vld [vmem:[%s6876_s3 + $0x140] sm:$0xff] }
 0x266   :  { %4453 = vmatprep.mubr.bf16.mxu0 %v2560_v61  ;;  %2728 = vmatprep.subr.bf16.mxu1 %v5139_v58  ;;  %v6172_v57 = vpack.c.bf16 %v2912_v54, %v2909_v53  ;;  %v6175_v58 = vpack.c.bf16 %v2919_v56, %v2916_v55  ;;  %v2945_v53 = vld [vmem:[%s6876_s3 + $0x210] sm:$0xff]  ;;  %v2948_v54 = vld [vmem:[%s6876_s3 + $0x228] sm:$0xff]  ;;  %v6316_v55 = vpack.c.bf16 %v2950_v50, %v2947_v48  ;;  %v2967_v48 = vld [vmem:[%s6876_s3 + $0x2c0] sm:$0xff] }
 0x267   :  { %4439 = vmatprep.subr.bf16.mxu0 %v5140_v59  ;;  %2754 = vmatprep.mubr.bf16.mxu1 %v5204_v11  ;;  %v6318_v56 = vpack.c.bf16 %v2948_v54, %v2945_v53  ;;  %v2965_v50 = vld [vmem:[%s6876_s3 + $0x2b0] sm:$0xff]  ;;  %v6413_v53 = vpack.c.bf16 %v2967_v48, %v2964_v47  ;;  %v2968_v54 = vld [vmem:[%s6876_s3 + $0x2c8] sm:$0xff]  ;;  %v6471_v47 = vpack.c.bf16 %v2926_v42, %v2923_v41 }
 0x268   :  { %v2976_v48 = vld [vmem:[%s6876_s3 + $0x308] sm:$0xff] }
 0x269   :  { %2729 = vmatpush1.bf16.msra.mxu1 %v5137_v62  ;;  %4440 = vmatpush3.bf16.msra.mxu0 %v5140_v59  ;;  %v2915_v59 = vld [vmem:[%s6876_s3 + $0x120] sm:$0xff]  ;;  %v2922_v62 = vld [vmem:[%s6876_s3 + $0x158] sm:$0xff]  ;;  %6904 = vst [vmem:[#allocation9_spill] sm:$0xff] %v6413_v53  ;;  %v5169_v42 = vld [vmem:[%s6873_s0 + $0x8] sm:$0xff] }
 0x26a   :  { %2730 = vmatprep.subr.bf16.mxu1 %v5143_v1  ;;  %4441 = vmatprep.subr.bf16.mxu0 %v5144_v2  ;;  %v2925_v1 = vld [vmem:[%s6876_s3 + $0x170] sm:$0xff] }
 0x26d   :  { %2731 = vmatpush1.bf16.msra.mxu1 %v5141_v0  ;;  %4442 = vmatpush3.bf16.msra.mxu0 %v5144_v2  ;;  %v6193_v0 = vpack.c.bf16 %v2925_v1, %v2922_v62  ;;  %v2952_v1 = vld [vmem:[%s6876_s3 + $0x248] sm:$0xff] }
 0x26e   :  { %2732 = vmatprep.subr.bf16.mxu1 %v5147_v3  ;;  %4443 = vmatprep.subr.bf16.mxu0 %v5148_v4  ;;  %v2921_v3 = vld [vmem:[%s6876_s3 + $0x150] sm:$0xff] }
 0x271   :  { %2733 = vmatpush1.bf16.msra.mxu1 %v5145_v5  ;;  %4444 = vmatpush3.bf16.msra.mxu0 %v5148_v4  ;;  %v2924_v4 = vld [vmem:[%s6876_s3 + $0x168] sm:$0xff] }
 0x272   :  { %2734 = vmatprep.subr.bf16.mxu1 %v5151_v6  ;;  %4445 = vmatprep.subr.bf16.mxu0 %v5152_v45  ;;  %v2928_v5 = vld [vmem:[%s6876_s3 + $0x188] sm:$0xff]  ;;  %v2931_v6 = vld [vmem:[%s6876_s3 + $0x1a0] sm:$0xff] }
 0x275   :  { %2735 = vmatpush1.bf16.msra.mxu1 %v5149_v36  ;;  %4446 = vmatpush3.bf16.msra.mxu0 %v5152_v45  ;;  %v6208_v45 = vpack.c.bf16 %v2924_v4, %v2921_v3  ;;  %v6211_v36 = vpack.c.bf16 %v2931_v6, %v2928_v5  ;;  %v2955_v3 = vld [vmem:[%s6876_s3 + $0x260] sm:$0xff]  ;;  %v2953_v4 = vld [vmem:[%s6876_s3 + $0x250] sm:$0xff]  ;;  %v2956_v6 = vld [vmem:[%s6876_s3 + $0x268] sm:$0xff] }
 0x276   :  { %2736 = vmatprep.subr.bf16.mxu1 %v5155_v7  ;;  %4447 = vmatprep.subr.bf16.mxu0 %v5156_v8  ;;  %v2927_v7 = vld [vmem:[%s6876_s3 + $0x180] sm:$0xff]  ;;  %v6341_v5 = vpack.c.bf16 %v2955_v3, %v2952_v1  ;;  %v6424_v1 = vpack.c.bf16 %v2968_v54, %v2965_v50 }
 0x277   :  { %v2979_v50 = vld [vmem:[%s6876_s3 + $0x320] sm:$0xff] }
 0x278   :  { %v6481_v54 = vpack.c.bf16 %v2979_v50, %v2976_v48 }
 0x279   :  { %2737 = vmatpush1.bf16.msra.mxu1 %v5153_v12  ;;  %4448 = vmatpush3.bf16.msra.mxu0 %v5156_v8  ;;  %v2930_v8 = vld [vmem:[%s6876_s3 + $0x198] sm:$0xff]  ;;  %v2937_v12 = vld [vmem:[%s6876_s3 + $0x1d0] sm:$0xff] }
 0x27a   :  { %4449 = vmatprep.subr.bf16.mxu0 %v5157_v13  ;;  %4496 = vmatprep.subr.bf16.mxu1 %v6044_v14  ;;  %v6220_v9 = vpack.c.bf16 %v2930_v8, %v2927_v7  ;;  %v6233_v15 = vpack.c.bf16 %v2937_v12, %v2934_v10  ;;  %v2951_v7 = vld [vmem:[%s6876_s3 + $0x240] sm:$0xff]  ;;  %v2954_v8 = vld [vmem:[%s6876_s3 + $0x258] sm:$0xff]  ;;  %v6352_v10 = vpack.c.bf16 %v2956_v6, %v2953_v4  ;;  %v2917_v4 = vld [vmem:[%s6876_s3 + $0x130] sm:$0xff] }
 0x27b   :  { %v6354_v12 = vpack.c.bf16 %v2954_v8, %v2951_v7  ;;  %v2920_v6 = vld [vmem:[%s6876_s3 + $0x148] sm:$0xff]  ;;  %v2970_v8 = vld [vmem:[%s6876_s3 + $0x2d8] sm:$0xff]  ;;  %6908 = vst [vmem:[#allocation13_spill] sm:$0xff] %v6481_v54 }
 0x27c   :  { %2755 = vmatmul.mubr.bf16.vlgmr.msra.gmra.mrb[4].mxu1 %v2560_v61  ;;  %v2918_v61 = vld [vmem:[%s6876_s3 + $0x138] sm:$0xff]  ;;  %v6435_v7 = vpack.c.bf16 %v2920_v6, %v2917_v4 }
 0x27d   :  { %4450 = vmatpush3.bf16.msra.mxu0 %v5157_v13  ;;  %2764 = vmatprep.mubr.bf16.mxu1 %v5204_v11  ;;  %v2891_v11 = vld [vmem:[%s6876_s3 + $0x60] sm:$0xff]  ;;  %v6190_v2 = vpack.c.bf16 %v2918_v61, %v2915_v59  ;;  %v2902_v61 = vld [vmem:[%s6876_s3 + $0xb8] sm:$0xff] }
 0x27e   :  { %4451 = vmatprep.subr.bf16.mxu0 %v5158_v19  ;;  %4498 = vmatpush1.bf16.msra.mxu1 %v6062_v20  ;;  %v6116_v39 = vpack.c.bf16 %v2894_v63, %v2891_v11  ;;  %v2935_v13 = vld [vmem:[%s6876_s3 + $0x1c0] sm:$0xff]  ;;  %v2944_v11 = vld [vmem:[%s6876_s3 + $0x208] sm:$0xff] }
 0x27f   :  { %4500 = vmatprep.subr.bf16.mxu1 %v6067_v22  ;;  %v2939_v63 = vld [vmem:[%s6876_s3 + $0x1e0] sm:$0xff]  ;;  %v6280_v35 = vpack.c.bf16 %v2944_v11, %v2941_v31  ;;  %v2957_v31 = vld [vmem:[%s6876_s3 + $0x270] sm:$0xff]  ;;  %v2960_v11 = vld [vmem:[%s6876_s3 + $0x288] sm:$0xff] }
 0x280   :  { %v2899_v59 = vld [vmem:[%s6876_s3 + $0xa0] sm:$0xff] }
 0x281   :  { %4452 = vmatpush3.bf16.msra.mxu0 %v5158_v19  ;;  %v6244_v19 = vpack.c.bf16 %v2938_v16, %v2935_v13  ;;  %v6327_v62 = vpack.c.bf16 %v2902_v61, %v2899_v59  ;;  %v2905_v13 = vld [vmem:[%s6876_s3 + $0xd0] sm:$0xff]  ;;  %v2908_v16 = vld [vmem:[%s6876_s3 + $0xe8] sm:$0xff]  ;;  %v2963_v59 = vld [vmem:[%s6876_s3 + $0x2a0] sm:$0xff] }
 0x282   :  { %4502 = vmatpush1.bf16.msra.mxu1 %v6086_v29  ;;  %4576 = vmatprep.subr.bf16.mxu0 %v6088_v30  ;;  %v6363_v17 = vpack.c.bf16 %v2908_v16, %v2905_v13  ;;  %v2966_v61 = vld [vmem:[%s6876_s3 + $0x2b8] sm:$0xff]  ;;  %v2973_v13 = vld [vmem:[%s6876_s3 + $0x2f0] sm:$0xff]  ;;  %v2971_v16 = vld [vmem:[%s6876_s3 + $0x2e0] sm:$0xff] }
 0x283   :  { %4504 = vmatprep.subr.bf16.mxu1 %v6097_v33  ;;  %v6426_v3 = vpack.c.bf16 %v2966_v61, %v2963_v59  ;;  %v6449_v18 = vpack.c.bf16 %v2973_v13, %v2970_v8  ;;  %v6881_v59 = vmov 0.0|0.0   ;;  %v5166_v13 = vld [vmem:[%s6873_s0 + $0x18] sm:$0xff] }
 0x284   :  { %2765 = vmatmul.mubr.bf16.gmra.mrb[8].mxu1 %v2561_v38  ;;  %4454 = vmatmul.mubr.bf16.vlgmr.msra.gmra.mrb[8].mxu0 %v2561_v38  ;;  %v6282_v38 = vpack.c.bf16 %v2942_v34, %v2939_v63  ;;  %v6388_v63 = vpack.c.bf16 %v2962_v28, %v2959_v24  ;;  %v6390_v34 = vpack.c.bf16 %v2960_v11, %v2957_v31  ;;  %v2969_v24 = vld [vmem:[%s6876_s3 + $0x2d0] sm:$0xff]  ;;  %v2972_v28 = vld [vmem:[%s6876_s3 + $0x2e8] sm:$0xff] }
 0x285   :  { %4578 = vmatpush3.bf16.msra.mxu0 %v6111_v37  ;;  %6905 = vst [vmem:[#allocation10_spill] sm:$0xff] %v6426_v3  ;;  %6906 = vst [vmem:[#allocation11_spill] sm:$0xff] %v6449_v18  ;;  %v6460_v31 = vpack.c.bf16 %v2974_v23, %v2971_v16  ;;  %v6462_v11 = vpack.c.bf16 %v2972_v28, %v2969_v24  ;;  %v5167_v23 = vld [vmem:[%s6873_s0 + $0x20] sm:$0xff] }
 0x286   :  { %4506 = vmatpush1.bf16.msra.mxu1 %v6116_v39  ;;  %4580 = vmatprep.subr.bf16.mxu0 %v6244_v19  ;;  %6903 = vst [vmem:[#allocation8_spill] sm:$0xff] %v6390_v34  ;;  %v5168_v28 = vld [vmem:[%s6873_s0] sm:$0xff] }
 0x287   :  { %4508 = vmatprep.subr.bf16.mxu1 %v6120_v40  ;;  %6907 = vst [vmem:[#allocation12_spill] sm:$0xff] %v6462_v11 }
 0x289   :  { %4582 = vmatpush3.bf16.msra.mxu0 %v6255_v26 }
 0x28a   :  { %4510 = vmatpush1.bf16.msra.mxu1 %v6136_v44  ;;  %4584 = vmatprep.subr.bf16.mxu0 %v6280_v35 }
 0x28b   :  { %4512 = vmatprep.subr.bf16.mxu1 %v6139_v46 }
 0x28d   :  { %4586 = vmatpush3.bf16.msra.mxu0 %v6291_v25 }
 0x28e   :  { %4514 = vmatpush1.bf16.msra.mxu1 %v6154_v51  ;;  %4588 = vmatprep.subr.bf16.mxu0 %v6316_v55 }
 0x28f   :  { %4516 = vmatprep.subr.bf16.mxu1 %v6157_v52 }
 0x291   :  { %4590 = vmatpush3.bf16.msra.mxu0 %v6327_v62 }
 0x292   :  { %4518 = vmatpush1.bf16.msra.mxu1 %v6172_v57  ;;  %4592 = vmatprep.subr.bf16.mxu0 %v6352_v10 }
 0x293   :  { %4520 = vmatprep.subr.bf16.mxu1 %v6175_v58 }
 0x295   :  { %4594 = vmatpush3.bf16.msra.mxu0 %v6363_v17 }
 0x296   :  { %4522 = vmatpush1.bf16.msra.mxu1 %v6190_v2  ;;  %4596 = vmatprep.subr.bf16.mxu0 %v6388_v63 }
 0x297   :  { %4524 = vmatprep.subr.bf16.mxu1 %v6193_v0 }
 0x299   :  { %4598 = vmatpush3.bf16.msra.mxu0 %v6399_v43 }
 0x29a   :  { %4526 = vmatpush1.bf16.msra.mxu1 %v6208_v45  ;;  %4600 = vmatprep.subr.bf16.mxu0 %v6424_v1 }
 0x29b   :  { %4528 = vmatprep.subr.bf16.mxu1 %v6211_v36 }
 0x29d   :  { %4602 = vmatpush3.bf16.msra.mxu0 %v6435_v7 }
 0x29e   :  { %4530 = vmatpush1.bf16.msra.mxu1 %v6220_v9  ;;  %4604 = vmatprep.subr.bf16.mxu0 %v6460_v31 }
 0x29f   :  { %4532 = vmatprep.subr.bf16.mxu1 %v6233_v15 }
 0x2a1   :  { %4606 = vmatpush3.bf16.msra.mxu0 %v6471_v47 }
 0x2a2   :  { %4534 = vmatpush1.bf16.msra.mxu1 %v6246_v21  ;;  %4607 = vmatprep.subr.bf16.mxu0 %v6881_v59 }
 0x2a3   :  { %4536 = vmatprep.subr.bf16.mxu1 %v6269_v32 }
 0x2a6   :  { %4538 = vmatpush1.bf16.msra.mxu1 %v6282_v38 }
 0x2a7   :  { %4540 = vmatprep.subr.bf16.mxu1 %v6305_v49 }
 0x2aa   :  { %4542 = vmatpush1.bf16.msra.mxu1 %v6318_v56 }
 0x2ab   :  { %4544 = vmatprep.subr.bf16.mxu1 %v6341_v5 }
 0x2ae   :  { %4546 = vmatpush1.bf16.msra.mxu1 %v6354_v12 }
 0x2af   :  { %4548 = vmatprep.subr.bf16.mxu1 %v6377_v27 }
 0x2b2   :  { %4550 = vmatpush1.bf16.msra.mxu1 %v6390_v34 }
 0x2b3   :  { %4552 = vmatprep.subr.bf16.mxu1 %v6413_v53 }
 0x2b6   :  { %4554 = vmatpush1.bf16.msra.mxu1 %v6426_v3 }
 0x2b7   :  { %4556 = vmatprep.subr.bf16.mxu1 %v6449_v18 }
 0x2ba   :  { %4558 = vmatpush1.bf16.msra.mxu1 %v6462_v11 }
 0x2bb   :  { %4560 = vmatprep.subr.bf16.mxu1 %v6481_v54 }
 0x34f   :  { %v2756_v61 = vpop.f32.mrb[4].mxu1 }
 0x350   :  { %v2758_v4 = vpop.f32.mrb[5].mxu1  ;;  %v6499_v41 = vadd.f32 %v5168_v28, %v2756_v61 }
 0x351   :  { %v2760_v6 = vpop.f32.mrb[6].mxu1  ;;  %v6504_v48 = vadd.f32 %v5169_v42, %v2758_v4  ;;  %v5171_v4 = vld [vmem:[%s6873_s0 + $0x38] sm:$0xff] }
 0x352   :  { %v2762_v8 = vpop.f32.mrb[7].mxu1  ;;  %v6489_v16 = vadd.f32 %v5166_v13, %v2760_v6  ;;  %6911 = vst [vmem:[#allocation16_spill] sm:$0xff] %v6499_v41 }
 0x353   :  { %v6494_v24 = vadd.f32 %v5167_v23, %v2762_v8  ;;  %6912 = vst [vmem:[#allocation17_spill] sm:$0xff] %v6504_v48  ;;  %v5170_v8 = vld [vmem:[%s6873_s0 + $0x30] sm:$0xff] }
 0x354   :  { %6909 = vst [vmem:[#allocation14_spill] sm:$0xff] %v6489_v16  ;;  %v2848_v13 = vadd.f32 %v6489_v16, %v6499_v41  ;;  %v5172_v16 = vld [vmem:[%s6873_s0 + $0x10] sm:$0xff] }
 0x355   :  { %6910 = vst [vmem:[#allocation15_spill] sm:$0xff] %v6494_v24  ;;  %v2857_v28 = vadd.f32 %v6494_v24, %v6504_v48  ;;  %v5173_v24 = vld [vmem:[%s6873_s0 + $0x48] sm:$0xff] }
 0x357   :  { %v2766_v50 = vpop.f32.mrb[8].mxu1  ;;  %v4455_v6 = vpop.f32.mrb[8].mxu0 }
 0x358   :  { %v6511_v23 = vadd.f32 %v5170_v8, %v2766_v50  ;;  %v2768_v59 = vpop.f32.mrb[9].mxu1  ;;  %v2809_v61 = vpop.f32.mrb[9].mxu0 }
 0x359   :  { %v6518_v42 = vadd.f32 %v5171_v4, %v2768_v59  ;;  %v6523_v41 = vadd.f32 %v5172_v16, %v2809_v61  ;;  %v2770_v54 = vpop.f32.mrb[10].mxu1  ;;  %v4456_v50 = vpop.f32.mrb[10].mxu0  ;;  %v5174_v59 = vld [vmem:[%s6873_s0 + $0x40] sm:$0xff] }
 0x35a   :  { %6913 = vst [vmem:[#allocation18_spill] sm:$0xff] %v6511_v23  ;;  %v2849_v8 = vadd.f32 %v2848_v13, %v6511_v23  ;;  %v6529_v48 = vadd.f32 %v5173_v24, %v2770_v54  ;;  %v2772_v11 = vpop.f32.mrb[11].mxu1  ;;  %v2812_v18 = vpop.f32.mrb[11].mxu0  ;;  %v6534_v4 = vadd.f32 %v5174_v59, %v4455_v6  ;;  %v5175_v13 = vld [vmem:[%s6873_s0 + $0x50] sm:$0xff]  ;;  %v5176_v54 = vld [vmem:[%s6873_s0 + $0x28] sm:$0xff] }
 0x35b   :  { %6914 = vst [vmem:[#allocation19_spill] sm:$0xff] %v6518_v42  ;;  %6915 = vst [vmem:[#allocation20_spill] sm:$0xff] %v6523_v41  ;;  %v2858_v16 = vadd.f32 %v2857_v28, %v6518_v42  ;;  %v6540_v61 = vadd.f32 %v5175_v13, %v2772_v11  ;;  %v6545_v24 = vadd.f32 %v5176_v54, %v2812_v18  ;;  %v2866_v6 = vsel %vm206_vm0, %v6523_v41, 0.0  ;;  %v5177_v28 = vld [vmem:[%s6873_s0 + $0x58] sm:$0xff] }
 0x35c   :  { %6916 = vst [vmem:[#allocation21_spill] sm:$0xff] %v6529_v48  ;;  %6917 = vst [vmem:[#allocation22_spill] sm:$0xff] %v6534_v4  ;;  %v2850_v23 = vadd.f32 %v2849_v8, %v6529_v48  ;;  %v6553_v59 = vadd.f32 %v5177_v28, %v4456_v50  ;;  %v2869_v18 = vsel %vm206_vm0, %v6534_v4, 0.0  ;;  %v2984_v4 = vld [vmem:[%s6876_s3 + $0x348] sm:$0xff] }
 0x35d   :  { %6918 = vst [vmem:[#allocation23_spill] sm:$0xff] %v6540_v61  ;;  %v2859_v11 = vadd.f32 %v2858_v16, %v6540_v61  ;;  %v2867_v13 = vsel %vm206_vm0, %v6545_v24, 0.0  ;;  %v2975_v61 = vld [vmem:[%s6876_s3 + $0x300] sm:$0xff] }
 0x35e   :  { %6919 = vst [vmem:[#allocation24_spill] sm:$0xff] %v6553_v59  ;;  %v2851_v42 = vrot.slane %v2850_v23, 4  ;;  %v2868_v3 = vadd.f32 %v2867_v13, %v2866_v6  ;;  %v2871_v41 = vsel %vm206_vm0, %v6553_v59, 0.0 }
 0x35f   :  { %v2860_v8 = vrot.slane %v2859_v11, 4 }
 0x360   :  { %v2852_v54 = vadd.f32 %v2851_v42, %v2850_v23  ;;  %v2870_v48 = vadd.f32 %v2869_v18, %v2868_v3  ;;  %v2978_v23 = vld [vmem:[%s6876_s3 + $0x318] sm:$0xff]  ;;  %v2977_v3 = vld [vmem:[%s6876_s3 + $0x310] sm:$0xff] }
 0x361   :  { %v2861_v53 = vadd.f32 %v2860_v8, %v2859_v11  ;;  %v6580_v11 = vpack.c.bf16 %v2978_v23, %v2975_v61  ;;  %v2981_v8 = vld [vmem:[%s6876_s3 + $0x330] sm:$0xff]  ;;  %v2986_v61 = vld [vmem:[%s6876_s3 + $0x358] sm:$0xff]  ;;  %v2987_v23 = vld [vmem:[%s6876_s3 + $0x360] sm:$0xff] }
 0x362   :  { %v2853_v34 = vrot.slane %v2852_v54, 2  ;;  %v2872_v50 = vadd.f32 %v2871_v41, %v2870_v48  ;;  %v2980_v41 = vld [vmem:[%s6876_s3 + $0x328] sm:$0xff]  ;;  %v2985_v48 = vld [vmem:[%s6876_s3 + $0x350] sm:$0xff] }
 0x363   :  { %v2862_v28 = vrot.slane %v2861_v53, 2  ;;  %v6582_v18 = vpack.c.bf16 %v2980_v41, %v2977_v3  ;;  %v6921_v41 = vmov 0.0|0.0  }
 0x364   :  { %v2854_v27 = vadd.f32 %v2853_v34, %v2852_v54  ;;  %v2873_v13 = vrot.slane %v2872_v50, 4 }
 0x365   :  { %v2863_v16 = vadd.f32 %v2862_v28, %v2861_v53  ;;  %v2982_v53 = vld [vmem:[%s6876_s3 + $0x338] sm:$0xff] }
 0x366   :  { %v2855_v6 = vrot.slane %v2854_v27, 1  ;;  %v2874_v28 = vadd.f32 %v2873_v13, %v2872_v50  ;;  %v6587_v59 = vpack.c.bf16 %v2985_v48, %v2982_v53  ;;  %v2991_v50 = vld [vmem:[%s6876_s3 + $0x380] sm:$0xff]  ;;  %v2990_v53 = vld [vmem:[%s6876_s3 + $0x378] sm:$0xff]  ;;  %v2992_v48 = vld [vmem:[%s6876_s3 + $0x388] sm:$0xff] }
 0x367   :  { %v2864_v34 = vrot.slane %v2863_v16, 1 }
 0x368   :  { %v2856_v54 = vadd.f32 %v2855_v6, %v2854_v27  ;;  %v2988_v27 = vld [vmem:[%s6876_s3 + $0x368] sm:$0xff]  ;;  %v6606_v6 = vpack.c.bf16 %v2984_v4, %v2981_v8  ;;  %v2875_v3 = vrot.slane %v2874_v28, 2  ;;  %v2989_v4 = vld [vmem:[%s6876_s3 + $0x370] sm:$0xff] }
 0x369   :  { %v2865_v42 = vadd.f32 %v2864_v34, %v2863_v16  ;;  %v2983_v16 = vld [vmem:[%s6876_s3 + $0x340] sm:$0xff]  ;;  %v6615_v34 = vpack.c.bf16 %v2991_v50, %v2988_v27  ;;  %v2997_v8 = vld [vmem:[%s6876_s3 + $0x3b0] sm:$0xff] }
 0x36a   :  { %6920 = vst [vmem:[#allocation25_spill] sm:$0xff] %v6606_v6  ;;  %v6608_v13 = vpack.c.bf16 %v2986_v61, %v2983_v16  ;;  %v6639_v16 = vpack.c.bf16 %v2992_v48, %v2989_v4  ;;  %v2993_v61 = vld [vmem:[%s6876_s3 + $0x390] sm:$0xff]  ;;  %v2876_v27 = vadd.f32 %v2875_v3, %v2874_v28 }
 0x36b   :  { %3066 = vmatprep.mubr.f32.mxu1 %v2865_v42  ;;  %3208 = vmatprep.mubr.f32.mxu0 %v2865_v42  ;;  %v2994_v42 = vld [vmem:[%s6876_s3 + $0x398] sm:$0xff] }
 0x36c   :  { %3067 = vmatmul.mubr.f32.vlgmr.msra.gmra.mrb[12].mxu1 %v2856_v54  ;;  %3209 = vmatmul.mubr.f32.vlgmr.msra.gmra.mrb[12].mxu0 %v2856_v54  ;;  %v6637_v54 = vpack.c.bf16 %v2990_v53, %v2987_v23  ;;  %v6646_v50 = vpack.c.bf16 %v2997_v8, %v2994_v42  ;;  %v2995_v23 = vld [vmem:[%s6876_s3 + $0x3a0] sm:$0xff]  ;;  %v2998_v53 = vld [vmem:[%s6876_s3 + $0x3b8] sm:$0xff]  ;;  %v2877_v4 = vrot.slane %v2876_v27, 1 }
 0x36d   :  { %4562 = vmatpush1.bf16.msra.mxu1 %v6580_v11  ;;  %4609 = vmatpush3.bf16.msra.mxu0 %v6582_v18  ;;  %v6661_v3 = vpack.c.bf16 %v2998_v53, %v2995_v23  ;;  %v6937_v8 = vld [vmem:[#allocation22_spill] sm:$0xff]  ;;  %v6938_v23 = vld [vmem:[#allocation23_spill] sm:$0xff] }
 0x36e   :  { %4564 = vmatprep.subr.bf16.mxu1 %v6587_v59  ;;  %4610 = vmatprep.subr.bf16.mxu0 %v6921_v41  ;;  %v2878_v48 = vadd.f32 %v2877_v4, %v2876_v27 }
 0x36f   :  { %3137 = vmatprep.mubr.f32.mxu1 %v5991_v60  ;;  %4473 = vmatprep.mubr.msk.f32.mxu0 %vm5206_vm2, %v5991_v60 }
 0x371   :  { %4566 = vmatpush1.bf16.msra.mxu1 %v6606_v6  ;;  %4612 = vmatpush3.bf16.msra.mxu0 %v6608_v13  ;;  %v2996_v6 = vld [vmem:[%s6876_s3 + $0x3a8] sm:$0xff] }
 0x372   :  { %4568 = vmatprep.subr.bf16.mxu1 %v6615_v34  ;;  %4613 = vmatprep.subr.bf16.mxu0 %v6921_v41  ;;  %v6659_v28 = vpack.c.bf16 %v2996_v6, %v2993_v61 }
 0x375   :  { %4570 = vmatpush1.bf16.msra.mxu1 %v6637_v54  ;;  %4615 = vmatpush3.bf16.msra.mxu0 %v6639_v16 }
 0x376   :  { %4572 = vmatprep.subr.bf16.mxu1 %v6646_v50  ;;  %4616 = vmatprep.subr.bf16.mxu0 %v6921_v41 }
 0x379   :  { %4574 = vmatpush1.bf16.msra.mxu1 %v6659_v28  ;;  %4618 = vmatpush3.bf16.msra.mxu0 %v6661_v3 }
 0x37a   :  { %4620 = vmatprep.subr.bf16.mxu0 %v6044_v14  ;;  %4700 = vmatprep.subr.bf16.mxu1 %v6088_v30  ;;  %v6922_v14 = vld [vmem:[#allocation7_spill] sm:$0xff] }
 0x37b   :  { %v6926_v30 = vld [vmem:[#allocation11_spill] sm:$0xff] }
 0x37c   :  { %4049 = vmatmul.mubr.msk.f32.vlgmr.msra.gmra.mrb[12].mxu1 %vm206_vm0, %v2878_v48  ;;  %4474 = vmatmul.mubr.msk.f32.vlgmr.msra.gmra.mrb[14].mxu0 %vm206_vm0, %v2878_v48 }
 0x37d   :  { %4622 = vmatpush1.bf16.msra.mxu0 %v6062_v20  ;;  %4702 = vmatpush3.bf16.msra.mxu1 %v6111_v37  ;;  %v6923_v20 = vld [vmem:[#allocation8_spill] sm:$0xff]  ;;  %v6928_v37 = vld [vmem:[#allocation13_spill] sm:$0xff] }
 0x37e   :  { %4624 = vmatprep.subr.bf16.mxu0 %v6067_v22  ;;  %4704 = vmatprep.subr.bf16.mxu1 %v6244_v19  ;;  %v6924_v22 = vld [vmem:[#allocation9_spill] sm:$0xff] }
 0x381   :  { %4626 = vmatpush1.bf16.msra.mxu0 %v6086_v29  ;;  %4706 = vmatpush3.bf16.msra.mxu1 %v6255_v26  ;;  %v6925_v29 = vld [vmem:[#allocation10_spill] sm:$0xff]  ;;  %v6929_v26 = vld [vmem:[#allocation16_spill] sm:$0xff] }
 0x382   :  { %4628 = vmatprep.subr.bf16.mxu0 %v6097_v33  ;;  %4708 = vmatprep.subr.bf16.mxu1 %v6280_v35  ;;  %v6927_v33 = vld [vmem:[#allocation12_spill] sm:$0xff]  ;;  %v6930_v35 = vld [vmem:[#allocation14_spill] sm:$0xff] }
 0x385   :  { %4630 = vmatpush1.bf16.msra.mxu0 %v6116_v39  ;;  %4710 = vmatpush3.bf16.msra.mxu1 %v6291_v25  ;;  %v6931_v25 = vld [vmem:[#allocation18_spill] sm:$0xff] }
 0x386   :  { %4632 = vmatprep.subr.bf16.mxu0 %v6120_v40  ;;  %4712 = vmatprep.subr.bf16.mxu1 %v6316_v55  ;;  %v6932_v55 = vld [vmem:[#allocation21_spill] sm:$0xff] }
 0x389   :  { %4634 = vmatpush1.bf16.msra.mxu0 %v6136_v44  ;;  %4714 = vmatpush3.bf16.msra.mxu1 %v6327_v62 }
 0x38a   :  { %4636 = vmatprep.subr.bf16.mxu0 %v6139_v46  ;;  %4716 = vmatprep.subr.bf16.mxu1 %v6352_v10  ;;  %v3287_v46 = vlaneseq }
 0x38d   :  { %4638 = vmatpush1.bf16.msra.mxu0 %v6154_v51  ;;  %4718 = vmatpush3.bf16.msra.mxu1 %v6363_v17  ;;  %v6719_v51 = vshrl.u32 %v3287_v46, 7 }
 0x38e   :  { %4640 = vmatprep.subr.bf16.mxu0 %v6157_v52  ;;  %4720 = vmatprep.subr.bf16.mxu1 %v6388_v63 }
 0x38f   :  { %v6722_v52 = vsub.s32 0, %v6719_v51 }
 0x391   :  { %4642 = vmatpush1.bf16.msra.mxu0 %v6172_v57  ;;  %4722 = vmatpush3.bf16.msra.mxu1 %v6399_v43 }
 0x392   :  { %4644 = vmatprep.subr.bf16.mxu0 %v6175_v58  ;;  %4724 = vmatprep.subr.bf16.mxu1 %v6424_v1  ;;  %v6935_v1 = vld [vmem:[#allocation19_spill] sm:$0xff] }
 0x395   :  { %4646 = vmatpush1.bf16.msra.mxu0 %v6190_v2  ;;  %4726 = vmatpush3.bf16.msra.mxu1 %v6435_v7 }
 0x396   :  { %4648 = vmatprep.subr.bf16.mxu0 %v6193_v0  ;;  %4728 = vmatprep.subr.bf16.mxu1 %v6460_v31 }
 0x399   :  { %4650 = vmatpush1.bf16.msra.mxu0 %v6208_v45  ;;  %4730 = vmatpush3.bf16.msra.mxu1 %v6471_v47  ;;  %v6936_v47 = vld [vmem:[#allocation20_spill] sm:$0xff] }
 0x39a   :  { %4652 = vmatprep.subr.bf16.mxu0 %v6211_v36  ;;  %4731 = vmatprep.subr.bf16.mxu1 %v6921_v41 }
 0x39d   :  { %4654 = vmatpush1.bf16.msra.mxu0 %v6220_v9 }
 0x39e   :  { %4656 = vmatprep.subr.bf16.mxu0 %v6233_v15 }
 0x3a1   :  { %4658 = vmatpush1.bf16.msra.mxu0 %v6246_v21 }
 0x3a2   :  { %4660 = vmatprep.subr.bf16.mxu0 %v6269_v32 }
 0x3a5   :  { %4662 = vmatpush1.bf16.msra.mxu0 %v6282_v38 }
 0x3a6   :  { %4664 = vmatprep.subr.bf16.mxu0 %v6305_v49 }
 0x3a9   :  { %4666 = vmatpush1.bf16.msra.mxu0 %v6318_v56 }
 0x3aa   :  { %4668 = vmatprep.subr.bf16.mxu0 %v6341_v5  ;;  %v6933_v5 = vld [vmem:[#allocation17_spill] sm:$0xff] }
 0x3ad   :  { %4670 = vmatpush1.bf16.msra.mxu0 %v6354_v12  ;;  %v6934_v12 = vld [vmem:[#allocation15_spill] sm:$0xff] }
 0x3ae   :  { %4672 = vmatprep.subr.bf16.mxu0 %v6922_v14 }
 0x3b1   :  { %4674 = vmatpush1.bf16.msra.mxu0 %v6923_v20  ;;  %v6939_v20 = vld [vmem:[#allocation24_spill] sm:$0xff] }
 0x3b2   :  { %4676 = vmatprep.subr.bf16.mxu0 %v6924_v22 }
 0x3b5   :  { %4678 = vmatpush1.bf16.msra.mxu0 %v6925_v29 }
 0x3b6   :  { %4680 = vmatprep.subr.bf16.mxu0 %v6926_v30 }
 0x3b9   :  { %4682 = vmatpush1.bf16.msra.mxu0 %v6927_v33 }
 0x3ba   :  { %4684 = vmatprep.subr.bf16.mxu0 %v6928_v37 }
 0x43f   :  { %v4209_v39 = vpop.f32.mrb[12].mxu0 }
 0x440   :  { %v4210_v40 = vpop.f32.mrb[13].mxu0 }
 0x441   :  { %v4211_v44 = vadd.f32 %v4210_v40, %v4209_v39 }
 0x44f   :  { %v3139_v57 = vpop.f32.mrb[12].mxu1  ;;  %v3280_v58 = vpop.f32.mrb[14].mxu0 }
 0x450   :  { %v3284_v2 = vmul.f32 0.001953125, %v3139_v57  ;;  %v3281_v0 = vadd.f32 %v4211_v44, %v3280_v58  ;;  %v3141_v45 = vpop.f32.mrb[13].mxu1  ;;  %v4475_v36 = vpop.f32.mrb[15].mxu0 }
 0x451   :  { %v3285_v9 = vmul.f32 0.001953125, %v3141_v45 }
 0x452   :  { %v3290_v15 = vrot.slane %v3284_v2, %v6722_v52  ;;  %v3286_v19 = vmul.f32 0.001953125, %v3281_v0 }
 0x453   :  { %v3294_v21 = vrot.slane %v3285_v9, %v6722_v52 }
 0x454   :  { %v6727_v32 = vsub.f32 %v6929_v26, %v3290_v15  ;;  %v6730_v38 = vsub.f32 %v6930_v35, %v3290_v15  ;;  %v6733_v49 = vsub.f32 %v6931_v25, %v3290_v15  ;;  %v6736_v56 = vsub.f32 %v6932_v55, %v3290_v15 }
 0x455   :  { %v3298_v62 = vrot.slane %v3286_v19, %v6722_v52  ;;  %v6740_v10 = vsub.f32 %v6933_v5, %v3294_v21  ;;  %v6743_v17 = vsub.f32 %v6934_v12, %v3294_v21  ;;  %v6750_v7 = vsub.f32 %v6935_v1, %v3294_v21 }
 0x456   :  { %v3311_v63 = vmul.f32 %v6727_v32, %v6727_v32  ;;  %v3314_v43 = vmul.f32 %v6730_v38, %v6730_v38  ;;  %v3317_v31 = vmul.f32 %v6733_v49, %v6733_v49  ;;  %v6764_v53 = vsub.f32 %v6938_v23, %v3294_v21  ;;  %v6940_v23 = vld [vmem:[#allocation25_spill] sm:$0xff] }
 0x457   :  { %v6755_v6 = vsub.f32 %v6936_v47, %v3298_v62  ;;  %v6758_v42 = vsub.f32 %v6545_v24, %v3298_v62  ;;  %v6761_v61 = vsub.f32 %v6937_v8, %v3298_v62  ;;  %v3312_v4 = vmul.f32 %v6740_v10, %v6740_v10 }
 0x458   :  { %v3323_v27 = vadd.f32 %v3314_v43, %v3311_v63  ;;  %v3315_v48 = vmul.f32 %v6743_v17, %v6743_v17  ;;  %v3320_v14 = vmul.f32 %v6736_v56, %v6736_v56  ;;  %v6773_v22 = vsub.f32 %v6939_v20, %v3298_v62 }
 0x459   :  { %v3313_v24 = vmul.f32 %v6755_v6, %v6755_v6  ;;  %v3316_v29 = vmul.f32 %v6758_v42, %v6758_v42  ;;  %v3319_v33 = vmul.f32 %v6761_v61, %v6761_v61  ;;  %v3318_v37 = vmul.f32 %v6750_v7, %v6750_v7 }
 0x45a   :  { %v3324_v30 = vadd.f32 %v3323_v27, %v3317_v31  ;;  %v3332_v39 = vadd.f32 %v3315_v48, %v3312_v4  ;;  %v3321_v57 = vmul.f32 %v6764_v53, %v6764_v53  ;;  %v3322_v0 = vmul.f32 %v6773_v22, %v6773_v22 }
 0x45b   :  { %v3341_v40 = vsel %vm206_vm0, %v3313_v24, 0.0  ;;  %v3342_v44 = vsel %vm206_vm0, %v3316_v29, 0.0  ;;  %v3344_v45 = vsel %vm206_vm0, %v3319_v33, 0.0  ;;  %v3684_v29 = vsub.s32 2, %v6719_v51  ;;  %v3701_v33 = vld [vmem:[%s6878_s5] sm:$0x7] }
 0x45c   :  { %v3343_v46 = vadd.f32 %v3342_v44, %v3341_v40  ;;  %v3333_v58 = vadd.f32 %v3332_v39, %v3318_v37  ;;  %v3325_v2 = vadd.f32 %v3324_v30, %v3320_v14  ;;  %v3346_v26 = vsel %vm206_vm0, %v3322_v0, 0.0  ;;  %v3672_v30 = vld [vmem:[%s6877_s4] sm:$0x7]  ;;  %s5207_s4 = smov [#allocation4]  }
 0x45d   :  { %v3742_v37 = vld [vmem:[%s6879_s6] sm:$0x7]  ;;  %v3680_v39 = vsub.s32 1, %v6719_v51  ;;  %v3677_v44 = vrot.slane %v3672_v30, %v6722_v52  ;;  %s3800_s5 = sshll.u32 %s5207_s4, 4  ;;  %s3801_s5 = int_to_ptr.vmem [resolvable:$true] %s3800_s5 }
 0x45e   :  { %v3334_v36 = vadd.f32 %v3333_v58, %v3321_v57  ;;  %v3326_v9 = vrot.slane %v3325_v2, 4  ;;  %v3345_v15 = vadd.f32 %v3344_v45, %v3343_v46  ;;  %v3706_v46 = vrot.slane %v3701_v33, %v6722_v52  ;;  %s5178_s6 = scalar_lea.vmem %s3801_s5, 1536  ;;  %p5183_p1 = scmp.lt.s32.totalorder %s3801_s5, %s3801_s5 }
 0x45f   :  { %v3685_v57 = vrot.slane %v3672_v30, %v3684_v29  ;;  %v3747_v0 = vrot.slane %v3742_v37, %v6722_v52  ;;  %v3714_v45 = vrot.slane %v3701_v33, %v3684_v29  ;;  %v6830_v51 = vrot.slane %v3742_v37, %v3680_v39  ;;  %p5179_p0 = scmp.ne.s32.totalorder %s3801_s5, %s5178_s6  ;;  %p5184_p2 = scmp.lt.s32.totalorder %s5178_s6, %s5178_s6 }
 0x460   :  { %v3335_v19 = vrot.slane %v3334_v36, 4  ;;  %v3327_v21 = vadd.f32 %v3326_v9, %v3325_v2  ;;  %v3347_v55 = vadd.f32 %v3346_v26, %v3345_v15 }
 0x461   :  { %p5185_p3 = por %p5184_p2, %p5183_p1 }
 0x462   :  { %v3336_v35 = vadd.f32 %v3335_v19, %v3334_v36  ;;  %v3328_v25 = vrot.slane %v3327_v21, 2  ;;  %v3348_v43 = vrot.slane %v3347_v55, 4  ;;  %v3755_v36 = vrot.slane %v3742_v37, %v3684_v29 }
 0x463   :  { %v6826_v19 = vrot.slane %v3672_v30, %v3680_v39  ;;  %p5186_p4 = pnand %p5185_p3, %p5179_p0 }
 0x464   :  { %v3337_v62 = vrot.slane %v3336_v35, 2  ;;  %v3329_v5 = vadd.f32 %v3328_v25, %v3327_v21  ;;  %v3349_v8 = vadd.f32 %v3348_v43, %v3347_v55  ;;  %v6828_v21 = vrot.slane %v3701_v33, %v3680_v39 }
 0x466   :  { %v3338_v12 = vadd.f32 %v3337_v62, %v3336_v35  ;;  %v3330_v63 = vrot.slane %v3329_v5, 1  ;;  %v3350_v27 = vrot.slane %v3349_v8, 2 }
 0x468   :  { %v3339_v1 = vrot.slane %v3338_v12, 1  ;;  %v3331_v47 = vadd.f32 %v3330_v63, %v3329_v5 }
 0x46a   :  { %v3340_v31 = vadd.f32 %v3339_v1, %v3338_v12 }
 0x46c   :  { %3421 = vmatprep.mubr.f32.mxu0 %v3340_v31  ;;  %3563 = vmatprep.mubr.f32.mxu1 %v3340_v31 }
 0x46d   :  { %3422 = vmatmul.mubr.f32.vlgmr.msra.gmra.mrb[16].mxu0 %v3331_v47  ;;  %3564 = vmatmul.mubr.f32.vlgmr.msra.gmra.mrb[14].mxu1 %v3331_v47 }
 0x46e   :  { %4686 = vmatpush1.bf16.msra.mxu0 %v6580_v11  ;;  %4733 = vmatpush3.bf16.msra.mxu1 %v6582_v18  ;;  %v3351_v11 = vadd.f32 %v3350_v27, %v3349_v8 }
 0x46f   :  { %4688 = vmatprep.subr.bf16.mxu0 %v6587_v59  ;;  %4734 = vmatprep.subr.bf16.mxu1 %v6921_v41 }
 0x470   :  { %3492 = vmatprep.mubr.f32.mxu0 %v5991_v60  ;;  %4492 = vmatprep.mubr.msk.f32.mxu1 %vm5206_vm2, %v5991_v60  ;;  %v3352_v59 = vrot.slane %v3351_v11, 1 }
 0x472   :  { %4690 = vmatpush1.bf16.msra.mxu0 %v6940_v23  ;;  %4736 = vmatpush3.bf16.msra.mxu1 %v6608_v13  ;;  %v3353_v60 = vadd.f32 %v3352_v59, %v3351_v11 }
 0x473   :  { %4692 = vmatprep.subr.bf16.mxu0 %v6615_v34  ;;  %4737 = vmatprep.subr.bf16.mxu1 %v6921_v41 }
 0x476   :  { %4694 = vmatpush1.bf16.msra.mxu0 %v6637_v54  ;;  %4739 = vmatpush3.bf16.msra.mxu1 %v6639_v16 }
 0x477   :  { %4696 = vmatprep.subr.bf16.mxu0 %v6646_v50  ;;  %4740 = vmatprep.subr.bf16.mxu1 %v6921_v41 }
 0x47a   :  { %4698 = vmatpush1.bf16.msra.mxu0 %v6659_v28  ;;  %4742 = vmatpush3.bf16.msra.mxu1 %v6661_v3 }
 0x47d   :  { %4051 = vmatmul.mubr.msk.f32.vlgmr.msra.gmra.mrb[16].mxu0 %vm206_vm0, %v3353_v60  ;;  %4493 = vmatmul.mubr.msk.f32.vlgmr.msra.gmra.mrb[16].mxu1 %vm206_vm0, %v3353_v60 }
 0x540   :  { %v4253_v18 = vpop.f32.mrb[14].mxu1 }
 0x541   :  { %v4254_v13 = vpop.f32.mrb[15].mxu1 }
 0x542   :  { %v4255_v34 = vadd.f32 %v4254_v13, %v4253_v18 }
 0x550   :  { %v3494_v54 = vpop.f32.mrb[16].mxu0  ;;  %v3635_v4 = vpop.f32.mrb[16].mxu1 }
 0x551   :  { %v3639_v16 = vmul.f32 0.001953125, %v3494_v54  ;;  %v3636_v48 = vadd.f32 %v4255_v34, %v3635_v4  ;;  %v3496_v50 = vpop.f32.mrb[17].mxu0  ;;  %v4494_v14 = vpop.f32.mrb[17].mxu1 }
 0x552   :  { %v3640_v41 = vmul.f32 0.001953125, %v3496_v50 }
 0x553   :  { %v3642_v20 = vadd.f32 0.001, %v3639_v16  ;;  %v3641_v24 = vmul.f32 0.001953125, %v3636_v48 }
 0x554   :  { %v3643_v28 = vadd.f32 0.001, %v3640_v41 }
 0x555   :  { %5159 = vrsqrt.f32 %v3642_v20  ;;  %v3644_v3 = vadd.f32 0.001, %v3641_v24 }
 0x556   :  { %5161 = vrsqrt.f32 %v3643_v28 }
 0x557   :  { %5163 = vrsqrt.f32 %v3644_v3 }
 0x55f   :  { %v5160_v40 = vpop.eup %5159 }
 0x560   :  { %v5162_v58 = vpop.eup %5161  ;;  %v3651_v2 = vrot.slane %v5160_v40, %v6722_v52 }
 0x561   :  { %v5164_v9 = vpop.eup %5163  ;;  %v3655_v15 = vrot.slane %v5162_v58, %v6722_v52 }
 0x562   :  { %v3660_v26 = vmul.f32 %v3651_v2, %v6727_v32  ;;  %v3663_v35 = vmul.f32 %v3651_v2, %v6730_v38  ;;  %v3666_v25 = vmul.f32 %v3651_v2, %v6733_v49  ;;  %v3669_v55 = vmul.f32 %v3651_v2, %v6736_v56 }
 0x563   :  { %v3659_v62 = vrot.slane %v5164_v9, %v6722_v52  ;;  %v3661_v5 = vmul.f32 %v3655_v15, %v6740_v10  ;;  %v3664_v12 = vmul.f32 %v3655_v15, %v6743_v17  ;;  %v3667_v63 = vmul.f32 %v3655_v15, %v6750_v7 }
 0x564   :  { %v3689_v43 = vmul.f32 %v3677_v44, %v3660_v26  ;;  %v3692_v1 = vmul.f32 %v3677_v44, %v3663_v35  ;;  %v3695_v31 = vmul.f32 %v3677_v44, %v3666_v25  ;;  %v3698_v47 = vmul.f32 %v3677_v44, %v3669_v55 }
 0x565   :  { %v3662_v32 = vmul.f32 %v3659_v62, %v6755_v6  ;;  %v3665_v38 = vmul.f32 %v3659_v62, %v6758_v42  ;;  %v3668_v49 = vmul.f32 %v3659_v62, %v6761_v61  ;;  %v3671_v56 = vmul.f32 %v3659_v62, %v6773_v22 }
 0x566   :  { %v3718_v8 = vadd.f32 %v3706_v46, %v3689_v43  ;;  %v3721_v52 = vadd.f32 %v3706_v46, %v3692_v1  ;;  %v3724_v27 = vadd.f32 %v3706_v46, %v3695_v31  ;;  %v3727_v10 = vadd.f32 %v3706_v46, %v3698_v47 }
 0x567   :  { %v3691_v23 = vmul.f32 %v3685_v57, %v3662_v32  ;;  %v3694_v17 = vmul.f32 %v3685_v57, %v3665_v38  ;;  %v3697_v11 = vmul.f32 %v3685_v57, %v3668_v49  ;;  %v3700_v7 = vmul.f32 %v3685_v57, %v3671_v56 }
 0x568   :  { %vm3730_vm3 = vcmp.ge.f32.partialorder %v3718_v8, 0.0  ;;  %vm3733_vm4 = vcmp.ge.f32.partialorder %v3721_v52, 0.0  ;;  %vm3736_vm5 = vcmp.ge.f32.partialorder %v3724_v27, 0.0  ;;  %vm3739_vm6 = vcmp.ge.f32.partialorder %v3727_v10, 0.0 }
 0x569   :  { %v3759_v59 = vmul.f32 %v3747_v0, %v3718_v8  ;;  %v3762_v6 = vmul.f32 %v3747_v0, %v3721_v52  ;;  %v3765_v60 = vmul.f32 %v3747_v0, %v3724_v27  ;;  %v3768_v42 = vmul.f32 %v3747_v0, %v3727_v10 }
 0x56a   :  { %v3720_v18 = vadd.f32 %v3714_v45, %v3691_v23  ;;  %v3723_v61 = vadd.f32 %v3714_v45, %v3694_v17  ;;  %v3726_v13 = vadd.f32 %v3714_v45, %v3697_v11  ;;  %v3729_v22 = vadd.f32 %v3714_v45, %v3700_v7 }
 0x56b   :  { %v3771_v34 = vsel %vm3730_vm3, %v3718_v8, %v3759_v59  ;;  %v3774_v54 = vsel %vm3733_vm4, %v3721_v52, %v3762_v6  ;;  %v3777_v4 = vsel %vm3736_vm5, %v3724_v27, %v3765_v60  ;;  %v3780_v16 = vsel %vm3739_vm6, %v3727_v10, %v3768_v42 }
 0x56c   :  { %3783 = vst [vmem:[#allocation4] sm:$0xff] %v3771_v34  ;;  %3786 = vst [vmem:[#allocation4 + $0x18] sm:$0xff] %v3774_v54  ;;  %vm3732_vm7 = vcmp.ge.f32.partialorder %v3720_v18, 0.0  ;;  %vm3735_vm8 = vcmp.ge.f32.partialorder %v3723_v61, 0.0  ;;  %vm3738_vm9 = vcmp.ge.f32.partialorder %v3726_v13, 0.0  ;;  %vm3741_vm10 = vcmp.ge.f32.partialorder %v3729_v22, 0.0 }
 0x56d   :  { %3789 = vst [vmem:[#allocation4 + $0x30] sm:$0xff] %v3777_v4  ;;  %3792 = vst [vmem:[#allocation4 + $0x48] sm:$0xff] %v3780_v16  ;;  %v3761_v48 = vmul.f32 %v3755_v36, %v3720_v18  ;;  %v3764_v50 = vmul.f32 %v3755_v36, %v3723_v61  ;;  %v3767_v14 = vmul.f32 %v3755_v36, %v3726_v13 }
 0x56e   :  { %v3770_v41 = vmul.f32 %v3755_v36, %v3729_v22  ;;  %v3670_v20 = vmul.f32 %v3655_v15, %v6764_v53  ;;  %v3690_v24 = vmul.f32 %v6826_v19, %v3661_v5  ;;  %v3693_v28 = vmul.f32 %v6826_v19, %v3664_v12 }
 0x56f   :  { %v3696_v3 = vmul.f32 %v6826_v19, %v3667_v63  ;;  %v3773_v29 = vsel %vm3732_vm7, %v3720_v18, %v3761_v48  ;;  %v3776_v30 = vsel %vm3735_vm8, %v3723_v61, %v3764_v50  ;;  %v3779_v33 = vsel %vm3738_vm9, %v3726_v13, %v3767_v14 }
 0x570   :  { %v3782_v37 = vsel %vm3741_vm10, %v3729_v22, %v3770_v41  ;;  %3785 = vst.msk [vmem:[#allocation4 + $0x10] sm:$0xff] %vm206_vm0, %v3773_v29  ;;  %3788 = vst.msk [vmem:[#allocation4 + $0x28] sm:$0xff] %vm206_vm0, %v3776_v30  ;;  %v3699_v53 = vmul.f32 %v6826_v19, %v3670_v20  ;;  %v3719_v39 = vadd.f32 %v6828_v21, %v3690_v24 }
 0x571   :  { %3791 = vst.msk [vmem:[#allocation4 + $0x40] sm:$0xff] %vm206_vm0, %v3779_v33  ;;  %3794 = vst.msk [vmem:[#allocation4 + $0x58] sm:$0xff] %vm206_vm0, %v3782_v37  ;;  %v3722_v40 = vadd.f32 %v6828_v21, %v3693_v28  ;;  %v3725_v44 = vadd.f32 %v6828_v21, %v3696_v3 }
 0x572   :  { %v3728_v46 = vadd.f32 %v6828_v21, %v3699_v53  ;;  %vm3731_vm11 = vcmp.ge.f32.partialorder %v3719_v39, 0.0  ;;  %v3760_v57 = vmul.f32 %v6830_v51, %v3719_v39 }
 0x573   :  { %vm3734_vm12 = vcmp.ge.f32.partialorder %v3722_v40, 0.0  ;;  %vm3737_vm13 = vcmp.ge.f32.partialorder %v3725_v44, 0.0  ;;  %v3763_v58 = vmul.f32 %v6830_v51, %v3722_v40  ;;  %v3766_v2 = vmul.f32 %v6830_v51, %v3725_v44 }
 0x574   :  { %vm3740_vm14 = vcmp.ge.f32.partialorder %v3728_v46, 0.0  ;;  %v3769_v0 = vmul.f32 %v6830_v51, %v3728_v46  ;;  %v3772_v45 = vsel %vm3731_vm11, %v3719_v39, %v3760_v57 }
 0x575   :  { %v3775_v36 = vsel %vm3734_vm12, %v3722_v40, %v3763_v58  ;;  %v3778_v9 = vsel %vm3737_vm13, %v3725_v44, %v3766_v2  ;;  %3784 = vst [vmem:[#allocation4 + $0x8] sm:$0xff] %v3772_v45 }
 0x576   :  { %v3781_v15 = vsel %vm3740_vm14, %v3728_v46, %v3769_v0  ;;  %3787 = vst [vmem:[#allocation4 + $0x20] sm:$0xff] %v3775_v36  ;;  %3790 = vst [vmem:[#allocation4 + $0x38] sm:$0xff] %v3778_v9 }
 0x577   :  { %3793 = vst [vmem:[#allocation4 + $0x50] sm:$0xff] %v3781_v15 }
 0x578   :  { %5189 = shalt.err (!%p5186_p4)
}
 0x579   :  { %s5190_s2 = scalar_lea.hbm %s6880_s7, 1536 }
 0x57a   :  { %p5191_p5 = scmp.ne.s32.totalorder %s6880_s7, %s5190_s2  ;;  %p5194_p6 = scmp.lt.u32.totalorder %s5190_s2, %s6880_s7 }
 0x57c   :  { %p5196_p7 = pnand %p5194_p6, %p5191_p5 }
 0x57e   :  { %5199 = shalt.err (!%p5196_p7)
}
 0x57f   :  { %s5208_s17 = smov 384   ;;  %s5209_s18 = smov 24  }
 0x580   :  { %3806 = dma.vmem_to_hbm [thread:$0]  %s3801_s5, 1536, %s6880_s7, [#allocation5], %s5208_s17, %s5208_s17, %s5209_s18  }
 0x581   :  { %5200 = dma.done.wait [#allocation5], 1536  }
 0x582   :  { %5201 = vsyncadd [#allocation5], 4294965760 }
 0x583   :  { %3810 = vsyncpa [#allocation5], 1 }

</bundles_post_ra>
